<compile_context>
chip_gen: v6e
topology: v6e:2x2x1
jax: 0.10.0
libtpu: 0.0.40
codegen_flags: <defaults>
</compile_context>

<pallas_src>
import functools
import math

import jax
import jax.numpy as jnp
import numpy as np
from jax import lax
from jax.experimental import pallas as pl
from jax.experimental.pallas import tpu as pltpu


# -----------------------------------------------------------------------------
# Kernel: whole sequence in VMEM, unrolled time loop, state in the loop carry.
# -----------------------------------------------------------------------------
def _hm_lstm_kernel(x2d_ref, w1x_ref, w1h_ref, w1t_ref, b1_ref,
                    w2x_ref, w2h_ref, b2_ref,
                    slab_ref, cfin_ref, xs_ref,
                    *, hidden_size, batch, time_steps, a):
    H = hidden_size
    B = batch
    T = time_steps
    G4 = 4 * H
    GP = xs_ref.shape[-1]          # padded gate width (4H + >=128)

    # Hoist weight loads / bias broadcast out of the (unrolled) time loop.
    w1h = w1h_ref[...]             # (H, GP)   layer-1 own-h weights
    w1t = w1t_ref[...]             # (H, GP)   layer-1 top-down weights
    w2x = w2x_ref[...]             # (H, GP)   layer-2 bottom (h1) weights
    w2h = w2h_ref[...]             # (H, GP)   layer-2 own-h weights
    b2b = jnp.broadcast_to(b2_ref[...], (B, GP))

    # Whole-sequence input projection (x part of layer-1 gates + z row + bias),
    # computed ONCE off the recurrent critical path, into VMEM scratch.
    xs_ref[...] = (jnp.dot(x2d_ref[...], w1x_ref[...],
                           preferred_element_type=jnp.float32)
                   + b1_ref[...])                      # (T*B, GP)

    row_aligned = (B % 8 == 0)

    def step(t, carry):
        # z1 / z2 are carried pre-broadcast to (B, H), values in {0, 1}.
        h1, c1, z1, h2, c2, z2 = carry

        start = t * B
        if row_aligned:
            start = pl.multiple_of(start, 8)
        x_t = xs_ref[pl.ds(start, B), :]               # (B, GP)

        # ---------------- layer 1 (z_bottom == 1, top-down from layer 2) ----
        s1 = (x_t
              + jnp.dot(h1, w1h, preferred_element_type=jnp.float32)
              + jnp.dot(z1 * h2, w1t, preferred_element_type=jnp.float32))
        s1g = s1[:, :G4]                               # (B, 4H) = 128 lanes
        sig1 = jax.nn.sigmoid(s1g)                     # one full-width EUP pass
        th1 = jnp.tanh(s1g)                            # one full-width EUP pass
        f1 = sig1[:, 0:H]
        i1 = sig1[:, H:2 * H]
        o1 = sig1[:, 2 * H:3 * H]
        g1 = th1[:, 3 * H:4 * H]
        zl1 = s1[:, G4:G4 + H]                         # z logit, MXU-broadcast
        if a > 0:                                      # hard_sigm(zl)>0.5 <=> zl>0
            z1n = (zl1 > 0.0).astype(jnp.float32)
        else:
            zh1 = jnp.clip((a * zl1 + 1.0) * 0.5, 0.0, 1.0)
            z1n = (zh1 > 0.5).astype(jnp.float32)

        # general update specialized to z_bottom == 1 (algebraically exact):
        #   c' = i*g + (1-z)*f*c ,  h' = o*tanh(c')
        c1n = i1 * g1 + (1.0 - z1) * (f1 * c1)
        h1n = o1 * jnp.tanh(c1n)

        # ---------------- layer 2 (last layer: no top-down, z_bottom = z1n) --
        s2 = (jnp.dot(h1n, w2x, preferred_element_type=jnp.float32)
              + jnp.dot(z1n * h2, w2h, preferred_element_type=jnp.float32)
              + b2b)
        s2g = s2[:, :G4]
        sig2 = jax.nn.sigmoid(s2g)
        th2 = jnp.tanh(s2g)
        f2 = sig2[:, 0:H]
        i2 = sig2[:, H:2 * H]
        o2 = sig2[:, 2 * H:3 * H]
        g2 = th2[:, 3 * H:4 * H]
        zl2 = s2[:, G4:G4 + H]
        if a > 0:
            z2n = (zl2 > 0.0).astype(jnp.float32)
        else:
            zh2 = jnp.clip((a * zl2 + 1.0) * 0.5, 0.0, 1.0)
            z2n = (zh2 > 0.5).astype(jnp.float32)

        ig2 = i2 * g2
        nz2 = 1.0 - z2
        c2n = z2 * ig2 + nz2 * (1.0 - z1n) * c2 + nz2 * z1n * (f2 * c2 + ig2)
        ot2 = o2 * jnp.tanh(c2n)
        h2n = z2 * ot2 + nz2 * (1.0 - z1n) * h2 + nz2 * z1n * ot2

        # single lane-dense store: [h1 | h2 | z1(bcast) | z2(bcast)] = 4H lanes
        slab_ref[t] = jnp.concatenate([h1n, h2n, z1n, z2n], axis=1)

        return h1n, c1n, z1n, h2n, c2n, z2n

    zeros = jnp.zeros((B, H), jnp.float32)
    carry = (zeros, zeros, zeros, zeros, zeros, zeros)
    _, c1, _, _, c2, _ = lax.fori_loop(0, T, step, carry, unroll=True)

    # final cell states, written once after the loop (h/z finals come from the
    # last slab row in the wrapper)
    cfin_ref[...] = jnp.concatenate([c1, c2], axis=1)


# -----------------------------------------------------------------------------
# Wrapper: weight packing, single pallas_call, output un-packing.
# -----------------------------------------------------------------------------
def hm_lstm_forward(x, params, *, a, hidden_size):
    """x: (B, T, D) float32. Returns (h_1, h_2, z_1, z_2, hidden) like torch."""
    B, T, D = x.shape
    H = hidden_size
    G4 = 4 * H
    zpad = max(128, ((H + 127) // 128) * 128)   # room for the replicated z row
    GP = G4 + zpad
    w01_1, u11_1, u21_1, b1, w01_2, u11_2, b2 = params

    def pack_w(w):
        # torch layout (4H+1, in) -> (in, GP): gate cols, z row replicated into
        # H columns (so the z logit exits the MXU pre-broadcast), zero pad.
        wt = w.T
        gates = wt[:, :G4]
        zrep = jnp.tile(wt[:, G4:G4 + 1], (1, H))
        pad = jnp.zeros((wt.shape[0], GP - G4 - H), wt.dtype)
        return jnp.concatenate([gates, zrep, pad], axis=1)

    def pack_b(b):
        return jnp.concatenate(
            [b[:G4], jnp.tile(b[G4:G4 + 1], (H,)),
             jnp.zeros((GP - G4 - H,), b.dtype)]).reshape(1, GP)

    w1x = pack_w(w01_1)        # (D, GP)  layer-1 bottom (x)
    w1h = pack_w(u11_1)        # (H, GP)  layer-1 own h
    w1t = pack_w(u21_1)        # (H, GP)  layer-1 top-down
    b1p = pack_b(b1)           # (1, GP)
    w2x = pack_w(w01_2)        # (H, GP)  layer-2 bottom (h1)
    w2h = pack_w(u11_2)        # (H, GP)  layer-2 own h
    b2p = pack_b(b2)           # (1, GP)

    x2d = jnp.transpose(x, (1, 0, 2)).reshape(T * B, D)   # (T*B, D), time-major

    kernel = functools.partial(_hm_lstm_kernel, hidden_size=H,
                               batch=B, time_steps=T, a=a)
    out_shapes = (
        jax.ShapeDtypeStruct((T, B, 4 * H), jnp.float32),  # [h1|h2|z1|z2] slab
        jax.ShapeDtypeStruct((B, 2 * H), jnp.float32),     # final [c1|c2]
    )

    # Single invocation, no grid: whole arrays are resident in VMEM.
    slab, cfin = pl.pallas_call(
        kernel,
        out_shape=out_shapes,
        scratch_shapes=[pltpu.VMEM((T * B, GP), jnp.float32)],
        compiler_params=pltpu.CompilerParams(
            vmem_limit_bytes=32 * 1024 * 1024),
    )(x2d, w1x, w1h, w1t, b1p, w2x, w2h, b2p)

    slab = jnp.transpose(slab, (1, 0, 2))                  # (B, T, 4H)
    h_1 = slab[:, :, 0:H]
    h_2 = slab[:, :, H:2 * H]
    z_1 = slab[:, :, 2 * H:2 * H + 1]
    z_2 = slab[:, :, 3 * H:3 * H + 1]

    last = slab[:, -1, :]                                  # (B, 4H), t = T-1
    # torch `hidden` is feature-major: (H, B) / (1, B)
    hidden = (last[:, 0:H].T,               # h_t1
              cfin[:, :H].T,                # c_t1
              last[:, 2 * H:2 * H + 1].T,   # z_t1
              last[:, H:2 * H].T,           # h_t2
              cfin[:, H:].T,                # c_t2
              last[:, 3 * H:3 * H + 1].T)   # z_t2
    return h_1, h_2, z_1, z_2, hidden


# -----------------------------------------------------------------------------
# Pure-JAX reference (general cell formula) — for verification only.
# -----------------------------------------------------------------------------
def hm_lstm_reference(x, params, *, a, hidden_size):
    B, T, D = x.shape
    H = hidden_size
    G4 = 4 * H
    w01_1, u11_1, u21_1, b1, w01_2, u11_2, b2 = params

    w1 = jnp.concatenate([w01_1, u11_1, u21_1], axis=1).T     # (D+2H, 4H+1)
    w2 = jnp.concatenate([w01_2, u11_2], axis=1).T            # (2H,   4H+1)
    w1g, w1z = w1[:, :G4], w1[:, G4]
    w2g, w2z = w2[:, :G4], w2[:, G4]
    b1g, b1z = b1[:G4], b1[G4]
    b2g, b2z = b2[:G4], b2[G4]

    def cell(c, h, a_in, wg, wz, bg, bz, z, z_bottom):
        s = jnp.dot(a_in, wg, preferred_element_type=jnp.float32) + bg
        zl = jnp.sum(a_in * wz, axis=1, keepdims=True) + bz
        f = jax.nn.sigmoid(s[:, 0:H])
        i = jax.nn.sigmoid(s[:, H:2 * H])
        o = jax.nn.sigmoid(s[:, 2 * H:3 * H])
        g = jnp.tanh(s[:, 3 * H:4 * H])
        z_hat = jnp.clip((a * zl + 1.0) / 2.0, 0.0, 1.0)
        c_new = (z * (i * g)
                 + (1.0 - z) * (1.0 - z_bottom) * c
                 + (1.0 - z) * z_bottom * (f * c + i * g))
        tc = jnp.tanh(c_new)
        h_new = (z * o * tc
                 + (1.0 - z) * (1.0 - z_bottom) * h
                 + (1.0 - z) * z_bottom * o * tc)
        z_new = (z_hat > 0.5).astype(jnp.float32)
        return h_new, c_new, z_new

    h1 = jnp.zeros((B, H), jnp.float32); c1 = jnp.zeros((B, H), jnp.float32)
    h2 = jnp.zeros((B, H), jnp.float32); c2 = jnp.zeros((B, H), jnp.float32)
    z1 = jnp.zeros((B, 1), jnp.float32); z2 = jnp.zeros((B, 1), jnp.float32)
    one = jnp.ones((B, 1), jnp.float32)

    h1s, h2s, z1s, z2s = [], [], [], []
    for t in range(T):
        a1 = jnp.concatenate([x[:, t, :], h1, z1 * h2], axis=1)
        h1, c1, z1 = cell(c1, h1, a1, w1g, w1z, b1g, b1z, z1, one)
        a2 = jnp.concatenate([h1, z1 * h2], axis=1)
        h2, c2, z2 = cell(c2, h2, a2, w2g, w2z, b2g, b2z, z2, z1)
        h1s.append(h1); h2s.append(h2); z1s.append(z1); z2s.append(z2)

    return (jnp.stack(h1s, 1), jnp.stack(h2s, 1),
            jnp.stack(z1s, 1), jnp.stack(z2s, 1),
            (h1.T, c1.T, z1.T, h2.T, c2.T, z2.T))


# -----------------------------------------------------------------------------
# Main
# -----------------------------------------------------------------------------
if __name__ == "__main__":
    B, T, D, H = 8, 8, 32, 32            # batch, time_steps, input_size, hidden_size
    A = 1.0                              # slope `a` of hard_sigm
    G = 4 * H + 1
    stdv = 1.0 / math.sqrt(H)

    key = jax.random.PRNGKey(0)
    ks = jax.random.split(key, 8)
    uni = lambda k, shape: jax.random.uniform(k, shape, jnp.float32, -stdv, stdv)

    params = (
        uni(ks[0], (G, D)),   # cell_1.W_01
        uni(ks[1], (G, H)),   # cell_1.U_11
        uni(ks[2], (G, H)),   # cell_1.U_21
        uni(ks[3], (G,)),     # cell_1.bias
        uni(ks[4], (G, H)),   # cell_2.W_01
        uni(ks[5], (G, H)),   # cell_2.U_11
        uni(ks[6], (G,)),     # cell_2.bias
    )
    x = jax.random.normal(ks[7], (B, T, D), jnp.float32)

    fwd = jax.jit(functools.partial(hm_lstm_forward, a=A, hidden_size=H))
    h_1, h_2, z_1, z_2, hidden = jax.block_until_ready(fwd(x, params))

    # verify against pure-JAX reference
    r_h1, r_h2, r_z1, r_z2, r_hidden = hm_lstm_reference(
        x, params, a=A, hidden_size=H)
    np.testing.assert_allclose(np.asarray(h_1), np.asarray(r_h1), rtol=1e-4, atol=1e-4)
    np.testing.assert_allclose(np.asarray(h_2), np.asarray(r_h2), rtol=1e-4, atol=1e-4)
    np.testing.assert_allclose(np.asarray(z_1), np.asarray(r_z1), rtol=1e-4, atol=1e-4)
    np.testing.assert_allclose(np.asarray(z_2), np.asarray(r_z2), rtol=1e-4, atol=1e-4)
    for a_out, r_out in zip(hidden, r_hidden):
        np.testing.assert_allclose(np.asarray(a_out), np.asarray(r_out),
                                   rtol=1e-4, atol=1e-4)

    print("KERNEL_OK")
</pallas_src>

<mosaic_0001>
module attributes {stable_mosaic.version = 11 : i64} {
  func.func @_hm_lstm_kernel(%arg0: memref<64x32xf32, #tpu.memory_space<vmem>>, %arg1: memref<32x256xf32, #tpu.memory_space<vmem>>, %arg2: memref<32x256xf32, #tpu.memory_space<vmem>>, %arg3: memref<32x256xf32, #tpu.memory_space<vmem>>, %arg4: memref<1x256xf32, #tpu.memory_space<vmem>>, %arg5: memref<32x256xf32, #tpu.memory_space<vmem>>, %arg6: memref<32x256xf32, #tpu.memory_space<vmem>>, %arg7: memref<1x256xf32, #tpu.memory_space<vmem>>, %arg8: memref<8x8x128xf32, #tpu.memory_space<vmem>>, %arg9: memref<8x64xf32, #tpu.memory_space<vmem>>, %arg10: memref<64x256xf32, #tpu.memory_space<vmem>>) attributes {dimension_semantics = [], scalar_prefetch = 0 : i64, scratch_operands = 1 : i64, tpu.core_type = #tpu.core_type<tc>} {
    %c0 = arith.constant 0 : index
    %c0_0 = arith.constant 0 : index
    %0 = vector.load %arg2[%c0, %c0_0] : memref<32x256xf32, #tpu.memory_space<vmem>>, vector<32x256xf32>
    %c0_1 = arith.constant 0 : index
    %c0_2 = arith.constant 0 : index
    %1 = vector.load %arg3[%c0_1, %c0_2] : memref<32x256xf32, #tpu.memory_space<vmem>>, vector<32x256xf32>
    %c0_3 = arith.constant 0 : index
    %c0_4 = arith.constant 0 : index
    %2 = vector.load %arg5[%c0_3, %c0_4] : memref<32x256xf32, #tpu.memory_space<vmem>>, vector<32x256xf32>
    %c0_5 = arith.constant 0 : index
    %c0_6 = arith.constant 0 : index
    %3 = vector.load %arg6[%c0_5, %c0_6] : memref<32x256xf32, #tpu.memory_space<vmem>>, vector<32x256xf32>
    %c0_7 = arith.constant 0 : index
    %c0_8 = arith.constant 0 : index
    %4 = vector.load %arg7[%c0_7, %c0_8] : memref<1x256xf32, #tpu.memory_space<vmem>>, vector<1x256xf32>
    %5 = vector.shape_cast %4 : vector<1x256xf32> to vector<1x256xf32>
    %6 = vector.broadcast %5 : vector<1x256xf32> to vector<8x256xf32>
    %c0_9 = arith.constant 0 : index
    %c0_10 = arith.constant 0 : index
    %7 = vector.load %arg0[%c0_9, %c0_10] : memref<64x32xf32, #tpu.memory_space<vmem>>, vector<64x32xf32>
    %c0_11 = arith.constant 0 : index
    %c0_12 = arith.constant 0 : index
    %8 = vector.load %arg1[%c0_11, %c0_12] : memref<32x256xf32, #tpu.memory_space<vmem>>, vector<32x256xf32>
    %cst = arith.constant dense<0.000000e+00> : vector<64x256xf32>
    %9 = tpu.matmul %7, %8, %cst {dimension_numbers = #tpu.dot_dimension_numbers<[1], [0], [0], [1], [0, 0, 1, 1], [], []>} : vector<64x32xf32>, vector<32x256xf32>, vector<64x256xf32> -> vector<64x256xf32>
    %c0_13 = arith.constant 0 : index
    %c0_14 = arith.constant 0 : index
    %10 = vector.load %arg4[%c0_13, %c0_14] : memref<1x256xf32, #tpu.memory_space<vmem>>, vector<1x256xf32>
    %11 = vector.broadcast %10 : vector<1x256xf32> to vector<64x256xf32>
    %12 = arith.addf %9, %11 : vector<64x256xf32>
    %c0_15 = arith.constant 0 : index
    %c0_16 = arith.constant 0 : index
    %13 = vector.load %arg10[%c0_15, %c0_16] : memref<64x256xf32, #tpu.memory_space<vmem>>, vector<64x256xf32>
    tpu.vector_store %arg10[%c0_15, %c0_16], %12 {strides = array<i32>} : memref<64x256xf32, #tpu.memory_space<vmem>>, vector<64x256xf32>,
    %cst_17 = arith.constant 0.000000e+00 : f32
    %14 = vector.broadcast %cst_17 : f32 to vector<8x32xf32>
    %c0_i32 = arith.constant 0 : i32
    %c8_i32 = arith.constant 8 : i32
    %15 = arith.muli %c0_i32, %c8_i32 : i32
    %16 = tpu.assume_multiple %15, 8 : i32
    %17 = arith.index_cast %16 : i32 to index
    %c0_18 = arith.constant 0 : index
    %18 = vector.load %arg10[%17, %c0_18] : memref<64x256xf32, #tpu.memory_space<vmem>>, vector<8x256xf32>
    %cst_19 = arith.constant dense<0.000000e+00> : vector<8x256xf32>
    %19 = tpu.matmul %14, %0, %cst_19 {dimension_numbers = #tpu.dot_dimension_numbers<[1], [0], [0], [1], [0, 0, 1, 1], [], []>} : vector<8x32xf32>, vector<32x256xf32>, vector<8x256xf32> -> vector<8x256xf32>
    %20 = arith.addf %18, %19 : vector<8x256xf32>
    %21 = arith.mulf %14, %14 : vector<8x32xf32>
    %cst_20 = arith.constant dense<0.000000e+00> : vector<8x256xf32>
    %22 = tpu.matmul %21, %1, %cst_20 {dimension_numbers = #tpu.dot_dimension_numbers<[1], [0], [0], [1], [0, 0, 1, 1], [], []>} : vector<8x32xf32>, vector<32x256xf32>, vector<8x256xf32> -> vector<8x256xf32>
    %23 = arith.addf %20, %22 : vector<8x256xf32>
    %24 = vector.extract_strided_slice %23 {offsets = [0, 0], sizes = [8, 128], strides = [1, 1]} : vector<8x256xf32> to vector<8x128xf32>
    %25 = arith.negf %24 : vector<8x128xf32>
    %26 = math.exp %25 : vector<8x128xf32>
    %cst_21 = arith.constant 1.000000e+00 : f32
    %27 = vector.broadcast %cst_21 : f32 to vector<8x128xf32>
    %28 = arith.addf %27, %26 : vector<8x128xf32>
    %29 = arith.divf %27, %28 : vector<8x128xf32>
    %30 = math.tanh %24 : vector<8x128xf32>
    %31 = vector.extract_strided_slice %29 {offsets = [0, 0], sizes = [8, 32], strides = [1, 1]} : vector<8x128xf32> to vector<8x32xf32>
    %32 = vector.extract_strided_slice %29 {offsets = [0, 32], sizes = [8, 32], strides = [1, 1]} : vector<8x128xf32> to vector<8x32xf32>
    %33 = vector.extract_strided_slice %29 {offsets = [0, 64], sizes = [8, 32], strides = [1, 1]} : vector<8x128xf32> to vector<8x32xf32>
    %34 = vector.extract_strided_slice %30 {offsets = [0, 96], sizes = [8, 32], strides = [1, 1]} : vector<8x128xf32> to vector<8x32xf32>
    %35 = vector.extract_strided_slice %23 {offsets = [0, 128], sizes = [8, 32], strides = [1, 1]} : vector<8x256xf32> to vector<8x32xf32>
    %cst_22 = arith.constant 0.000000e+00 : f32
    %36 = vector.broadcast %cst_22 : f32 to vector<8x32xf32>
    %37 = arith.cmpf ogt, %35, %36 : vector<8x32xf32>
    %38 = arith.extui %37 : vector<8x32xi1> to vector<8x32xi32>
    %39 = arith.sitofp %38 : vector<8x32xi32> to vector<8x32xf32>
    %40 = arith.mulf %32, %34 : vector<8x32xf32>
    %cst_23 = arith.constant 1.000000e+00 : f32
    %41 = vector.broadcast %cst_23 : f32 to vector<8x32xf32>
    %42 = arith.subf %41, %14 : vector<8x32xf32>
    %43 = arith.mulf %31, %14 : vector<8x32xf32>
    %44 = arith.mulf %42, %43 : vector<8x32xf32>
    %45 = arith.addf %40, %44 : vector<8x32xf32>
    %46 = math.tanh %45 : vector<8x32xf32>
    %47 = arith.mulf %33, %46 : vector<8x32xf32>
    %cst_24 = arith.constant dense<0.000000e+00> : vector<8x256xf32>
    %48 = tpu.matmul %47, %2, %cst_24 {dimension_numbers = #tpu.dot_dimension_numbers<[1], [0], [0], [1], [0, 0, 1, 1], [], []>} : vector<8x32xf32>, vector<32x256xf32>, vector<8x256xf32> -> vector<8x256xf32>
    %49 = arith.mulf %39, %14 : vector<8x32xf32>
    %cst_25 = arith.constant dense<0.000000e+00> : vector<8x256xf32>
    %50 = tpu.matmul %49, %3, %cst_25 {dimension_numbers = #tpu.dot_dimension_numbers<[1], [0], [0], [1], [0, 0, 1, 1], [], []>} : vector<8x32xf32>, vector<32x256xf32>, vector<8x256xf32> -> vector<8x256xf32>
    %51 = arith.addf %48, %50 : vector<8x256xf32>
    %52 = arith.addf %51, %6 : vector<8x256xf32>
    %53 = vector.extract_strided_slice %52 {offsets = [0, 0], sizes = [8, 128], strides = [1, 1]} : vector<8x256xf32> to vector<8x128xf32>
    %54 = arith.negf %53 : vector<8x128xf32>
    %55 = math.exp %54 : vector<8x128xf32>
    %cst_26 = arith.constant 1.000000e+00 : f32
    %56 = vector.broadcast %cst_26 : f32 to vector<8x128xf32>
    %57 = arith.addf %56, %55 : vector<8x128xf32>
    %58 = arith.divf %56, %57 : vector<8x128xf32>
    %59 = math.tanh %53 : vector<8x128xf32>
    %60 = vector.extract_strided_slice %58 {offsets = [0, 0], sizes = [8, 32], strides = [1, 1]} : vector<8x128xf32> to vector<8x32xf32>
    %61 = vector.extract_strided_slice %58 {offsets = [0, 32], sizes = [8, 32], strides = [1, 1]} : vector<8x128xf32> to vector<8x32xf32>
    %62 = vector.extract_strided_slice %58 {offsets = [0, 64], sizes = [8, 32], strides = [1, 1]} : vector<8x128xf32> to vector<8x32xf32>
    %63 = vector.extract_strided_slice %59 {offsets = [0, 96], sizes = [8, 32], strides = [1, 1]} : vector<8x128xf32> to vector<8x32xf32>
    %64 = vector.extract_strided_slice %52 {offsets = [0, 128], sizes = [8, 32], strides = [1, 1]} : vector<8x256xf32> to vector<8x32xf32>
    %cst_27 = arith.constant 0.000000e+00 : f32
    %65 = vector.broadcast %cst_27 : f32 to vector<8x32xf32>
    %66 = arith.cmpf ogt, %64, %65 : vector<8x32xf32>
    %67 = arith.extui %66 : vector<8x32xi1> to vector<8x32xi32>
    %68 = arith.sitofp %67 : vector<8x32xi32> to vector<8x32xf32>
    %69 = arith.mulf %61, %63 : vector<8x32xf32>
    %cst_28 = arith.constant 1.000000e+00 : f32
    %70 = vector.broadcast %cst_28 : f32 to vector<8x32xf32>
    %71 = arith.subf %70, %14 : vector<8x32xf32>
    %72 = arith.mulf %14, %69 : vector<8x32xf32>
    %cst_29 = arith.constant 1.000000e+00 : f32
    %73 = vector.broadcast %cst_29 : f32 to vector<8x32xf32>
    %74 = arith.subf %73, %39 : vector<8x32xf32>
    %75 = arith.mulf %71, %74 : vector<8x32xf32>
    %76 = arith.mulf %75, %14 : vector<8x32xf32>
    %77 = arith.addf %72, %76 : vector<8x32xf32>
    %78 = arith.mulf %71, %39 : vector<8x32xf32>
    %79 = arith.mulf %60, %14 : vector<8x32xf32>
    %80 = arith.addf %79, %69 : vector<8x32xf32>
    %81 = arith.mulf %78, %80 : vector<8x32xf32>
    %82 = arith.addf %77, %81 : vector<8x32xf32>
    %83 = math.tanh %82 : vector<8x32xf32>
    %84 = arith.mulf %62, %83 : vector<8x32xf32>
    %85 = arith.mulf %14, %84 : vector<8x32xf32>
    %cst_30 = arith.constant 1.000000e+00 : f32
    %86 = vector.broadcast %cst_30 : f32 to vector<8x32xf32>
    %87 = arith.subf %86, %39 : vector<8x32xf32>
    %88 = arith.mulf %71, %87 : vector<8x32xf32>
    %89 = arith.mulf %88, %14 : vector<8x32xf32>
    %90 = arith.addf %85, %89 : vector<8x32xf32>
    %91 = arith.mulf %71, %39 : vector<8x32xf32>
    %92 = arith.mulf %91, %84 : vector<8x32xf32>
    %93 = arith.addf %90, %92 : vector<8x32xf32>
    %94 = tpu.concatenate %47, %93, %39, %68 in 1 : vector<8x32xf32>, vector<8x32xf32>, vector<8x32xf32>, vector<8x32xf32> -> vector<8x128xf32>
    %95 = arith.index_cast %c0_i32 : i32 to index
    %c0_31 = arith.constant 0 : index
    %c0_32 = arith.constant 0 : index
    %96 = vector.load %arg8[%95, %c0_31, %c0_32] : memref<8x8x128xf32, #tpu.memory_space<vmem>>, vector<1x8x128xf32>
    %97 = vector.shape_cast %96 : vector<1x8x128xf32> to vector<8x128xf32>
    %98 = vector.shape_cast %94 : vector<8x128xf32> to vector<1x8x128xf32>
    tpu.vector_store %arg8[%95, %c0_31, %c0_32], %98 {strides = array<i32>} : memref<8x8x128xf32, #tpu.memory_space<vmem>>, vector<1x8x128xf32>,
    %c1_i32 = arith.constant 1 : i32
    %c8_i32_33 = arith.constant 8 : i32
    %99 = arith.muli %c1_i32, %c8_i32_33 : i32
    %100 = tpu.assume_multiple %99, 8 : i32
    %101 = arith.index_cast %100 : i32 to index
    %c0_34 = arith.constant 0 : index
    %102 = vector.load %arg10[%101, %c0_34] : memref<64x256xf32, #tpu.memory_space<vmem>>, vector<8x256xf32>
    %cst_35 = arith.constant dense<0.000000e+00> : vector<8x256xf32>
    %103 = tpu.matmul %47, %0, %cst_35 {dimension_numbers = #tpu.dot_dimension_numbers<[1], [0], [0], [1], [0, 0, 1, 1], [], []>} : vector<8x32xf32>, vector<32x256xf32>, vector<8x256xf32> -> vector<8x256xf32>
    %104 = arith.addf %102, %103 : vector<8x256xf32>
    %105 = arith.mulf %39, %93 : vector<8x32xf32>
    %cst_36 = arith.constant dense<0.000000e+00> : vector<8x256xf32>
    %106 = tpu.matmul %105, %1, %cst_36 {dimension_numbers = #tpu.dot_dimension_numbers<[1], [0], [0], [1], [0, 0, 1, 1], [], []>} : vector<8x32xf32>, vector<32x256xf32>, vector<8x256xf32> -> vector<8x256xf32>
    %107 = arith.addf %104, %106 : vector<8x256xf32>
    %108 = vector.extract_strided_slice %107 {offsets = [0, 0], sizes = [8, 128], strides = [1, 1]} : vector<8x256xf32> to vector<8x128xf32>
    %109 = arith.negf %108 : vector<8x128xf32>
    %110 = math.exp %109 : vector<8x128xf32>
    %cst_37 = arith.constant 1.000000e+00 : f32
    %111 = vector.broadcast %cst_37 : f32 to vector<8x128xf32>
    %112 = arith.addf %111, %110 : vector<8x128xf32>
    %113 = arith.divf %111, %112 : vector<8x128xf32>
    %114 = math.tanh %108 : vector<8x128xf32>
    %115 = vector.extract_strided_slice %113 {offsets = [0, 0], sizes = [8, 32], strides = [1, 1]} : vector<8x128xf32> to vector<8x32xf32>
    %116 = vector.extract_strided_slice %113 {offsets = [0, 32], sizes = [8, 32], strides = [1, 1]} : vector<8x128xf32> to vector<8x32xf32>
    %117 = vector.extract_strided_slice %113 {offsets = [0, 64], sizes = [8, 32], strides = [1, 1]} : vector<8x128xf32> to vector<8x32xf32>
    %118 = vector.extract_strided_slice %114 {offsets = [0, 96], sizes = [8, 32], strides = [1, 1]} : vector<8x128xf32> to vector<8x32xf32>
    %119 = vector.extract_strided_slice %107 {offsets = [0, 128], sizes = [8, 32], strides = [1, 1]} : vector<8x256xf32> to vector<8x32xf32>
    %cst_38 = arith.constant 0.000000e+00 : f32
    %120 = vector.broadcast %cst_38 : f32 to vector<8x32xf32>
    %121 = arith.cmpf ogt, %119, %120 : vector<8x32xf32>
    %122 = arith.extui %121 : vector<8x32xi1> to vector<8x32xi32>
    %123 = arith.sitofp %122 : vector<8x32xi32> to vector<8x32xf32>
    %124 = arith.mulf %116, %118 : vector<8x32xf32>
    %cst_39 = arith.constant 1.000000e+00 : f32
    %125 = vector.broadcast %cst_39 : f32 to vector<8x32xf32>
    %126 = arith.subf %125, %39 : vector<8x32xf32>
    %127 = arith.mulf %115, %45 : vector<8x32xf32>
    %128 = arith.mulf %126, %127 : vector<8x32xf32>
    %129 = arith.addf %124, %128 : vector<8x32xf32>
    %130 = math.tanh %129 : vector<8x32xf32>
    %131 = arith.mulf %117, %130 : vector<8x32xf32>
    %cst_40 = arith.constant dense<0.000000e+00> : vector<8x256xf32>
    %132 = tpu.matmul %131, %2, %cst_40 {dimension_numbers = #tpu.dot_dimension_numbers<[1], [0], [0], [1], [0, 0, 1, 1], [], []>} : vector<8x32xf32>, vector<32x256xf32>, vector<8x256xf32> -> vector<8x256xf32>
    %133 = arith.mulf %123, %93 : vector<8x32xf32>
    %cst_41 = arith.constant dense<0.000000e+00> : vector<8x256xf32>
    %134 = tpu.matmul %133, %3, %cst_41 {dimension_numbers = #tpu.dot_dimension_numbers<[1], [0], [0], [1], [0, 0, 1, 1], [], []>} : vector<8x32xf32>, vector<32x256xf32>, vector<8x256xf32> -> vector<8x256xf32>
    %135 = arith.addf %132, %134 : vector<8x256xf32>
    %136 = arith.addf %135, %6 : vector<8x256xf32>
    %137 = vector.extract_strided_slice %136 {offsets = [0, 0], sizes = [8, 128], strides = [1, 1]} : vector<8x256xf32> to vector<8x128xf32>
    %138 = arith.negf %137 : vector<8x128xf32>
    %139 = math.exp %138 : vector<8x128xf32>
    %cst_42 = arith.constant 1.000000e+00 : f32
    %140 = vector.broadcast %cst_42 : f32 to vector<8x128xf32>
    %141 = arith.addf %140, %139 : vector<8x128xf32>
    %142 = arith.divf %140, %141 : vector<8x128xf32>
    %143 = math.tanh %137 : vector<8x128xf32>
    %144 = vector.extract_strided_slice %142 {offsets = [0, 0], sizes = [8, 32], strides = [1, 1]} : vector<8x128xf32> to vector<8x32xf32>
    %145 = vector.extract_strided_slice %142 {offsets = [0, 32], sizes = [8, 32], strides = [1, 1]} : vector<8x128xf32> to vector<8x32xf32>
    %146 = vector.extract_strided_slice %142 {offsets = [0, 64], sizes = [8, 32], strides = [1, 1]} : vector<8x128xf32> to vector<8x32xf32>
    %147 = vector.extract_strided_slice %143 {offsets = [0, 96], sizes = [8, 32], strides = [1, 1]} : vector<8x128xf32> to vector<8x32xf32>
    %148 = vector.extract_strided_slice %136 {offsets = [0, 128], sizes = [8, 32], strides = [1, 1]} : vector<8x256xf32> to vector<8x32xf32>
    %cst_43 = arith.constant 0.000000e+00 : f32
    %149 = vector.broadcast %cst_43 : f32 to vector<8x32xf32>
    %150 = arith.cmpf ogt, %148, %149 : vector<8x32xf32>
    %151 = arith.extui %150 : vector<8x32xi1> to vector<8x32xi32>
    %152 = arith.sitofp %151 : vector<8x32xi32> to vector<8x32xf32>
    %153 = arith.mulf %145, %147 : vector<8x32xf32>
    %cst_44 = arith.constant 1.000000e+00 : f32
    %154 = vector.broadcast %cst_44 : f32 to vector<8x32xf32>
    %155 = arith.subf %154, %68 : vector<8x32xf32>
    %156 = arith.mulf %68, %153 : vector<8x32xf32>
    %cst_45 = arith.constant 1.000000e+00 : f32
    %157 = vector.broadcast %cst_45 : f32 to vector<8x32xf32>
    %158 = arith.subf %157, %123 : vector<8x32xf32>
    %159 = arith.mulf %155, %158 : vector<8x32xf32>
    %160 = arith.mulf %159, %82 : vector<8x32xf32>
    %161 = arith.addf %156, %160 : vector<8x32xf32>
    %162 = arith.mulf %155, %123 : vector<8x32xf32>
    %163 = arith.mulf %144, %82 : vector<8x32xf32>
    %164 = arith.addf %163, %153 : vector<8x32xf32>
    %165 = arith.mulf %162, %164 : vector<8x32xf32>
    %166 = arith.addf %161, %165 : vector<8x32xf32>
    %167 = math.tanh %166 : vector<8x32xf32>
    %168 = arith.mulf %146, %167 : vector<8x32xf32>
    %169 = arith.mulf %68, %168 : vector<8x32xf32>
    %cst_46 = arith.constant 1.000000e+00 : f32
    %170 = vector.broadcast %cst_46 : f32 to vector<8x32xf32>
    %171 = arith.subf %170, %123 : vector<8x32xf32>
    %172 = arith.mulf %155, %171 : vector<8x32xf32>
    %173 = arith.mulf %172, %93 : vector<8x32xf32>
    %174 = arith.addf %169, %173 : vector<8x32xf32>
    %175 = arith.mulf %155, %123 : vector<8x32xf32>
    %176 = arith.mulf %175, %168 : vector<8x32xf32>
    %177 = arith.addf %174, %176 : vector<8x32xf32>
    %178 = tpu.concatenate %131, %177, %123, %152 in 1 : vector<8x32xf32>, vector<8x32xf32>, vector<8x32xf32>, vector<8x32xf32> -> vector<8x128xf32>
    %179 = arith.index_cast %c1_i32 : i32 to index
    %c0_47 = arith.constant 0 : index
    %c0_48 = arith.constant 0 : index
    %180 = vector.load %arg8[%179, %c0_47, %c0_48] : memref<8x8x128xf32, #tpu.memory_space<vmem>>, vector<1x8x128xf32>
    %181 = vector.shape_cast %180 : vector<1x8x128xf32> to vector<8x128xf32>
    %182 = vector.shape_cast %178 : vector<8x128xf32> to vector<1x8x128xf32>
    tpu.vector_store %arg8[%179, %c0_47, %c0_48], %182 {strides = array<i32>} : memref<8x8x128xf32, #tpu.memory_space<vmem>>, vector<1x8x128xf32>,
    %c2_i32 = arith.constant 2 : i32
    %c8_i32_49 = arith.constant 8 : i32
    %183 = arith.muli %c2_i32, %c8_i32_49 : i32
    %184 = tpu.assume_multiple %183, 8 : i32
    %185 = arith.index_cast %184 : i32 to index
    %c0_50 = arith.constant 0 : index
    %186 = vector.load %arg10[%185, %c0_50] : memref<64x256xf32, #tpu.memory_space<vmem>>, vector<8x256xf32>
    %cst_51 = arith.constant dense<0.000000e+00> : vector<8x256xf32>
    %187 = tpu.matmul %131, %0, %cst_51 {dimension_numbers = #tpu.dot_dimension_numbers<[1], [0], [0], [1], [0, 0, 1, 1], [], []>} : vector<8x32xf32>, vector<32x256xf32>, vector<8x256xf32> -> vector<8x256xf32>
    %188 = arith.addf %186, %187 : vector<8x256xf32>
    %189 = arith.mulf %123, %177 : vector<8x32xf32>
    %cst_52 = arith.constant dense<0.000000e+00> : vector<8x256xf32>
    %190 = tpu.matmul %189, %1, %cst_52 {dimension_numbers = #tpu.dot_dimension_numbers<[1], [0], [0], [1], [0, 0, 1, 1], [], []>} : vector<8x32xf32>, vector<32x256xf32>, vector<8x256xf32> -> vector<8x256xf32>
    %191 = arith.addf %188, %190 : vector<8x256xf32>
    %192 = vector.extract_strided_slice %191 {offsets = [0, 0], sizes = [8, 128], strides = [1, 1]} : vector<8x256xf32> to vector<8x128xf32>
    %193 = arith.negf %192 : vector<8x128xf32>
    %194 = math.exp %193 : vector<8x128xf32>
    %cst_53 = arith.constant 1.000000e+00 : f32
    %195 = vector.broadcast %cst_53 : f32 to vector<8x128xf32>
    %196 = arith.addf %195, %194 : vector<8x128xf32>
    %197 = arith.divf %195, %196 : vector<8x128xf32>
    %198 = math.tanh %192 : vector<8x128xf32>
    %199 = vector.extract_strided_slice %197 {offsets = [0, 0], sizes = [8, 32], strides = [1, 1]} : vector<8x128xf32> to vector<8x32xf32>
    %200 = vector.extract_strided_slice %197 {offsets = [0, 32], sizes = [8, 32], strides = [1, 1]} : vector<8x128xf32> to vector<8x32xf32>
    %201 = vector.extract_strided_slice %197 {offsets = [0, 64], sizes = [8, 32], strides = [1, 1]} : vector<8x128xf32> to vector<8x32xf32>
    %202 = vector.extract_strided_slice %198 {offsets = [0, 96], sizes = [8, 32], strides = [1, 1]} : vector<8x128xf32> to vector<8x32xf32>
    %203 = vector.extract_strided_slice %191 {offsets = [0, 128], sizes = [8, 32], strides = [1, 1]} : vector<8x256xf32> to vector<8x32xf32>
    %cst_54 = arith.constant 0.000000e+00 : f32
    %204 = vector.broadcast %cst_54 : f32 to vector<8x32xf32>
    %205 = arith.cmpf ogt, %203, %204 : vector<8x32xf32>
    %206 = arith.extui %205 : vector<8x32xi1> to vector<8x32xi32>
    %207 = arith.sitofp %206 : vector<8x32xi32> to vector<8x32xf32>
    %208 = arith.mulf %200, %202 : vector<8x32xf32>
    %cst_55 = arith.constant 1.000000e+00 : f32
    %209 = vector.broadcast %cst_55 : f32 to vector<8x32xf32>
    %210 = arith.subf %209, %123 : vector<8x32xf32>
    %211 = arith.mulf %199, %129 : vector<8x32xf32>
    %212 = arith.mulf %210, %211 : vector<8x32xf32>
    %213 = arith.addf %208, %212 : vector<8x32xf32>
    %214 = math.tanh %213 : vector<8x32xf32>
    %215 = arith.mulf %201, %214 : vector<8x32xf32>
    %cst_56 = arith.constant dense<0.000000e+00> : vector<8x256xf32>
    %216 = tpu.matmul %215, %2, %cst_56 {dimension_numbers = #tpu.dot_dimension_numbers<[1], [0], [0], [1], [0, 0, 1, 1], [], []>} : vector<8x32xf32>, vector<32x256xf32>, vector<8x256xf32> -> vector<8x256xf32>
    %217 = arith.mulf %207, %177 : vector<8x32xf32>
    %cst_57 = arith.constant dense<0.000000e+00> : vector<8x256xf32>
    %218 = tpu.matmul %217, %3, %cst_57 {dimension_numbers = #tpu.dot_dimension_numbers<[1], [0], [0], [1], [0, 0, 1, 1], [], []>} : vector<8x32xf32>, vector<32x256xf32>, vector<8x256xf32> -> vector<8x256xf32>
    %219 = arith.addf %216, %218 : vector<8x256xf32>
    %220 = arith.addf %219, %6 : vector<8x256xf32>
    %221 = vector.extract_strided_slice %220 {offsets = [0, 0], sizes = [8, 128], strides = [1, 1]} : vector<8x256xf32> to vector<8x128xf32>
    %222 = arith.negf %221 : vector<8x128xf32>
    %223 = math.exp %222 : vector<8x128xf32>
    %cst_58 = arith.constant 1.000000e+00 : f32
    %224 = vector.broadcast %cst_58 : f32 to vector<8x128xf32>
    %225 = arith.addf %224, %223 : vector<8x128xf32>
    %226 = arith.divf %224, %225 : vector<8x128xf32>
    %227 = math.tanh %221 : vector<8x128xf32>
    %228 = vector.extract_strided_slice %226 {offsets = [0, 0], sizes = [8, 32], strides = [1, 1]} : vector<8x128xf32> to vector<8x32xf32>
    %229 = vector.extract_strided_slice %226 {offsets = [0, 32], sizes = [8, 32], strides = [1, 1]} : vector<8x128xf32> to vector<8x32xf32>
    %230 = vector.extract_strided_slice %226 {offsets = [0, 64], sizes = [8, 32], strides = [1, 1]} : vector<8x128xf32> to vector<8x32xf32>
    %231 = vector.extract_strided_slice %227 {offsets = [0, 96], sizes = [8, 32], strides = [1, 1]} : vector<8x128xf32> to vector<8x32xf32>
    %232 = vector.extract_strided_slice %220 {offsets = [0, 128], sizes = [8, 32], strides = [1, 1]} : vector<8x256xf32> to vector<8x32xf32>
    %cst_59 = arith.constant 0.000000e+00 : f32
    %233 = vector.broadcast %cst_59 : f32 to vector<8x32xf32>
    %234 = arith.cmpf ogt, %232, %233 : vector<8x32xf32>
    %235 = arith.extui %234 : vector<8x32xi1> to vector<8x32xi32>
    %236 = arith.sitofp %235 : vector<8x32xi32> to vector<8x32xf32>
    %237 = arith.mulf %229, %231 : vector<8x32xf32>
    %cst_60 = arith.constant 1.000000e+00 : f32
    %238 = vector.broadcast %cst_60 : f32 to vector<8x32xf32>
    %239 = arith.subf %238, %152 : vector<8x32xf32>
    %240 = arith.mulf %152, %237 : vector<8x32xf32>
    %cst_61 = arith.constant 1.000000e+00 : f32
    %241 = vector.broadcast %cst_61 : f32 to vector<8x32xf32>
    %242 = arith.subf %241, %207 : vector<8x32xf32>
    %243 = arith.mulf %239, %242 : vector<8x32xf32>
    %244 = arith.mulf %243, %166 : vector<8x32xf32>
    %245 = arith.addf %240, %244 : vector<8x32xf32>
    %246 = arith.mulf %239, %207 : vector<8x32xf32>
    %247 = arith.mulf %228, %166 : vector<8x32xf32>
    %248 = arith.addf %247, %237 : vector<8x32xf32>
    %249 = arith.mulf %246, %248 : vector<8x32xf32>
    %250 = arith.addf %245, %249 : vector<8x32xf32>
    %251 = math.tanh %250 : vector<8x32xf32>
    %252 = arith.mulf %230, %251 : vector<8x32xf32>
    %253 = arith.mulf %152, %252 : vector<8x32xf32>
    %cst_62 = arith.constant 1.000000e+00 : f32
    %254 = vector.broadcast %cst_62 : f32 to vector<8x32xf32>
    %255 = arith.subf %254, %207 : vector<8x32xf32>
    %256 = arith.mulf %239, %255 : vector<8x32xf32>
    %257 = arith.mulf %256, %177 : vector<8x32xf32>
    %258 = arith.addf %253, %257 : vector<8x32xf32>
    %259 = arith.mulf %239, %207 : vector<8x32xf32>
    %260 = arith.mulf %259, %252 : vector<8x32xf32>
    %261 = arith.addf %258, %260 : vector<8x32xf32>
    %262 = tpu.concatenate %215, %261, %207, %236 in 1 : vector<8x32xf32>, vector<8x32xf32>, vector<8x32xf32>, vector<8x32xf32> -> vector<8x128xf32>
    %263 = arith.index_cast %c2_i32 : i32 to index
    %c0_63 = arith.constant 0 : index
    %c0_64 = arith.constant 0 : index
    %264 = vector.load %arg8[%263, %c0_63, %c0_64] : memref<8x8x128xf32, #tpu.memory_space<vmem>>, vector<1x8x128xf32>
    %265 = vector.shape_cast %264 : vector<1x8x128xf32> to vector<8x128xf32>
    %266 = vector.shape_cast %262 : vector<8x128xf32> to vector<1x8x128xf32>
    tpu.vector_store %arg8[%263, %c0_63, %c0_64], %266 {strides = array<i32>} : memref<8x8x128xf32, #tpu.memory_space<vmem>>, vector<1x8x128xf32>,
    %c3_i32 = arith.constant 3 : i32
    %c8_i32_65 = arith.constant 8 : i32
    %267 = arith.muli %c3_i32, %c8_i32_65 : i32
    %268 = tpu.assume_multiple %267, 8 : i32
    %269 = arith.index_cast %268 : i32 to index
    %c0_66 = arith.constant 0 : index
    %270 = vector.load %arg10[%269, %c0_66] : memref<64x256xf32, #tpu.memory_space<vmem>>, vector<8x256xf32>
    %cst_67 = arith.constant dense<0.000000e+00> : vector<8x256xf32>
    %271 = tpu.matmul %215, %0, %cst_67 {dimension_numbers = #tpu.dot_dimension_numbers<[1], [0], [0], [1], [0, 0, 1, 1], [], []>} : vector<8x32xf32>, vector<32x256xf32>, vector<8x256xf32> -> vector<8x256xf32>
    %272 = arith.addf %270, %271 : vector<8x256xf32>
    %273 = arith.mulf %207, %261 : vector<8x32xf32>
    %cst_68 = arith.constant dense<0.000000e+00> : vector<8x256xf32>
    %274 = tpu.matmul %273, %1, %cst_68 {dimension_numbers = #tpu.dot_dimension_numbers<[1], [0], [0], [1], [0, 0, 1, 1], [], []>} : vector<8x32xf32>, vector<32x256xf32>, vector<8x256xf32> -> vector<8x256xf32>
    %275 = arith.addf %272, %274 : vector<8x256xf32>
    %276 = vector.extract_strided_slice %275 {offsets = [0, 0], sizes = [8, 128], strides = [1, 1]} : vector<8x256xf32> to vector<8x128xf32>
    %277 = arith.negf %276 : vector<8x128xf32>
    %278 = math.exp %277 : vector<8x128xf32>
    %cst_69 = arith.constant 1.000000e+00 : f32
    %279 = vector.broadcast %cst_69 : f32 to vector<8x128xf32>
    %280 = arith.addf %279, %278 : vector<8x128xf32>
    %281 = arith.divf %279, %280 : vector<8x128xf32>
    %282 = math.tanh %276 : vector<8x128xf32>
    %283 = vector.extract_strided_slice %281 {offsets = [0, 0], sizes = [8, 32], strides = [1, 1]} : vector<8x128xf32> to vector<8x32xf32>
    %284 = vector.extract_strided_slice %281 {offsets = [0, 32], sizes = [8, 32], strides = [1, 1]} : vector<8x128xf32> to vector<8x32xf32>
    %285 = vector.extract_strided_slice %281 {offsets = [0, 64], sizes = [8, 32], strides = [1, 1]} : vector<8x128xf32> to vector<8x32xf32>
    %286 = vector.extract_strided_slice %282 {offsets = [0, 96], sizes = [8, 32], strides = [1, 1]} : vector<8x128xf32> to vector<8x32xf32>
    %287 = vector.extract_strided_slice %275 {offsets = [0, 128], sizes = [8, 32], strides = [1, 1]} : vector<8x256xf32> to vector<8x32xf32>
    %cst_70 = arith.constant 0.000000e+00 : f32
    %288 = vector.broadcast %cst_70 : f32 to vector<8x32xf32>
    %289 = arith.cmpf ogt, %287, %288 : vector<8x32xf32>
    %290 = arith.extui %289 : vector<8x32xi1> to vector<8x32xi32>
    %291 = arith.sitofp %290 : vector<8x32xi32> to vector<8x32xf32>
    %292 = arith.mulf %284, %286 : vector<8x32xf32>
    %cst_71 = arith.constant 1.000000e+00 : f32
    %293 = vector.broadcast %cst_71 : f32 to vector<8x32xf32>
    %294 = arith.subf %293, %207 : vector<8x32xf32>
    %295 = arith.mulf %283, %213 : vector<8x32xf32>
    %296 = arith.mulf %294, %295 : vector<8x32xf32>
    %297 = arith.addf %292, %296 : vector<8x32xf32>
    %298 = math.tanh %297 : vector<8x32xf32>
    %299 = arith.mulf %285, %298 : vector<8x32xf32>
    %cst_72 = arith.constant dense<0.000000e+00> : vector<8x256xf32>
    %300 = tpu.matmul %299, %2, %cst_72 {dimension_numbers = #tpu.dot_dimension_numbers<[1], [0], [0], [1], [0, 0, 1, 1], [], []>} : vector<8x32xf32>, vector<32x256xf32>, vector<8x256xf32> -> vector<8x256xf32>
    %301 = arith.mulf %291, %261 : vector<8x32xf32>
    %cst_73 = arith.constant dense<0.000000e+00> : vector<8x256xf32>
    %302 = tpu.matmul %301, %3, %cst_73 {dimension_numbers = #tpu.dot_dimension_numbers<[1], [0], [0], [1], [0, 0, 1, 1], [], []>} : vector<8x32xf32>, vector<32x256xf32>, vector<8x256xf32> -> vector<8x256xf32>
    %303 = arith.addf %300, %302 : vector<8x256xf32>
    %304 = arith.addf %303, %6 : vector<8x256xf32>
    %305 = vector.extract_strided_slice %304 {offsets = [0, 0], sizes = [8, 128], strides = [1, 1]} : vector<8x256xf32> to vector<8x128xf32>
    %306 = arith.negf %305 : vector<8x128xf32>
    %307 = math.exp %306 : vector<8x128xf32>
    %cst_74 = arith.constant 1.000000e+00 : f32
    %308 = vector.broadcast %cst_74 : f32 to vector<8x128xf32>
    %309 = arith.addf %308, %307 : vector<8x128xf32>
    %310 = arith.divf %308, %309 : vector<8x128xf32>
    %311 = math.tanh %305 : vector<8x128xf32>
    %312 = vector.extract_strided_slice %310 {offsets = [0, 0], sizes = [8, 32], strides = [1, 1]} : vector<8x128xf32> to vector<8x32xf32>
    %313 = vector.extract_strided_slice %310 {offsets = [0, 32], sizes = [8, 32], strides = [1, 1]} : vector<8x128xf32> to vector<8x32xf32>
    %314 = vector.extract_strided_slice %310 {offsets = [0, 64], sizes = [8, 32], strides = [1, 1]} : vector<8x128xf32> to vector<8x32xf32>
    %315 = vector.extract_strided_slice %311 {offsets = [0, 96], sizes = [8, 32], strides = [1, 1]} : vector<8x128xf32> to vector<8x32xf32>
    %316 = vector.extract_strided_slice %304 {offsets = [0, 128], sizes = [8, 32], strides = [1, 1]} : vector<8x256xf32> to vector<8x32xf32>
    %cst_75 = arith.constant 0.000000e+00 : f32
    %317 = vector.broadcast %cst_75 : f32 to vector<8x32xf32>
    %318 = arith.cmpf ogt, %316, %317 : vector<8x32xf32>
    %319 = arith.extui %318 : vector<8x32xi1> to vector<8x32xi32>
    %320 = arith.sitofp %319 : vector<8x32xi32> to vector<8x32xf32>
    %321 = arith.mulf %313, %315 : vector<8x32xf32>
    %cst_76 = arith.constant 1.000000e+00 : f32
    %322 = vector.broadcast %cst_76 : f32 to vector<8x32xf32>
    %323 = arith.subf %322, %236 : vector<8x32xf32>
    %324 = arith.mulf %236, %321 : vector<8x32xf32>
    %cst_77 = arith.constant 1.000000e+00 : f32
    %325 = vector.broadcast %cst_77 : f32 to vector<8x32xf32>
    %326 = arith.subf %325, %291 : vector<8x32xf32>
    %327 = arith.mulf %323, %326 : vector<8x32xf32>
    %328 = arith.mulf %327, %250 : vector<8x32xf32>
    %329 = arith.addf %324, %328 : vector<8x32xf32>
    %330 = arith.mulf %323, %291 : vector<8x32xf32>
    %331 = arith.mulf %312, %250 : vector<8x32xf32>
    %332 = arith.addf %331, %321 : vector<8x32xf32>
    %333 = arith.mulf %330, %332 : vector<8x32xf32>
    %334 = arith.addf %329, %333 : vector<8x32xf32>
    %335 = math.tanh %334 : vector<8x32xf32>
    %336 = arith.mulf %314, %335 : vector<8x32xf32>
    %337 = arith.mulf %236, %336 : vector<8x32xf32>
    %cst_78 = arith.constant 1.000000e+00 : f32
    %338 = vector.broadcast %cst_78 : f32 to vector<8x32xf32>
    %339 = arith.subf %338, %291 : vector<8x32xf32>
    %340 = arith.mulf %323, %339 : vector<8x32xf32>
    %341 = arith.mulf %340, %261 : vector<8x32xf32>
    %342 = arith.addf %337, %341 : vector<8x32xf32>
    %343 = arith.mulf %323, %291 : vector<8x32xf32>
    %344 = arith.mulf %343, %336 : vector<8x32xf32>
    %345 = arith.addf %342, %344 : vector<8x32xf32>
    %346 = tpu.concatenate %299, %345, %291, %320 in 1 : vector<8x32xf32>, vector<8x32xf32>, vector<8x32xf32>, vector<8x32xf32> -> vector<8x128xf32>
    %347 = arith.index_cast %c3_i32 : i32 to index
    %c0_79 = arith.constant 0 : index
    %c0_80 = arith.constant 0 : index
    %348 = vector.load %arg8[%347, %c0_79, %c0_80] : memref<8x8x128xf32, #tpu.memory_space<vmem>>, vector<1x8x128xf32>
    %349 = vector.shape_cast %348 : vector<1x8x128xf32> to vector<8x128xf32>
    %350 = vector.shape_cast %346 : vector<8x128xf32> to vector<1x8x128xf32>
    tpu.vector_store %arg8[%347, %c0_79, %c0_80], %350 {strides = array<i32>} : memref<8x8x128xf32, #tpu.memory_space<vmem>>, vector<1x8x128xf32>,
    %c4_i32 = arith.constant 4 : i32
    %c8_i32_81 = arith.constant 8 : i32
    %351 = arith.muli %c4_i32, %c8_i32_81 : i32
    %352 = tpu.assume_multiple %351, 8 : i32
    %353 = arith.index_cast %352 : i32 to index
    %c0_82 = arith.constant 0 : index
    %354 = vector.load %arg10[%353, %c0_82] : memref<64x256xf32, #tpu.memory_space<vmem>>, vector<8x256xf32>
    %cst_83 = arith.constant dense<0.000000e+00> : vector<8x256xf32>
    %355 = tpu.matmul %299, %0, %cst_83 {dimension_numbers = #tpu.dot_dimension_numbers<[1], [0], [0], [1], [0, 0, 1, 1], [], []>} : vector<8x32xf32>, vector<32x256xf32>, vector<8x256xf32> -> vector<8x256xf32>
    %356 = arith.addf %354, %355 : vector<8x256xf32>
    %357 = arith.mulf %291, %345 : vector<8x32xf32>
    %cst_84 = arith.constant dense<0.000000e+00> : vector<8x256xf32>
    %358 = tpu.matmul %357, %1, %cst_84 {dimension_numbers = #tpu.dot_dimension_numbers<[1], [0], [0], [1], [0, 0, 1, 1], [], []>} : vector<8x32xf32>, vector<32x256xf32>, vector<8x256xf32> -> vector<8x256xf32>
    %359 = arith.addf %356, %358 : vector<8x256xf32>
    %360 = vector.extract_strided_slice %359 {offsets = [0, 0], sizes = [8, 128], strides = [1, 1]} : vector<8x256xf32> to vector<8x128xf32>
    %361 = arith.negf %360 : vector<8x128xf32>
    %362 = math.exp %361 : vector<8x128xf32>
    %cst_85 = arith.constant 1.000000e+00 : f32
    %363 = vector.broadcast %cst_85 : f32 to vector<8x128xf32>
    %364 = arith.addf %363, %362 : vector<8x128xf32>
    %365 = arith.divf %363, %364 : vector<8x128xf32>
    %366 = math.tanh %360 : vector<8x128xf32>
    %367 = vector.extract_strided_slice %365 {offsets = [0, 0], sizes = [8, 32], strides = [1, 1]} : vector<8x128xf32> to vector<8x32xf32>
    %368 = vector.extract_strided_slice %365 {offsets = [0, 32], sizes = [8, 32], strides = [1, 1]} : vector<8x128xf32> to vector<8x32xf32>
    %369 = vector.extract_strided_slice %365 {offsets = [0, 64], sizes = [8, 32], strides = [1, 1]} : vector<8x128xf32> to vector<8x32xf32>
    %370 = vector.extract_strided_slice %366 {offsets = [0, 96], sizes = [8, 32], strides = [1, 1]} : vector<8x128xf32> to vector<8x32xf32>
    %371 = vector.extract_strided_slice %359 {offsets = [0, 128], sizes = [8, 32], strides = [1, 1]} : vector<8x256xf32> to vector<8x32xf32>
    %cst_86 = arith.constant 0.000000e+00 : f32
    %372 = vector.broadcast %cst_86 : f32 to vector<8x32xf32>
    %373 = arith.cmpf ogt, %371, %372 : vector<8x32xf32>
    %374 = arith.extui %373 : vector<8x32xi1> to vector<8x32xi32>
    %375 = arith.sitofp %374 : vector<8x32xi32> to vector<8x32xf32>
    %376 = arith.mulf %368, %370 : vector<8x32xf32>
    %cst_87 = arith.constant 1.000000e+00 : f32
    %377 = vector.broadcast %cst_87 : f32 to vector<8x32xf32>
    %378 = arith.subf %377, %291 : vector<8x32xf32>
    %379 = arith.mulf %367, %297 : vector<8x32xf32>
    %380 = arith.mulf %378, %379 : vector<8x32xf32>
    %381 = arith.addf %376, %380 : vector<8x32xf32>
    %382 = math.tanh %381 : vector<8x32xf32>
    %383 = arith.mulf %369, %382 : vector<8x32xf32>
    %cst_88 = arith.constant dense<0.000000e+00> : vector<8x256xf32>
    %384 = tpu.matmul %383, %2, %cst_88 {dimension_numbers = #tpu.dot_dimension_numbers<[1], [0], [0], [1], [0, 0, 1, 1], [], []>} : vector<8x32xf32>, vector<32x256xf32>, vector<8x256xf32> -> vector<8x256xf32>
    %385 = arith.mulf %375, %345 : vector<8x32xf32>
    %cst_89 = arith.constant dense<0.000000e+00> : vector<8x256xf32>
    %386 = tpu.matmul %385, %3, %cst_89 {dimension_numbers = #tpu.dot_dimension_numbers<[1], [0], [0], [1], [0, 0, 1, 1], [], []>} : vector<8x32xf32>, vector<32x256xf32>, vector<8x256xf32> -> vector<8x256xf32>
    %387 = arith.addf %384, %386 : vector<8x256xf32>
    %388 = arith.addf %387, %6 : vector<8x256xf32>
    %389 = vector.extract_strided_slice %388 {offsets = [0, 0], sizes = [8, 128], strides = [1, 1]} : vector<8x256xf32> to vector<8x128xf32>
    %390 = arith.negf %389 : vector<8x128xf32>
    %391 = math.exp %390 : vector<8x128xf32>
    %cst_90 = arith.constant 1.000000e+00 : f32
    %392 = vector.broadcast %cst_90 : f32 to vector<8x128xf32>
    %393 = arith.addf %392, %391 : vector<8x128xf32>
    %394 = arith.divf %392, %393 : vector<8x128xf32>
    %395 = math.tanh %389 : vector<8x128xf32>
    %396 = vector.extract_strided_slice %394 {offsets = [0, 0], sizes = [8, 32], strides = [1, 1]} : vector<8x128xf32> to vector<8x32xf32>
    %397 = vector.extract_strided_slice %394 {offsets = [0, 32], sizes = [8, 32], strides = [1, 1]} : vector<8x128xf32> to vector<8x32xf32>
    %398 = vector.extract_strided_slice %394 {offsets = [0, 64], sizes = [8, 32], strides = [1, 1]} : vector<8x128xf32> to vector<8x32xf32>
    %399 = vector.extract_strided_slice %395 {offsets = [0, 96], sizes = [8, 32], strides = [1, 1]} : vector<8x128xf32> to vector<8x32xf32>
    %400 = vector.extract_strided_slice %388 {offsets = [0, 128], sizes = [8, 32], strides = [1, 1]} : vector<8x256xf32> to vector<8x32xf32>
    %cst_91 = arith.constant 0.000000e+00 : f32
    %401 = vector.broadcast %cst_91 : f32 to vector<8x32xf32>
    %402 = arith.cmpf ogt, %400, %401 : vector<8x32xf32>
    %403 = arith.extui %402 : vector<8x32xi1> to vector<8x32xi32>
    %404 = arith.sitofp %403 : vector<8x32xi32> to vector<8x32xf32>
    %405 = arith.mulf %397, %399 : vector<8x32xf32>
    %cst_92 = arith.constant 1.000000e+00 : f32
    %406 = vector.broadcast %cst_92 : f32 to vector<8x32xf32>
    %407 = arith.subf %406, %320 : vector<8x32xf32>
    %408 = arith.mulf %320, %405 : vector<8x32xf32>
    %cst_93 = arith.constant 1.000000e+00 : f32
    %409 = vector.broadcast %cst_93 : f32 to vector<8x32xf32>
    %410 = arith.subf %409, %375 : vector<8x32xf32>
    %411 = arith.mulf %407, %410 : vector<8x32xf32>
    %412 = arith.mulf %411, %334 : vector<8x32xf32>
    %413 = arith.addf %408, %412 : vector<8x32xf32>
    %414 = arith.mulf %407, %375 : vector<8x32xf32>
    %415 = arith.mulf %396, %334 : vector<8x32xf32>
    %416 = arith.addf %415, %405 : vector<8x32xf32>
    %417 = arith.mulf %414, %416 : vector<8x32xf32>
    %418 = arith.addf %413, %417 : vector<8x32xf32>
    %419 = math.tanh %418 : vector<8x32xf32>
    %420 = arith.mulf %398, %419 : vector<8x32xf32>
    %421 = arith.mulf %320, %420 : vector<8x32xf32>
    %cst_94 = arith.constant 1.000000e+00 : f32
    %422 = vector.broadcast %cst_94 : f32 to vector<8x32xf32>
    %423 = arith.subf %422, %375 : vector<8x32xf32>
    %424 = arith.mulf %407, %423 : vector<8x32xf32>
    %425 = arith.mulf %424, %345 : vector<8x32xf32>
    %426 = arith.addf %421, %425 : vector<8x32xf32>
    %427 = arith.mulf %407, %375 : vector<8x32xf32>
    %428 = arith.mulf %427, %420 : vector<8x32xf32>
    %429 = arith.addf %426, %428 : vector<8x32xf32>
    %430 = tpu.concatenate %383, %429, %375, %404 in 1 : vector<8x32xf32>, vector<8x32xf32>, vector<8x32xf32>, vector<8x32xf32> -> vector<8x128xf32>
    %431 = arith.index_cast %c4_i32 : i32 to index
    %c0_95 = arith.constant 0 : index
    %c0_96 = arith.constant 0 : index
    %432 = vector.load %arg8[%431, %c0_95, %c0_96] : memref<8x8x128xf32, #tpu.memory_space<vmem>>, vector<1x8x128xf32>
    %433 = vector.shape_cast %432 : vector<1x8x128xf32> to vector<8x128xf32>
    %434 = vector.shape_cast %430 : vector<8x128xf32> to vector<1x8x128xf32>
    tpu.vector_store %arg8[%431, %c0_95, %c0_96], %434 {strides = array<i32>} : memref<8x8x128xf32, #tpu.memory_space<vmem>>, vector<1x8x128xf32>,
    %c5_i32 = arith.constant 5 : i32
    %c8_i32_97 = arith.constant 8 : i32
    %435 = arith.muli %c5_i32, %c8_i32_97 : i32
    %436 = tpu.assume_multiple %435, 8 : i32
    %437 = arith.index_cast %436 : i32 to index
    %c0_98 = arith.constant 0 : index
    %438 = vector.load %arg10[%437, %c0_98] : memref<64x256xf32, #tpu.memory_space<vmem>>, vector<8x256xf32>
    %cst_99 = arith.constant dense<0.000000e+00> : vector<8x256xf32>
    %439 = tpu.matmul %383, %0, %cst_99 {dimension_numbers = #tpu.dot_dimension_numbers<[1], [0], [0], [1], [0, 0, 1, 1], [], []>} : vector<8x32xf32>, vector<32x256xf32>, vector<8x256xf32> -> vector<8x256xf32>
    %440 = arith.addf %438, %439 : vector<8x256xf32>
    %441 = arith.mulf %375, %429 : vector<8x32xf32>
    %cst_100 = arith.constant dense<0.000000e+00> : vector<8x256xf32>
    %442 = tpu.matmul %441, %1, %cst_100 {dimension_numbers = #tpu.dot_dimension_numbers<[1], [0], [0], [1], [0, 0, 1, 1], [], []>} : vector<8x32xf32>, vector<32x256xf32>, vector<8x256xf32> -> vector<8x256xf32>
    %443 = arith.addf %440, %442 : vector<8x256xf32>
    %444 = vector.extract_strided_slice %443 {offsets = [0, 0], sizes = [8, 128], strides = [1, 1]} : vector<8x256xf32> to vector<8x128xf32>
    %445 = arith.negf %444 : vector<8x128xf32>
    %446 = math.exp %445 : vector<8x128xf32>
    %cst_101 = arith.constant 1.000000e+00 : f32
    %447 = vector.broadcast %cst_101 : f32 to vector<8x128xf32>
    %448 = arith.addf %447, %446 : vector<8x128xf32>
    %449 = arith.divf %447, %448 : vector<8x128xf32>
    %450 = math.tanh %444 : vector<8x128xf32>
    %451 = vector.extract_strided_slice %449 {offsets = [0, 0], sizes = [8, 32], strides = [1, 1]} : vector<8x128xf32> to vector<8x32xf32>
    %452 = vector.extract_strided_slice %449 {offsets = [0, 32], sizes = [8, 32], strides = [1, 1]} : vector<8x128xf32> to vector<8x32xf32>
    %453 = vector.extract_strided_slice %449 {offsets = [0, 64], sizes = [8, 32], strides = [1, 1]} : vector<8x128xf32> to vector<8x32xf32>
    %454 = vector.extract_strided_slice %450 {offsets = [0, 96], sizes = [8, 32], strides = [1, 1]} : vector<8x128xf32> to vector<8x32xf32>
    %455 = vector.extract_strided_slice %443 {offsets = [0, 128], sizes = [8, 32], strides = [1, 1]} : vector<8x256xf32> to vector<8x32xf32>
    %cst_102 = arith.constant 0.000000e+00 : f32
    %456 = vector.broadcast %cst_102 : f32 to vector<8x32xf32>
    %457 = arith.cmpf ogt, %455, %456 : vector<8x32xf32>
    %458 = arith.extui %457 : vector<8x32xi1> to vector<8x32xi32>
    %459 = arith.sitofp %458 : vector<8x32xi32> to vector<8x32xf32>
    %460 = arith.mulf %452, %454 : vector<8x32xf32>
    %cst_103 = arith.constant 1.000000e+00 : f32
    %461 = vector.broadcast %cst_103 : f32 to vector<8x32xf32>
    %462 = arith.subf %461, %375 : vector<8x32xf32>
    %463 = arith.mulf %451, %381 : vector<8x32xf32>
    %464 = arith.mulf %462, %463 : vector<8x32xf32>
    %465 = arith.addf %460, %464 : vector<8x32xf32>
    %466 = math.tanh %465 : vector<8x32xf32>
    %467 = arith.mulf %453, %466 : vector<8x32xf32>
    %cst_104 = arith.constant dense<0.000000e+00> : vector<8x256xf32>
    %468 = tpu.matmul %467, %2, %cst_104 {dimension_numbers = #tpu.dot_dimension_numbers<[1], [0], [0], [1], [0, 0, 1, 1], [], []>} : vector<8x32xf32>, vector<32x256xf32>, vector<8x256xf32> -> vector<8x256xf32>
    %469 = arith.mulf %459, %429 : vector<8x32xf32>
    %cst_105 = arith.constant dense<0.000000e+00> : vector<8x256xf32>
    %470 = tpu.matmul %469, %3, %cst_105 {dimension_numbers = #tpu.dot_dimension_numbers<[1], [0], [0], [1], [0, 0, 1, 1], [], []>} : vector<8x32xf32>, vector<32x256xf32>, vector<8x256xf32> -> vector<8x256xf32>
    %471 = arith.addf %468, %470 : vector<8x256xf32>
    %472 = arith.addf %471, %6 : vector<8x256xf32>
    %473 = vector.extract_strided_slice %472 {offsets = [0, 0], sizes = [8, 128], strides = [1, 1]} : vector<8x256xf32> to vector<8x128xf32>
    %474 = arith.negf %473 : vector<8x128xf32>
    %475 = math.exp %474 : vector<8x128xf32>
    %cst_106 = arith.constant 1.000000e+00 : f32
    %476 = vector.broadcast %cst_106 : f32 to vector<8x128xf32>
    %477 = arith.addf %476, %475 : vector<8x128xf32>
    %478 = arith.divf %476, %477 : vector<8x128xf32>
    %479 = math.tanh %473 : vector<8x128xf32>
    %480 = vector.extract_strided_slice %478 {offsets = [0, 0], sizes = [8, 32], strides = [1, 1]} : vector<8x128xf32> to vector<8x32xf32>
    %481 = vector.extract_strided_slice %478 {offsets = [0, 32], sizes = [8, 32], strides = [1, 1]} : vector<8x128xf32> to vector<8x32xf32>
    %482 = vector.extract_strided_slice %478 {offsets = [0, 64], sizes = [8, 32], strides = [1, 1]} : vector<8x128xf32> to vector<8x32xf32>
    %483 = vector.extract_strided_slice %479 {offsets = [0, 96], sizes = [8, 32], strides = [1, 1]} : vector<8x128xf32> to vector<8x32xf32>
    %484 = vector.extract_strided_slice %472 {offsets = [0, 128], sizes = [8, 32], strides = [1, 1]} : vector<8x256xf32> to vector<8x32xf32>
    %cst_107 = arith.constant 0.000000e+00 : f32
    %485 = vector.broadcast %cst_107 : f32 to vector<8x32xf32>
    %486 = arith.cmpf ogt, %484, %485 : vector<8x32xf32>
    %487 = arith.extui %486 : vector<8x32xi1> to vector<8x32xi32>
    %488 = arith.sitofp %487 : vector<8x32xi32> to vector<8x32xf32>
    %489 = arith.mulf %481, %483 : vector<8x32xf32>
    %cst_108 = arith.constant 1.000000e+00 : f32
    %490 = vector.broadcast %cst_108 : f32 to vector<8x32xf32>
    %491 = arith.subf %490, %404 : vector<8x32xf32>
    %492 = arith.mulf %404, %489 : vector<8x32xf32>
    %cst_109 = arith.constant 1.000000e+00 : f32
    %493 = vector.broadcast %cst_109 : f32 to vector<8x32xf32>
    %494 = arith.subf %493, %459 : vector<8x32xf32>
    %495 = arith.mulf %491, %494 : vector<8x32xf32>
    %496 = arith.mulf %495, %418 : vector<8x32xf32>
    %497 = arith.addf %492, %496 : vector<8x32xf32>
    %498 = arith.mulf %491, %459 : vector<8x32xf32>
    %499 = arith.mulf %480, %418 : vector<8x32xf32>
    %500 = arith.addf %499, %489 : vector<8x32xf32>
    %501 = arith.mulf %498, %500 : vector<8x32xf32>
    %502 = arith.addf %497, %501 : vector<8x32xf32>
    %503 = math.tanh %502 : vector<8x32xf32>
    %504 = arith.mulf %482, %503 : vector<8x32xf32>
    %505 = arith.mulf %404, %504 : vector<8x32xf32>
    %cst_110 = arith.constant 1.000000e+00 : f32
    %506 = vector.broadcast %cst_110 : f32 to vector<8x32xf32>
    %507 = arith.subf %506, %459 : vector<8x32xf32>
    %508 = arith.mulf %491, %507 : vector<8x32xf32>
    %509 = arith.mulf %508, %429 : vector<8x32xf32>
    %510 = arith.addf %505, %509 : vector<8x32xf32>
    %511 = arith.mulf %491, %459 : vector<8x32xf32>
    %512 = arith.mulf %511, %504 : vector<8x32xf32>
    %513 = arith.addf %510, %512 : vector<8x32xf32>
    %514 = tpu.concatenate %467, %513, %459, %488 in 1 : vector<8x32xf32>, vector<8x32xf32>, vector<8x32xf32>, vector<8x32xf32> -> vector<8x128xf32>
    %515 = arith.index_cast %c5_i32 : i32 to index
    %c0_111 = arith.constant 0 : index
    %c0_112 = arith.constant 0 : index
    %516 = vector.load %arg8[%515, %c0_111, %c0_112] : memref<8x8x128xf32, #tpu.memory_space<vmem>>, vector<1x8x128xf32>
    %517 = vector.shape_cast %516 : vector<1x8x128xf32> to vector<8x128xf32>
    %518 = vector.shape_cast %514 : vector<8x128xf32> to vector<1x8x128xf32>
    tpu.vector_store %arg8[%515, %c0_111, %c0_112], %518 {strides = array<i32>} : memref<8x8x128xf32, #tpu.memory_space<vmem>>, vector<1x8x128xf32>,
    %c6_i32 = arith.constant 6 : i32
    %c8_i32_113 = arith.constant 8 : i32
    %519 = arith.muli %c6_i32, %c8_i32_113 : i32
    %520 = tpu.assume_multiple %519, 8 : i32
    %521 = arith.index_cast %520 : i32 to index
    %c0_114 = arith.constant 0 : index
    %522 = vector.load %arg10[%521, %c0_114] : memref<64x256xf32, #tpu.memory_space<vmem>>, vector<8x256xf32>
    %cst_115 = arith.constant dense<0.000000e+00> : vector<8x256xf32>
    %523 = tpu.matmul %467, %0, %cst_115 {dimension_numbers = #tpu.dot_dimension_numbers<[1], [0], [0], [1], [0, 0, 1, 1], [], []>} : vector<8x32xf32>, vector<32x256xf32>, vector<8x256xf32> -> vector<8x256xf32>
    %524 = arith.addf %522, %523 : vector<8x256xf32>
    %525 = arith.mulf %459, %513 : vector<8x32xf32>
    %cst_116 = arith.constant dense<0.000000e+00> : vector<8x256xf32>
    %526 = tpu.matmul %525, %1, %cst_116 {dimension_numbers = #tpu.dot_dimension_numbers<[1], [0], [0], [1], [0, 0, 1, 1], [], []>} : vector<8x32xf32>, vector<32x256xf32>, vector<8x256xf32> -> vector<8x256xf32>
    %527 = arith.addf %524, %526 : vector<8x256xf32>
    %528 = vector.extract_strided_slice %527 {offsets = [0, 0], sizes = [8, 128], strides = [1, 1]} : vector<8x256xf32> to vector<8x128xf32>
    %529 = arith.negf %528 : vector<8x128xf32>
    %530 = math.exp %529 : vector<8x128xf32>
    %cst_117 = arith.constant 1.000000e+00 : f32
    %531 = vector.broadcast %cst_117 : f32 to vector<8x128xf32>
    %532 = arith.addf %531, %530 : vector<8x128xf32>
    %533 = arith.divf %531, %532 : vector<8x128xf32>
    %534 = math.tanh %528 : vector<8x128xf32>
    %535 = vector.extract_strided_slice %533 {offsets = [0, 0], sizes = [8, 32], strides = [1, 1]} : vector<8x128xf32> to vector<8x32xf32>
    %536 = vector.extract_strided_slice %533 {offsets = [0, 32], sizes = [8, 32], strides = [1, 1]} : vector<8x128xf32> to vector<8x32xf32>
    %537 = vector.extract_strided_slice %533 {offsets = [0, 64], sizes = [8, 32], strides = [1, 1]} : vector<8x128xf32> to vector<8x32xf32>
    %538 = vector.extract_strided_slice %534 {offsets = [0, 96], sizes = [8, 32], strides = [1, 1]} : vector<8x128xf32> to vector<8x32xf32>
    %539 = vector.extract_strided_slice %527 {offsets = [0, 128], sizes = [8, 32], strides = [1, 1]} : vector<8x256xf32> to vector<8x32xf32>
    %cst_118 = arith.constant 0.000000e+00 : f32
    %540 = vector.broadcast %cst_118 : f32 to vector<8x32xf32>
    %541 = arith.cmpf ogt, %539, %540 : vector<8x32xf32>
    %542 = arith.extui %541 : vector<8x32xi1> to vector<8x32xi32>
    %543 = arith.sitofp %542 : vector<8x32xi32> to vector<8x32xf32>
    %544 = arith.mulf %536, %538 : vector<8x32xf32>
    %cst_119 = arith.constant 1.000000e+00 : f32
    %545 = vector.broadcast %cst_119 : f32 to vector<8x32xf32>
    %546 = arith.subf %545, %459 : vector<8x32xf32>
    %547 = arith.mulf %535, %465 : vector<8x32xf32>
    %548 = arith.mulf %546, %547 : vector<8x32xf32>
    %549 = arith.addf %544, %548 : vector<8x32xf32>
    %550 = math.tanh %549 : vector<8x32xf32>
    %551 = arith.mulf %537, %550 : vector<8x32xf32>
    %cst_120 = arith.constant dense<0.000000e+00> : vector<8x256xf32>
    %552 = tpu.matmul %551, %2, %cst_120 {dimension_numbers = #tpu.dot_dimension_numbers<[1], [0], [0], [1], [0, 0, 1, 1], [], []>} : vector<8x32xf32>, vector<32x256xf32>, vector<8x256xf32> -> vector<8x256xf32>
    %553 = arith.mulf %543, %513 : vector<8x32xf32>
    %cst_121 = arith.constant dense<0.000000e+00> : vector<8x256xf32>
    %554 = tpu.matmul %553, %3, %cst_121 {dimension_numbers = #tpu.dot_dimension_numbers<[1], [0], [0], [1], [0, 0, 1, 1], [], []>} : vector<8x32xf32>, vector<32x256xf32>, vector<8x256xf32> -> vector<8x256xf32>
    %555 = arith.addf %552, %554 : vector<8x256xf32>
    %556 = arith.addf %555, %6 : vector<8x256xf32>
    %557 = vector.extract_strided_slice %556 {offsets = [0, 0], sizes = [8, 128], strides = [1, 1]} : vector<8x256xf32> to vector<8x128xf32>
    %558 = arith.negf %557 : vector<8x128xf32>
    %559 = math.exp %558 : vector<8x128xf32>
    %cst_122 = arith.constant 1.000000e+00 : f32
    %560 = vector.broadcast %cst_122 : f32 to vector<8x128xf32>
    %561 = arith.addf %560, %559 : vector<8x128xf32>
    %562 = arith.divf %560, %561 : vector<8x128xf32>
    %563 = math.tanh %557 : vector<8x128xf32>
    %564 = vector.extract_strided_slice %562 {offsets = [0, 0], sizes = [8, 32], strides = [1, 1]} : vector<8x128xf32> to vector<8x32xf32>
    %565 = vector.extract_strided_slice %562 {offsets = [0, 32], sizes = [8, 32], strides = [1, 1]} : vector<8x128xf32> to vector<8x32xf32>
    %566 = vector.extract_strided_slice %562 {offsets = [0, 64], sizes = [8, 32], strides = [1, 1]} : vector<8x128xf32> to vector<8x32xf32>
    %567 = vector.extract_strided_slice %563 {offsets = [0, 96], sizes = [8, 32], strides = [1, 1]} : vector<8x128xf32> to vector<8x32xf32>
    %568 = vector.extract_strided_slice %556 {offsets = [0, 128], sizes = [8, 32], strides = [1, 1]} : vector<8x256xf32> to vector<8x32xf32>
    %cst_123 = arith.constant 0.000000e+00 : f32
    %569 = vector.broadcast %cst_123 : f32 to vector<8x32xf32>
    %570 = arith.cmpf ogt, %568, %569 : vector<8x32xf32>
    %571 = arith.extui %570 : vector<8x32xi1> to vector<8x32xi32>
    %572 = arith.sitofp %571 : vector<8x32xi32> to vector<8x32xf32>
    %573 = arith.mulf %565, %567 : vector<8x32xf32>
    %cst_124 = arith.constant 1.000000e+00 : f32
    %574 = vector.broadcast %cst_124 : f32 to vector<8x32xf32>
    %575 = arith.subf %574, %488 : vector<8x32xf32>
    %576 = arith.mulf %488, %573 : vector<8x32xf32>
    %cst_125 = arith.constant 1.000000e+00 : f32
    %577 = vector.broadcast %cst_125 : f32 to vector<8x32xf32>
    %578 = arith.subf %577, %543 : vector<8x32xf32>
    %579 = arith.mulf %575, %578 : vector<8x32xf32>
    %580 = arith.mulf %579, %502 : vector<8x32xf32>
    %581 = arith.addf %576, %580 : vector<8x32xf32>
    %582 = arith.mulf %575, %543 : vector<8x32xf32>
    %583 = arith.mulf %564, %502 : vector<8x32xf32>
    %584 = arith.addf %583, %573 : vector<8x32xf32>
    %585 = arith.mulf %582, %584 : vector<8x32xf32>
    %586 = arith.addf %581, %585 : vector<8x32xf32>
    %587 = math.tanh %586 : vector<8x32xf32>
    %588 = arith.mulf %566, %587 : vector<8x32xf32>
    %589 = arith.mulf %488, %588 : vector<8x32xf32>
    %cst_126 = arith.constant 1.000000e+00 : f32
    %590 = vector.broadcast %cst_126 : f32 to vector<8x32xf32>
    %591 = arith.subf %590, %543 : vector<8x32xf32>
    %592 = arith.mulf %575, %591 : vector<8x32xf32>
    %593 = arith.mulf %592, %513 : vector<8x32xf32>
    %594 = arith.addf %589, %593 : vector<8x32xf32>
    %595 = arith.mulf %575, %543 : vector<8x32xf32>
    %596 = arith.mulf %595, %588 : vector<8x32xf32>
    %597 = arith.addf %594, %596 : vector<8x32xf32>
    %598 = tpu.concatenate %551, %597, %543, %572 in 1 : vector<8x32xf32>, vector<8x32xf32>, vector<8x32xf32>, vector<8x32xf32> -> vector<8x128xf32>
    %599 = arith.index_cast %c6_i32 : i32 to index
    %c0_127 = arith.constant 0 : index
    %c0_128 = arith.constant 0 : index
    %600 = vector.load %arg8[%599, %c0_127, %c0_128] : memref<8x8x128xf32, #tpu.memory_space<vmem>>, vector<1x8x128xf32>
    %601 = vector.shape_cast %600 : vector<1x8x128xf32> to vector<8x128xf32>
    %602 = vector.shape_cast %598 : vector<8x128xf32> to vector<1x8x128xf32>
    tpu.vector_store %arg8[%599, %c0_127, %c0_128], %602 {strides = array<i32>} : memref<8x8x128xf32, #tpu.memory_space<vmem>>, vector<1x8x128xf32>,
    %c7_i32 = arith.constant 7 : i32
    %c8_i32_129 = arith.constant 8 : i32
    %603 = arith.muli %c7_i32, %c8_i32_129 : i32
    %604 = tpu.assume_multiple %603, 8 : i32
    %605 = arith.index_cast %604 : i32 to index
    %c0_130 = arith.constant 0 : index
    %606 = vector.load %arg10[%605, %c0_130] : memref<64x256xf32, #tpu.memory_space<vmem>>, vector<8x256xf32>
    %cst_131 = arith.constant dense<0.000000e+00> : vector<8x256xf32>
    %607 = tpu.matmul %551, %0, %cst_131 {dimension_numbers = #tpu.dot_dimension_numbers<[1], [0], [0], [1], [0, 0, 1, 1], [], []>} : vector<8x32xf32>, vector<32x256xf32>, vector<8x256xf32> -> vector<8x256xf32>
    %608 = arith.addf %606, %607 : vector<8x256xf32>
    %609 = arith.mulf %543, %597 : vector<8x32xf32>
    %cst_132 = arith.constant dense<0.000000e+00> : vector<8x256xf32>
    %610 = tpu.matmul %609, %1, %cst_132 {dimension_numbers = #tpu.dot_dimension_numbers<[1], [0], [0], [1], [0, 0, 1, 1], [], []>} : vector<8x32xf32>, vector<32x256xf32>, vector<8x256xf32> -> vector<8x256xf32>
    %611 = arith.addf %608, %610 : vector<8x256xf32>
    %612 = vector.extract_strided_slice %611 {offsets = [0, 0], sizes = [8, 128], strides = [1, 1]} : vector<8x256xf32> to vector<8x128xf32>
    %613 = arith.negf %612 : vector<8x128xf32>
    %614 = math.exp %613 : vector<8x128xf32>
    %cst_133 = arith.constant 1.000000e+00 : f32
    %615 = vector.broadcast %cst_133 : f32 to vector<8x128xf32>
    %616 = arith.addf %615, %614 : vector<8x128xf32>
    %617 = arith.divf %615, %616 : vector<8x128xf32>
    %618 = math.tanh %612 : vector<8x128xf32>
    %619 = vector.extract_strided_slice %617 {offsets = [0, 0], sizes = [8, 32], strides = [1, 1]} : vector<8x128xf32> to vector<8x32xf32>
    %620 = vector.extract_strided_slice %617 {offsets = [0, 32], sizes = [8, 32], strides = [1, 1]} : vector<8x128xf32> to vector<8x32xf32>
    %621 = vector.extract_strided_slice %617 {offsets = [0, 64], sizes = [8, 32], strides = [1, 1]} : vector<8x128xf32> to vector<8x32xf32>
    %622 = vector.extract_strided_slice %618 {offsets = [0, 96], sizes = [8, 32], strides = [1, 1]} : vector<8x128xf32> to vector<8x32xf32>
    %623 = vector.extract_strided_slice %611 {offsets = [0, 128], sizes = [8, 32], strides = [1, 1]} : vector<8x256xf32> to vector<8x32xf32>
    %cst_134 = arith.constant 0.000000e+00 : f32
    %624 = vector.broadcast %cst_134 : f32 to vector<8x32xf32>
    %625 = arith.cmpf ogt, %623, %624 : vector<8x32xf32>
    %626 = arith.extui %625 : vector<8x32xi1> to vector<8x32xi32>
    %627 = arith.sitofp %626 : vector<8x32xi32> to vector<8x32xf32>
    %628 = arith.mulf %620, %622 : vector<8x32xf32>
    %cst_135 = arith.constant 1.000000e+00 : f32
    %629 = vector.broadcast %cst_135 : f32 to vector<8x32xf32>
    %630 = arith.subf %629, %543 : vector<8x32xf32>
    %631 = arith.mulf %619, %549 : vector<8x32xf32>
    %632 = arith.mulf %630, %631 : vector<8x32xf32>
    %633 = arith.addf %628, %632 : vector<8x32xf32>
    %634 = math.tanh %633 : vector<8x32xf32>
    %635 = arith.mulf %621, %634 : vector<8x32xf32>
    %cst_136 = arith.constant dense<0.000000e+00> : vector<8x256xf32>
    %636 = tpu.matmul %635, %2, %cst_136 {dimension_numbers = #tpu.dot_dimension_numbers<[1], [0], [0], [1], [0, 0, 1, 1], [], []>} : vector<8x32xf32>, vector<32x256xf32>, vector<8x256xf32> -> vector<8x256xf32>
    %637 = arith.mulf %627, %597 : vector<8x32xf32>
    %cst_137 = arith.constant dense<0.000000e+00> : vector<8x256xf32>
    %638 = tpu.matmul %637, %3, %cst_137 {dimension_numbers = #tpu.dot_dimension_numbers<[1], [0], [0], [1], [0, 0, 1, 1], [], []>} : vector<8x32xf32>, vector<32x256xf32>, vector<8x256xf32> -> vector<8x256xf32>
    %639 = arith.addf %636, %638 : vector<8x256xf32>
    %640 = arith.addf %639, %6 : vector<8x256xf32>
    %641 = vector.extract_strided_slice %640 {offsets = [0, 0], sizes = [8, 128], strides = [1, 1]} : vector<8x256xf32> to vector<8x128xf32>
    %642 = arith.negf %641 : vector<8x128xf32>
    %643 = math.exp %642 : vector<8x128xf32>
    %cst_138 = arith.constant 1.000000e+00 : f32
    %644 = vector.broadcast %cst_138 : f32 to vector<8x128xf32>
    %645 = arith.addf %644, %643 : vector<8x128xf32>
    %646 = arith.divf %644, %645 : vector<8x128xf32>
    %647 = math.tanh %641 : vector<8x128xf32>
    %648 = vector.extract_strided_slice %646 {offsets = [0, 0], sizes = [8, 32], strides = [1, 1]} : vector<8x128xf32> to vector<8x32xf32>
    %649 = vector.extract_strided_slice %646 {offsets = [0, 32], sizes = [8, 32], strides = [1, 1]} : vector<8x128xf32> to vector<8x32xf32>
    %650 = vector.extract_strided_slice %646 {offsets = [0, 64], sizes = [8, 32], strides = [1, 1]} : vector<8x128xf32> to vector<8x32xf32>
    %651 = vector.extract_strided_slice %647 {offsets = [0, 96], sizes = [8, 32], strides = [1, 1]} : vector<8x128xf32> to vector<8x32xf32>
    %652 = vector.extract_strided_slice %640 {offsets = [0, 128], sizes = [8, 32], strides = [1, 1]} : vector<8x256xf32> to vector<8x32xf32>
    %cst_139 = arith.constant 0.000000e+00 : f32
    %653 = vector.broadcast %cst_139 : f32 to vector<8x32xf32>
    %654 = arith.cmpf ogt, %652, %653 : vector<8x32xf32>
    %655 = arith.extui %654 : vector<8x32xi1> to vector<8x32xi32>
    %656 = arith.sitofp %655 : vector<8x32xi32> to vector<8x32xf32>
    %657 = arith.mulf %649, %651 : vector<8x32xf32>
    %cst_140 = arith.constant 1.000000e+00 : f32
    %658 = vector.broadcast %cst_140 : f32 to vector<8x32xf32>
    %659 = arith.subf %658, %572 : vector<8x32xf32>
    %660 = arith.mulf %572, %657 : vector<8x32xf32>
    %cst_141 = arith.constant 1.000000e+00 : f32
    %661 = vector.broadcast %cst_141 : f32 to vector<8x32xf32>
    %662 = arith.subf %661, %627 : vector<8x32xf32>
    %663 = arith.mulf %659, %662 : vector<8x32xf32>
    %664 = arith.mulf %663, %586 : vector<8x32xf32>
    %665 = arith.addf %660, %664 : vector<8x32xf32>
    %666 = arith.mulf %659, %627 : vector<8x32xf32>
    %667 = arith.mulf %648, %586 : vector<8x32xf32>
    %668 = arith.addf %667, %657 : vector<8x32xf32>
    %669 = arith.mulf %666, %668 : vector<8x32xf32>
    %670 = arith.addf %665, %669 : vector<8x32xf32>
    %671 = math.tanh %670 : vector<8x32xf32>
    %672 = arith.mulf %650, %671 : vector<8x32xf32>
    %673 = arith.mulf %572, %672 : vector<8x32xf32>
    %cst_142 = arith.constant 1.000000e+00 : f32
    %674 = vector.broadcast %cst_142 : f32 to vector<8x32xf32>
    %675 = arith.subf %674, %627 : vector<8x32xf32>
    %676 = arith.mulf %659, %675 : vector<8x32xf32>
    %677 = arith.mulf %676, %597 : vector<8x32xf32>
    %678 = arith.addf %673, %677 : vector<8x32xf32>
    %679 = arith.mulf %659, %627 : vector<8x32xf32>
    %680 = arith.mulf %679, %672 : vector<8x32xf32>
    %681 = arith.addf %678, %680 : vector<8x32xf32>
    %682 = tpu.concatenate %635, %681, %627, %656 in 1 : vector<8x32xf32>, vector<8x32xf32>, vector<8x32xf32>, vector<8x32xf32> -> vector<8x128xf32>
    %683 = arith.index_cast %c7_i32 : i32 to index
    %c0_143 = arith.constant 0 : index
    %c0_144 = arith.constant 0 : index
    %684 = vector.load %arg8[%683, %c0_143, %c0_144] : memref<8x8x128xf32, #tpu.memory_space<vmem>>, vector<1x8x128xf32>
    %685 = vector.shape_cast %684 : vector<1x8x128xf32> to vector<8x128xf32>
    %686 = vector.shape_cast %682 : vector<8x128xf32> to vector<1x8x128xf32>
    tpu.vector_store %arg8[%683, %c0_143, %c0_144], %686 {strides = array<i32>} : memref<8x8x128xf32, #tpu.memory_space<vmem>>, vector<1x8x128xf32>,
    %c8_i32_145 = arith.constant 8 : i32
    %687 = tpu.concatenate %633, %670 in 1 : vector<8x32xf32>, vector<8x32xf32> -> vector<8x64xf32>
    %c0_146 = arith.constant 0 : index
    %c0_147 = arith.constant 0 : index
    %688 = vector.load %arg9[%c0_146, %c0_147] : memref<8x64xf32, #tpu.memory_space<vmem>>, vector<8x64xf32>
    tpu.vector_store %arg9[%c0_146, %c0_147], %687 {strides = array<i32>} : memref<8x64xf32, #tpu.memory_space<vmem>>, vector<8x64xf32>,
    return
  }
}

</mosaic_0001>

<bundles_post_ra>
// kernel: hm_lstm_forward.1
= control target key start
LH: loop header
LB: loop body
LE: loop exit
PB: predicated region body
PF: predicated region fallthrough
CT: control target
= control target key end

     0   :  { %v5142_v3 = vmov 0.0   ;;  %vm103_vm0 = vcmask 261120   ;;  %v65_v34 = vlaneseq  ;;  %s3802_s12 = smov 32   ;;  %s5130_s1 = inlined_call_operand.vmem [shape: f32[32,256], index: 1, kind: input, shape index: {}]   ;;  %s5131_s2 = inlined_call_operand.vmem [shape: f32[32,256], index: 2, kind: input, shape index: {}]   ;;  %s5132_s0 = inlined_call_operand.vmem [shape: f32[64,32], index: 0, kind: input, shape index: {}]   ;;  %s5133_s3 = inlined_call_operand.vmem [shape: f32[32,256], index: 3, kind: input, shape index: {}]   ;;  %s5134_s6 = inlined_call_operand.vmem [shape: f32[32,256], index: 6, kind: input, shape index: {}]   ;;  %s5135_s4 = inlined_call_operand.vmem [shape: f32[1,256], index: 4, kind: input, shape index: {}]   ;;  %s5136_s5 = inlined_call_operand.vmem [shape: f32[32,256], index: 5, kind: input, shape index: {}]   ;;  %s5137_s7 = inlined_call_operand.vmem [shape: f32[1,256], index: 7, kind: input, shape index: {}]   ;;  %s5138_s8 = inlined_call_operand.vmem [shape: f32[8,8,128], index: 8, kind: output, shape index: {0}]   ;;  %s5139_s9 = inlined_call_operand.vmem [shape: f32[8,64], index: 9, kind: output, shape index: {1}]  }
   0x1   :  { %v90_v0 = vld [vmem:[%s5130_s1 + $0x38] sm:$0xff]  ;;  %v89_v2 = vld [vmem:[%s5130_s1 + $0x30] sm:$0xff]  ;;  %192 = vmatprep.mubr.f32.mxu0 %v5142_v3  ;;  %329 = vmatprep.mubr.f32.mxu1 %v5142_v3  ;;  %v88_v5 = vld [vmem:[%s5130_s1 + $0x28] sm:$0xff] }
   0x2   :  { %v3860_v1 = vld [vmem:[%s5131_s2 + $0x38] sm:$0xff]  ;;  %152 = vmatprep.subr.mxu0 %v90_v0  ;;  %v3871_v4 = vld [vmem:[%s5131_s2 + $0x30] sm:$0xff]  ;;  %v3879_v6 = vld [vmem:[%s5131_s2 + $0x28] sm:$0xff]  ;;  %v4042_v35 = vshrl.u32 %v65_v34, 7 }
   0x3   :  { %289 = vmatprep.subr.mxu1 %v3860_v1  ;;  %153 = vmatpush1.msra.mxu0 %v89_v2  ;;  %v87_v7 = vld [vmem:[%s5130_s1 + $0x20] sm:$0xff]  ;;  %v86_v9 = vld [vmem:[%s5130_s1 + $0x18] sm:$0xff]  ;;  %v85_v11 = vld [vmem:[%s5130_s1 + $0x10] sm:$0xff] }
   0x4   :  { %290 = vmatpush1.msra.mxu1 %v3871_v4  ;;  %v3888_v8 = vld [vmem:[%s5131_s2 + $0x20] sm:$0xff]  ;;  %154 = vmatprep.subr.mxu0 %v88_v5  ;;  %v3897_v10 = vld [vmem:[%s5131_s2 + $0x18] sm:$0xff]  ;;  %v3905_v12 = vld [vmem:[%s5131_s2 + $0x10] sm:$0xff]  ;;  %v67_v36 = vsub.s32 0, %v4042_v35  ;;  %v5140_v38 = vsub.s32 1, %v4042_v35 }
   0x5   :  { %291 = vmatprep.subr.mxu1 %v3879_v6  ;;  %155 = vmatpush1.msra.mxu0 %v87_v7  ;;  %v84_v13 = vld [vmem:[%s5130_s1 + $0x8] sm:$0xff]  ;;  %v83_v15 = vld [vmem:[%s5130_s1] sm:$0xff]  ;;  %v3933_v18 = vld [vmem:[%s5133_s3 + $0x38] sm:$0xff] }
   0x6   :  { %292 = vmatpush1.msra.mxu1 %v3888_v8  ;;  %v3914_v14 = vld [vmem:[%s5131_s2 + $0x8] sm:$0xff]  ;;  %156 = vmatprep.subr.mxu0 %v86_v9  ;;  %v3923_v16 = vld [vmem:[%s5131_s2] sm:$0xff]  ;;  %v3939_v19 = vld [vmem:[%s5133_s3 + $0x30] sm:$0xff] }
   0x7   :  { %293 = vmatprep.subr.mxu1 %v3897_v10  ;;  %157 = vmatpush1.msra.mxu0 %v85_v11  ;;  %v75_v17 = vld [vmem:[%s5132_s0] sm:$0xff]  ;;  %v3946_v20 = vld [vmem:[%s5133_s3 + $0x28] sm:$0xff]  ;;  %v3959_v22 = vld [vmem:[%s5133_s3 + $0x18] sm:$0xff] }
   0x8   :  { %294 = vmatpush1.msra.mxu1 %v3905_v12  ;;  %158 = vmatprep.subr.mxu0 %v84_v13  ;;  %v3952_v21 = vld [vmem:[%s5133_s3 + $0x20] sm:$0xff]  ;;  %v3966_v23 = vld [vmem:[%s5133_s3 + $0x10] sm:$0xff]  ;;  %v3973_v24 = vld [vmem:[%s5133_s3 + $0x8] sm:$0xff] }
   0x9   :  { %295 = vmatprep.subr.mxu1 %v3914_v14  ;;  %159 = vmatpush1.msra.mxu0 %v83_v15  ;;  %v3980_v25 = vld [vmem:[%s5133_s3] sm:$0xff]  ;;  %v3996_v26 = vld [vmem:[%s5134_s6 + $0x38] sm:$0xff]  ;;  %v4002_v27 = vld [vmem:[%s5134_s6 + $0x30] sm:$0xff] }
   0xa   :  { %296 = vmatpush1.msra.mxu1 %v3923_v16  ;;  %3519 = vmatmul.mubr.msk.f32.vlgmr.msra.gmra.mxu0 %vm103_vm0, %v75_v17  ;;  %v4009_v28 = vld [vmem:[%s5134_s6 + $0x28] sm:$0xff]  ;;  %v4015_v29 = vld [vmem:[%s5134_s6 + $0x20] sm:$0xff]  ;;  %v4021_v30 = vld [vmem:[%s5134_s6 + $0x18] sm:$0xff] }
   0xb   :  { %330 = vmatmul.mubr.f32.vlgmr.msra.gmra.mxu1 %v5142_v3  ;;  %362 = vmatprep.subr.mxu1 %v3933_v18  ;;  %v4027_v31 = vld [vmem:[%s5134_s6 + $0x10] sm:$0xff]  ;;  %v4033_v32 = vld [vmem:[%s5134_s6 + $0x8] sm:$0xff]  ;;  %v4039_v33 = vld [vmem:[%s5134_s6] sm:$0xff] }
   0xc   :  { %402 = vmatprep.mubr.f32.mxu1 %v5142_v3  ;;  %363 = vmatpush1.msra.mxu1 %v3939_v19  ;;  %v91_v37 = vld [vmem:[%s5135_s4] sm:$0x3]  ;;  %s3801_s4 = smov 64   ;;  %v76_v2 = vld [vmem:[%s5132_s0 + $0x8] sm:$0xff]  ;;  %v77_v5 = vld [vmem:[%s5132_s0 + $0x10] sm:$0xff] }
   0xd   :  { %198 = vmatprep.mubr.f32.mxu0 %v5142_v3  ;;  %364 = vmatprep.subr.mxu1 %v3946_v20  ;;  %v4051_v39 = vrot.slane %v91_v37, %v67_v36  ;;  %v4055_v41 = vrot.slane %v91_v37, %v5140_v38  ;;  %v4081_v7 = vld [vmem:[%s5136_s5 + $0x38] sm:$0xff]  ;;  %v4086_v9 = vld [vmem:[%s5136_s5 + $0x30] sm:$0xff]  ;;  %v4091_v11 = vld [vmem:[%s5136_s5 + $0x28] sm:$0xff] }
   0xe   :  { %695 = vmatprep.subr.mxu0 %v3860_v1  ;;  %365 = vmatpush1.msra.mxu1 %v3952_v21  ;;  %v4097_v13 = vld [vmem:[%s5136_s5 + $0x20] sm:$0xff]  ;;  %v4103_v15 = vld [vmem:[%s5136_s5 + $0x18] sm:$0xff]  ;;  %v4110_v17 = vld [vmem:[%s5136_s5 + $0x10] sm:$0xff] }
   0xf   :  { %696 = vmatpush1.msra.mxu0 %v3871_v4  ;;  %366 = vmatprep.subr.mxu1 %v3959_v22  ;;  %v78_v34 = vld [vmem:[%s5132_s0 + $0x18] sm:$0xff]  ;;  %v4120_v37 = vld [vmem:[%s5136_s5 + $0x8] sm:$0xff] }
  0x10   :  { %697 = vmatprep.subr.mxu0 %v3879_v6  ;;  %367 = vmatpush1.msra.mxu1 %v3966_v23 }
  0x11   :  { %698 = vmatpush1.msra.mxu0 %v3888_v8  ;;  %368 = vmatprep.subr.mxu1 %v3973_v24 }
  0x12   :  { %699 = vmatprep.subr.mxu0 %v3897_v10  ;;  %369 = vmatpush1.msra.mxu1 %v3980_v25 }
  0x13   :  { %700 = vmatpush1.msra.mxu0 %v3905_v12  ;;  %403 = vmatmul.mubr.f32.vlgmr.msra.gmra.mxu1 %v5142_v3 }
  0x14   :  { %701 = vmatprep.subr.mxu0 %v3914_v14  ;;  %506 = vmatprep.mubr.f32.mxu1 %v5142_v3 }
  0x15   :  { %702 = vmatpush1.msra.mxu0 %v3923_v16  ;;  %466 = vmatprep.subr.mxu1 %v3996_v26 }
  0x16   :  { %884 = vmatprep.subr.mxu0 %v3996_v26  ;;  %467 = vmatpush1.msra.mxu1 %v4002_v27 }
  0x17   :  { %468 = vmatprep.subr.mxu1 %v4009_v28  ;;  %3520 = vmatmul.mubr.msk.f32.gmra.mxu0 %vm103_vm0, %v76_v2 }
  0x18   :  { %469 = vmatpush1.msra.mxu1 %v4015_v29  ;;  %204 = vmatprep.mubr.f32.mxu0 %v5142_v3 }
  0x19   :  { %470 = vmatprep.subr.mxu1 %v4021_v30 }
  0x1a   :  { %471 = vmatpush1.msra.mxu1 %v4027_v31 }
  0x1b   :  { %472 = vmatprep.subr.mxu1 %v4033_v32  ;;  %3521 = vmatmul.mubr.msk.f32.gmra.mxu0 %vm103_vm0, %v77_v5 }
  0x1c   :  { %473 = vmatpush1.msra.mxu1 %v4039_v33  ;;  %210 = vmatprep.mubr.f32.mxu0 %v5142_v3 }
  0x1d   :  { %542 = vmatprep.subr.mxu1 %v4081_v7 }
  0x1f   :  { %3522 = vmatmul.mubr.msk.f32.gmra.mxu0 %vm103_vm0, %v78_v34 }
  0x20   :  { %216 = vmatprep.mubr.f32.mxu0 %v5142_v3 }
  0xca   :  { %v194_v40 = vpop.f32.mrf.mxu0 }
  0xcb   :  { %v331_v42 = vpop.f32.mrf.mxu1  ;;  %v195_v44 = vadd.f32 %v194_v40, %v4051_v39  ;;  %v4126_v40 = vld [vmem:[%s5136_s5] sm:$0xff] }
  0xcc   :  { %v196_v43 = vpop.f32.mrf.mxu0 }
  0xcd   :  { %v197_v45 = vadd.f32 %v196_v43, %v4055_v41  ;;  %v333_v46 = vpop.f32.mrf.mxu1  ;;  %v336_v47 = vadd.f32 %v331_v42, %v195_v44  ;;  %v79_v43 = vld [vmem:[%s5132_s0 + $0x20] sm:$0xff]  ;;  %v80_v44 = vld [vmem:[%s5132_s0 + $0x28] sm:$0xff] }
  0xce   :  { %3523 = vmatmul.mubr.msk.f32.gmra.mxu0 %vm103_vm0, %v79_v43 }
  0xcf   :  { %v337_v49 = vadd.f32 %v333_v46, %v197_v45  ;;  %222 = vmatprep.mubr.f32.mxu0 %v5142_v3  ;;  %v81_v45 = vld [vmem:[%s5132_s0 + $0x30] sm:$0xff]  ;;  %v82_v46 = vld [vmem:[%s5132_s0 + $0x38] sm:$0xff] }
  0xd2   :  { %3524 = vmatmul.mubr.msk.f32.gmra.mxu0 %vm103_vm0, %v80_v44 }
  0xd3   :  { %v404_v48 = vpop.f32.mrf.mxu1  ;;  %228 = vmatprep.mubr.f32.mxu0 %v5142_v3 }
  0xd4   :  { %v409_v50 = vadd.f32 %v404_v48, %v336_v47 }
  0xd5   :  { %v406_v51 = vpop.f32.mrf.mxu1 }
  0xd6   :  { %v3527_v52 = vmul.f32 -1.442695, %v409_v50  ;;  %3640 = vtanh.f32 %v409_v50  ;;  %v410_v53 = vadd.f32 %v406_v51, %v337_v49  ;;  %3525 = vmatmul.mubr.msk.f32.gmra.mxu0 %vm103_vm0, %v81_v45  ;;  %v4183_v51 = vld [vmem:[%s5137_s7] sm:$0x3]  ;;  %s3803_s7 = smov 96  }
  0xd7   :  { %234 = vmatprep.mubr.f32.mxu0 %v5142_v3 }
  0xd8   :  { %3642 = vpow2.f32 %v3527_v52  ;;  %vm418_vm1 = vcmp.gt.f32.partialorder %v410_v53, 0.0  ;;  %v4190_v53 = vrot.slane %v4183_v51, %v67_v36 }
  0xd9   :  { %v4060_v54 = vsel %vm418_vm1, 1.0, %v5142_v3 }
  0xda   :  { %5158 = vst [vmem:[#allocation3_spill] sm:$0xff] %v4060_v54  ;;  %v438_v55 = vmul.f32 0.0, %v4060_v54  ;;  %3526 = vmatmul.mubr.msk.f32.gmra.mxu0 %vm103_vm0, %v82_v46 }
  0xdb   :  { %735 = vmatprep.mubr.f32.mxu0 %v5142_v3 }
  0xdc   :  { %3529 = vmatmul.mubr.msk.f32.vlgmr.msra.gmra.mxu1 %vm103_vm0, %v438_v55 }
  0xdd   :  { %582 = vmatprep.mubr.f32.mxu1 %v5142_v3  ;;  %543 = vmatpush1.msra.mxu1 %v4086_v9 }
  0xde   :  { %544 = vmatprep.subr.mxu1 %v4091_v11 }
  0xdf   :  { %545 = vmatpush1.msra.mxu1 %v4097_v13 }
  0xe0   :  { %546 = vmatprep.subr.mxu1 %v4103_v15 }
  0xe1   :  { %547 = vmatpush1.msra.mxu1 %v4110_v17 }
  0xe2   :  { %548 = vmatprep.subr.mxu1 %v4120_v37 }
  0xe3   :  { %v3641_v56 = vpop.eup %3640  ;;  %549 = vmatpush1.msra.mxu1 %v4126_v40 }
  0xe4   :  { %422 = vrot.lane.b32.xlu0 %v3641_v56, %s3801_s4  ;;  %775 = vmatprep.subr.mxu1 %v3933_v18 }
  0xe5   :  { %v3643_v57 = vpop.eup %3642 }
  0xe6   :  { %v414_v58 = vadd.f32 1.0, %v3643_v57 }
  0xe8   :  { %3644 = vrcp.f32 %v414_v58  ;;  %v5141_v58 = vsub.f32 1.0, %v4060_v54 }
  0xf5   :  { %v3645_v59 = vpop.eup %3644 }
  0xf6   :  { %v426_v60 = vmul.f32 0.0, %v3645_v59 }
  0xf8   :  { %428 = vrot.lane.b32.xlu0 %v426_v60, %s3802_s12  ;;  %v608_v60 = vmul.f32 0.0, %v5141_v58 }
 0x156   :  { %v423_v61 = vpop.permute.xlu0 %422 }
 0x157   :  { %v425_v62 = vmul.f32 %v3645_v59, %v423_v61 }
 0x16a   :  { %v429_v63 = vpop.permute.xlu0 %428 }
 0x16b   :  { %v4067_v0 = vadd.f32 %v429_v63, %v425_v62 }
 0x16d   :  { %3646 = vtanh.f32 %v4067_v0 }
 0x17a   :  { %v3647_v42 = vpop.eup %3646 }
 0x17b   :  { %434 = vrot.lane.b32.xlu1 %v3647_v42, %s3802_s12 }
 0x19c   :  { %v508_v50 = vpop.f32.mrf.mxu1 }
 0x19e   :  { %v4185_v52 = vpop.f32.mrf.mxu1 }
 0x1ed   :  { %v435_v47 = vpop.permute.xlu1 %434 }
 0x1ee   :  { %v437_v48 = vmul.f32 %v3645_v59, %v435_v47 }
 0x1f0   :  { %514 = vrot.lane.b32.xlu1 %v437_v48, %s3801_s4 }
 0x262   :  { %v4156_v49 = vpop.permute.xlu1 %514 }
 0x263   :  { %5159 = vst [vmem:[#allocation4_spill] sm:$0xff] %v4156_v49  ;;  %3530 = vmatmul.mubr.msk.f32.vlgmr.msra.gmra.mxu1 %vm103_vm0, %v4156_v49  ;;  %3533 = vmatmul.mubr.msk.f32.vlgmr.msra.gmra.mxu0 %vm103_vm0, %v4156_v49 }
 0x264   :  { %776 = vmatpush1.msra.mxu1 %v3939_v19  ;;  %815 = vmatprep.mubr.f32.mxu1 %v5142_v3 }
 0x265   :  { %777 = vmatprep.subr.mxu1 %v3946_v20  ;;  %885 = vmatpush1.msra.mxu0 %v4002_v27 }
 0x266   :  { %778 = vmatpush1.msra.mxu1 %v3952_v21  ;;  %886 = vmatprep.subr.mxu0 %v4009_v28 }
 0x267   :  { %779 = vmatprep.subr.mxu1 %v3959_v22  ;;  %887 = vmatpush1.msra.mxu0 %v4015_v29 }
 0x268   :  { %780 = vmatpush1.msra.mxu1 %v3966_v23  ;;  %888 = vmatprep.subr.mxu0 %v4021_v30 }
 0x269   :  { %781 = vmatprep.subr.mxu1 %v3973_v24  ;;  %889 = vmatpush1.msra.mxu0 %v4027_v31 }
 0x26a   :  { %782 = vmatpush1.msra.mxu1 %v3980_v25  ;;  %890 = vmatprep.subr.mxu0 %v4033_v32 }
 0x26b   :  { %891 = vmatpush1.msra.mxu0 %v4039_v33  ;;  %924 = vmatprep.mubr.f32.mxu0 %v5142_v3 }
 0x26c   :  { %960 = vmatprep.subr.mxu1 %v4081_v7  ;;  %1105 = vmatprep.subr.mxu0 %v3860_v1 }
 0x323   :  { %v584_v55 = vpop.f32.mrf.mxu1 }
 0x324   :  { %v585_v56 = vadd.f32 %v584_v55, %v508_v50 }
 0x326   :  { %v589_v57 = vadd.f32 %v585_v56, %v4190_v53 }
 0x328   :  { %3648 = vtanh.f32 %v589_v57  ;;  %v3531_v61 = vmul.f32 -1.442695, %v589_v57 }
 0x32a   :  { %3650 = vpow2.f32 %v3531_v61 }
 0x335   :  { %v3649_v59 = vpop.eup %3648 }
 0x336   :  { %602 = vrot.lane.b32.xlu0 %v3649_v59, %s3801_s4 }
 0x337   :  { %v3651_v62 = vpop.eup %3650 }
 0x338   :  { %v594_v36 = vadd.f32 1.0, %v3651_v62 }
 0x33a   :  { %610 = vrot.lane.b32.xlu0 %v608_v60, %s3802_s12  ;;  %3652 = vrcp.f32 %v594_v36 }
 0x347   :  { %v3653_v63 = vpop.eup %3652 }
 0x348   :  { %v614_v34 = vmul.f32 0.0, %v3653_v63 }
 0x3a8   :  { %v603_v2 = vpop.permute.xlu0 %602 }
 0x3a9   :  { %v605_v5 = vmul.f32 %v3653_v63, %v603_v2 }
 0x3ab   :  { %616 = vrot.lane.b32.xlu1 %v605_v5, %s3803_s7  ;;  %v606_v45 = vmul.f32 0.0, %v605_v5 }
 0x3ac   :  { %v611_v46 = vpop.permute.xlu0 %610 }
 0x3ad   :  { %v613_v47 = vadd.f32 %v611_v46, %v606_v45 }
 0x41d   :  { %v617_v42 = vpop.permute.xlu1 %616 }
 0x41e   :  { %v619_v43 = vadd.f32 %v617_v42, %v614_v34 }
 0x420   :  { %v620_v44 = vmul.f32 %v4060_v54, %v619_v43 }
 0x422   :  { %622 = vrot.lane.b32.xlu1 %v620_v44, %s3802_s12 }
 0x494   :  { %v623_v48 = vpop.permute.xlu1 %622 }
 0x495   :  { %v4201_v50 = vadd.f32 %v623_v48, %v613_v47 }
 0x497   :  { %3654 = vtanh.f32 %v4201_v50 }
 0x4a4   :  { %v3655_v55 = vpop.eup %3654 }
 0x4a5   :  { %628 = vrot.lane.b32.xlu0 %v3655_v55, %s3802_s12 }
 0x4a9   :  { %633 = vrot.lane.b32.xlu0 %v608_v60, %s3801_s4 }
 0x517   :  { %v629_v56 = vpop.permute.xlu0 %628 }
 0x518   :  { %v631_v57 = vmul.f32 %v3653_v63, %v629_v56 }
 0x51a   :  { %638 = vrot.lane.b32.xlu1 %v631_v57, %s3801_s4  ;;  %v632_v62 = vmul.f32 0.0, %v631_v57 }
 0x51b   :  { %v634_v36 = vpop.permute.xlu0 %633 }
 0x51c   :  { %v636_v2 = vadd.f32 %v634_v36, %v632_v62 }
 0x58c   :  { %v639_v59 = vpop.permute.xlu1 %638 }
 0x58d   :  { %v641_v61 = vmul.f32 %v4060_v54, %v639_v59 }
 0x58f   :  { %643 = vrot.lane.b32.xlu1 %v641_v61, %s3801_s4 }
 0x593   :  { %840 = vrot.lane.b32.xlu1 %v4067_v0, %s3803_s7  ;;  %v200_v0 = vpop.f32.mrf.mxu0 }
 0x595   :  { %v202_v42 = vpop.f32.mrf.mxu0 }
 0x597   :  { %v4229_v43 = vpop.f32.mrf.mxu0 }
 0x599   :  { %v4231_v44 = vpop.f32.mrf.mxu0 }
 0x59b   :  { %v4233_v45 = vpop.f32.mrf.mxu0 }
 0x59d   :  { %v4235_v46 = vpop.f32.mrf.mxu0 }
 0x59f   :  { %v4237_v47 = vpop.f32.mrf.mxu0 }
 0x5a1   :  { %v4239_v48 = vpop.f32.mrf.mxu0 }
 0x5a3   :  { %v4241_v55 = vpop.f32.mrf.mxu0 }
 0x5a5   :  { %v4243_v56 = vpop.f32.mrf.mxu0 }
 0x5a6   :  { %5161 = vst [vmem:[#allocation6_spill] sm:$0xff] %v4243_v56 }
 0x5a7   :  { %v4245_v57 = vpop.f32.mrf.mxu0 }
 0x5a8   :  { %5162 = vst [vmem:[#allocation7_spill] sm:$0xff] %v4245_v57 }
 0x5a9   :  { %v4247_v59 = vpop.f32.mrf.mxu0 }
 0x5aa   :  { %5163 = vst [vmem:[#allocation8_spill] sm:$0xff] %v4247_v59 }
 0x5ab   :  { %v4249_v61 = vpop.f32.mrf.mxu0 }
 0x5ac   :  { %5164 = vst [vmem:[#allocation9_spill] sm:$0xff] %v4249_v61  ;;  %v5166_v61 = vmov 0.0  }
 0x5ad   :  { %v4251_v62 = vpop.f32.mrf.mxu0 }
 0x5ae   :  { %5165 = vst [vmem:[#allocation10_spill] sm:$0xff] %v4251_v62 }
 0x5af   :  { %v737_v36 = vpop.f32.mrf.mxu0 }
 0x5b1   :  { %v739_v38 = vpop.f32.mrf.mxu0 }
 0x601   :  { %v644_v5 = vpop.permute.xlu1 %643 }
 0x602   :  { %v4211_v34 = vadd.f32 %v644_v5, %v636_v2  ;;  %v201_v2 = vadd.f32 %v200_v0, %v4051_v39  ;;  %v203_v5 = vadd.f32 %v202_v42, %v4055_v41 }
 0x604   :  { %5160 = vst [vmem:[#allocation5_spill] sm:$0xff] %v4211_v34  ;;  %744 = vrot.lane.b32.xlu0 %v4211_v34, %s3801_s4  ;;  %v742_v58 = vadd.f32 %v737_v36, %v201_v2  ;;  %v743_v49 = vadd.f32 %v739_v38, %v203_v5 }
 0x676   :  { %v4215_v60 = vpop.permute.xlu0 %744 }
 0x677   :  { %v747_v63 = vmul.f32 %v4060_v54, %v4215_v60 }
 0x679   :  { %3534 = vmatmul.mubr.msk.f32.vlgmr.msra.gmra.mxu1 %vm103_vm0, %v747_v63  ;;  %v4255_v63 = vpop.f32.mrf.mxu1 }
 0x67a   :  { %961 = vmatpush1.msra.mxu1 %v4086_v9  ;;  %1000 = vmatprep.mubr.f32.mxu1 %v5142_v3 }
 0x67b   :  { %962 = vmatprep.subr.mxu1 %v4091_v11 }
 0x67c   :  { %963 = vmatpush1.msra.mxu1 %v4097_v13 }
 0x67d   :  { %964 = vmatprep.subr.mxu1 %v4103_v15 }
 0x67e   :  { %965 = vmatpush1.msra.mxu1 %v4110_v17 }
 0x67f   :  { %966 = vmatprep.subr.mxu1 %v4120_v37 }
 0x680   :  { %967 = vmatpush1.msra.mxu1 %v4126_v40 }
 0x681   :  { %1182 = vmatprep.subr.mxu1 %v3933_v18 }
 0x739   :  { %v817_v3 = vpop.f32.mrf.mxu1 }
 0x73a   :  { %v822_v34 = vadd.f32 %v817_v3, %v742_v58 }
 0x73b   :  { %v819_v56 = vpop.f32.mrf.mxu1 }
 0x73c   :  { %v3535_v57 = vmul.f32 -1.442695, %v822_v34  ;;  %3656 = vtanh.f32 %v822_v34  ;;  %v823_v59 = vadd.f32 %v819_v56, %v743_v49  ;;  %v841_v34 = vpop.permute.xlu1 %840  ;;  %v5167_v56 = vsub.f32 1.0, %v4060_v54 }
 0x73e   :  { %3658 = vpow2.f32 %v3535_v57  ;;  %vm831_vm2 = vcmp.gt.f32.partialorder %v823_v59, 0.0 }
 0x73f   :  { %v4258_v62 = vsel %vm831_vm2, 1.0, %v5166_v61  ;;  %vm661_vm2 = vcmask 523264  }
 0x740   :  { %v856_v0 = vmul.f32 %v4258_v62, %v4215_v60 }
 0x742   :  { %3537 = vmatmul.mubr.msk.f32.vlgmr.msra.gmra.mxu0 %vm103_vm0, %v856_v0 }
 0x743   :  { %1106 = vmatpush1.msra.mxu0 %v3871_v4  ;;  %1145 = vmatprep.mubr.f32.mxu0 %v5166_v61 }
 0x744   :  { %1107 = vmatprep.subr.mxu0 %v3879_v6 }
 0x745   :  { %1108 = vmatpush1.msra.mxu0 %v3888_v8 }
 0x746   :  { %1109 = vmatprep.subr.mxu0 %v3897_v10 }
 0x747   :  { %1110 = vmatpush1.msra.mxu0 %v3905_v12 }
 0x748   :  { %1111 = vmatprep.subr.mxu0 %v3914_v14 }
 0x749   :  { %v3657_v3 = vpop.eup %3656  ;;  %1112 = vmatpush1.msra.mxu0 %v3923_v16 }
 0x74a   :  { %835 = vrot.lane.b32.xlu0 %v3657_v3, %s3801_s4  ;;  %1291 = vmatprep.subr.mxu0 %v3996_v26 }
 0x74b   :  { %v3659_v38 = vpop.eup %3658 }
 0x74c   :  { %v827_v49 = vadd.f32 1.0, %v3659_v38 }
 0x74e   :  { %3660 = vrcp.f32 %v827_v49 }
 0x75b   :  { %v3661_v58 = vpop.eup %3660 }
 0x75c   :  { %v843_v42 = vmul.f32 %v3661_v58, %v841_v34 }
 0x75e   :  { %v844_v57 = vmul.f32 %v843_v42, %v5167_v56 }
 0x760   :  { %846 = vrot.lane.b32.xlu1 %v844_v57, %s3802_s12 }
 0x7bc   :  { %v836_v59 = vpop.permute.xlu0 %835 }
 0x7bd   :  { %v838_v36 = vmul.f32 %v3661_v58, %v836_v59 }
 0x7d2   :  { %v847_v2 = vpop.permute.xlu1 %846 }
 0x7d3   :  { %v4276_v5 = vadd.f32 %v847_v2, %v838_v36 }
 0x7d5   :  { %3662 = vtanh.f32 %v4276_v5 }
 0x7e2   :  { %v3663_v0 = vpop.eup %3662 }
 0x7e3   :  { %852 = vrot.lane.b32.xlu0 %v3663_v0, %s3802_s12 }
 0x855   :  { %v853_v3 = vpop.permute.xlu0 %852 }
 0x856   :  { %v855_v38 = vmul.f32 %v3661_v58, %v853_v3 }
 0x858   :  { %932 = vrot.lane.b32.xlu1 %v855_v38, %s3801_s4  ;;  %v5169_v38 = vsub.s32 1, %v4042_v35 }
 0x85c   :  { %1033 = vrot.lane.b32.xlu1 %v4201_v50, %s3803_s7  ;;  %v926_v50 = vpop.f32.mrf.mxu0 }
 0x8ca   :  { %v4283_v49 = vpop.permute.xlu1 %932 }
 0x8cb   :  { %5168 = vst [vmem:[#allocation11_spill] sm:$0xff] %v4283_v49  ;;  %3538 = vmatmul.mubr.msk.f32.vlgmr.msra.gmra.mxu1 %vm103_vm0, %v4283_v49  ;;  %3542 = vmatmul.mubr.msk.f32.vlgmr.msra.gmra.mxu0 %vm103_vm0, %v4283_v49 }
 0x8cc   :  { %1183 = vmatpush1.msra.mxu1 %v3939_v19  ;;  %1222 = vmatprep.mubr.f32.mxu1 %v5166_v61 }
 0x8cd   :  { %1184 = vmatprep.subr.mxu1 %v3946_v20  ;;  %1292 = vmatpush1.msra.mxu0 %v4002_v27 }
 0x8ce   :  { %1185 = vmatpush1.msra.mxu1 %v3952_v21  ;;  %1293 = vmatprep.subr.mxu0 %v4009_v28 }
 0x8cf   :  { %1186 = vmatprep.subr.mxu1 %v3959_v22  ;;  %1294 = vmatpush1.msra.mxu0 %v4015_v29 }
 0x8d0   :  { %1187 = vmatpush1.msra.mxu1 %v3966_v23  ;;  %1295 = vmatprep.subr.mxu0 %v4021_v30 }
 0x8d1   :  { %1188 = vmatprep.subr.mxu1 %v3973_v24  ;;  %1296 = vmatpush1.msra.mxu0 %v4027_v31 }
 0x8d2   :  { %1189 = vmatpush1.msra.mxu1 %v3980_v25  ;;  %1297 = vmatprep.subr.mxu0 %v4033_v32 }
 0x8d3   :  { %1298 = vmatpush1.msra.mxu0 %v4039_v33  ;;  %1331 = vmatprep.mubr.f32.mxu0 %v5166_v61 }
 0x8d4   :  { %1367 = vmatprep.subr.mxu1 %v4081_v7  ;;  %1508 = vmatprep.subr.mxu0 %v3860_v1 }
 0x98b   :  { %v1002_v58 = vpop.f32.mrf.mxu1 }
 0x98c   :  { %v1003_v34 = vadd.f32 %v1002_v58, %v926_v50  ;;  %v4313_v50 = vrot.slane %v4183_v51, %v5169_v38  ;;  %v587_v58 = vadd.f32 %v4255_v63, %v4185_v52 }
 0x98e   :  { %v1007_v42 = vadd.f32 %v1003_v34, %v4190_v53  ;;  %v590_v34 = vadd.f32 %v587_v58, %v4313_v50 }
 0x990   :  { %3664 = vtanh.f32 %v1007_v42  ;;  %v3539_v57 = vmul.f32 -1.442695, %v1007_v42  ;;  %vm598_vm3 = vcmp.gt.f32.partialorder %v590_v34, 0.0 }
 0x991   :  { %v4319_v42 = vsel %vm598_vm3, 1.0, %v5166_v61  ;;  %vm663_vm3 = vcmask 785408  }
 0x992   :  { %3666 = vpow2.f32 %v3539_v57  ;;  %v1024_v57 = vsub.f32 1.0, %v4319_v42 }
 0x99d   :  { %v3665_v56 = vpop.eup %3664 }
 0x99e   :  { %1020 = vrot.lane.b32.xlu0 %v3665_v56, %s3801_s4  ;;  %v5147_v56 = vsub.f32 1.0, %v4258_v62 }
 0x99f   :  { %v3667_v59 = vpop.eup %3666 }
 0x9a0   :  { %v1012_v36 = vadd.f32 1.0, %v3667_v59  ;;  %v1034_v59 = vpop.permute.xlu1 %1033  ;;  %v1031_v35 = vmul.f32 %v5147_v56, %v1024_v57 }
 0x9a2   :  { %3668 = vrcp.f32 %v1012_v36 }
 0x9af   :  { %v3669_v2 = vpop.eup %3668 }
 0x9b0   :  { %v1039_v36 = vmul.f32 %v3669_v2, %v1034_v59 }
 0xa10   :  { %v1021_v0 = vpop.permute.xlu0 %1020 }
 0xa11   :  { %v1023_v3 = vmul.f32 %v3669_v2, %v1021_v0  ;;  %v1036_v0 = vmul.f32 %v1034_v59, %v1031_v35  ;;  %v1054_v59 = vmul.f32 %v1031_v35, %v4215_v60 }
 0xa13   :  { %1026 = vrot.lane.b32.xlu0 %v1023_v3, %s3803_s7  ;;  %v1038_v3 = vmul.f32 %v4258_v62, %v1024_v57 }
 0xa85   :  { %v1027_v51 = vpop.permute.xlu0 %1026 }
 0xa86   :  { %v1029_v52 = vmul.f32 %v4319_v42, %v1027_v51  ;;  %v1040_v63 = vadd.f32 %v1039_v36, %v1027_v51 }
 0xa88   :  { %v1037_v38 = vadd.f32 %v1036_v0, %v1029_v52  ;;  %v1041_v58 = vmul.f32 %v1040_v63, %v1038_v3 }
 0xa8a   :  { %v4327_v34 = vadd.f32 %v1041_v58, %v1037_v38 }
 0xa8c   :  { %3670 = vtanh.f32 %v4327_v34 }
 0xa99   :  { %v3671_v49 = vpop.eup %3670 }
 0xa9a   :  { %1045 = vrot.lane.b32.xlu1 %v3671_v49, %s3801_s4  ;;  %v4354_v49 = vpop.f32.mrf.mxu1 }
 0xa9e   :  { %1247 = vrot.lane.b32.xlu1 %v4276_v5, %s3803_s7  ;;  %v207_v5 = vadd.f32 %v4229_v43, %v4051_v39 }
 0xb0c   :  { %v1046_v56 = vpop.permute.xlu1 %1045 }
 0xb0d   :  { %v1048_v54 = vmul.f32 %v3669_v2, %v1046_v56  ;;  %v209_v56 = vadd.f32 %v4231_v44, %v4055_v41 }
 0xb0f   :  { %1050 = vrot.lane.b32.xlu0 %v1048_v54, %s3801_s4  ;;  %v4350_v54 = vpop.f32.mrf.mxu0 }
 0xb11   :  { %v1147_v60 = vpop.f32.mrf.mxu0 }
 0xb12   :  { %v1152_v35 = vadd.f32 %v1147_v60, %v207_v5 }
 0xb13   :  { %v1149_v2 = vpop.f32.mrf.mxu0 }
 0xb14   :  { %v1153_v38 = vadd.f32 %v1149_v2, %v209_v56 }
 0xb81   :  { %v1051_v57 = vpop.permute.xlu0 %1050 }
 0xb82   :  { %v1053_v36 = vmul.f32 %v4319_v42, %v1051_v57  ;;  %v1056_v0 = vmul.f32 %v1051_v57, %v1038_v3 }
 0xb84   :  { %v1055_v51 = vadd.f32 %v1054_v59, %v1053_v36 }
 0xb86   :  { %v4336_v52 = vadd.f32 %v1056_v0, %v1055_v51 }
 0xb88   :  { %v1154_v63 = vmul.f32 %v4258_v62, %v4336_v52 }
 0xb8a   :  { %3543 = vmatmul.mubr.msk.f32.vlgmr.msra.gmra.mxu1 %vm103_vm0, %v1154_v63 }
 0xb8b   :  { %1368 = vmatpush1.msra.mxu1 %v4086_v9  ;;  %1407 = vmatprep.mubr.f32.mxu1 %v5166_v61 }
 0xb8c   :  { %1369 = vmatprep.subr.mxu1 %v4091_v11 }
 0xb8d   :  { %1370 = vmatpush1.msra.mxu1 %v4097_v13 }
 0xb8e   :  { %1371 = vmatprep.subr.mxu1 %v4103_v15 }
 0xb8f   :  { %1372 = vmatpush1.msra.mxu1 %v4110_v17 }
 0xb90   :  { %1373 = vmatprep.subr.mxu1 %v4120_v37 }
 0xb91   :  { %1374 = vmatpush1.msra.mxu1 %v4126_v40 }
 0xb92   :  { %1585 = vmatprep.subr.mxu1 %v3933_v18 }
 0xc4a   :  { %v1224_v3 = vpop.f32.mrf.mxu1 }
 0xc4b   :  { %v1229_v58 = vadd.f32 %v1224_v3, %v1152_v35 }
 0xc4c   :  { %v1226_v57 = vpop.f32.mrf.mxu1 }
 0xc4d   :  { %v3544_v59 = vmul.f32 -1.442695, %v1229_v58  ;;  %3672 = vtanh.f32 %v1229_v58  ;;  %v1230_v36 = vadd.f32 %v1226_v57, %v1153_v38 }
 0xc4f   :  { %3674 = vpow2.f32 %v3544_v59  ;;  %vm1238_vm4 = vcmp.gt.f32.partialorder %v1230_v36, 0.0 }
 0xc50   :  { %v4359_v51 = vsel %vm1238_vm4, 1.0, %v5166_v61 }
 0xc51   :  { %v1263_v43 = vmul.f32 %v4359_v51, %v4336_v52 }
 0xc53   :  { %3546 = vmatmul.mubr.msk.f32.vlgmr.msra.gmra.mxu0 %vm103_vm0, %v1263_v43 }
 0xc54   :  { %1509 = vmatpush1.msra.mxu0 %v3871_v4  ;;  %1548 = vmatprep.mubr.f32.mxu0 %v5166_v61 }
 0xc55   :  { %1510 = vmatprep.subr.mxu0 %v3879_v6  ;;  %v1248_v6 = vpop.permute.xlu1 %1247 }
 0xc56   :  { %1511 = vmatpush1.msra.mxu0 %v3888_v8  ;;  %v5170_v8 = vsub.f32 1.0, %v4258_v62 }
 0xc57   :  { %1512 = vmatprep.subr.mxu0 %v3897_v10 }
 0xc58   :  { %1513 = vmatpush1.msra.mxu0 %v3905_v12 }
 0xc59   :  { %1514 = vmatprep.subr.mxu0 %v3914_v14 }
 0xc5a   :  { %v3673_v44 = vpop.eup %3672  ;;  %1515 = vmatpush1.msra.mxu0 %v3923_v16 }
 0xc5b   :  { %1242 = vrot.lane.b32.xlu0 %v3673_v44, %s3801_s4  ;;  %1694 = vmatprep.subr.mxu0 %v3996_v26  ;;  %v1437_v44 = vsub.f32 1.0, %v4359_v51 }
 0xc5c   :  { %v3675_v4 = vpop.eup %3674 }
 0xc5d   :  { %v1234_v0 = vadd.f32 1.0, %v3675_v4 }
 0xc5f   :  { %3676 = vrcp.f32 %v1234_v0 }
 0xc6c   :  { %v3677_v63 = vpop.eup %3676 }
 0xc6d   :  { %v1250_v60 = vmul.f32 %v3677_v63, %v1248_v6 }
 0xc6f   :  { %v1251_v10 = vmul.f32 %v1250_v60, %v5170_v8 }
 0xc71   :  { %1253 = vrot.lane.b32.xlu1 %v1251_v10, %s3802_s12 }
 0xccd   :  { %v1243_v12 = vpop.permute.xlu0 %1242 }
 0xcce   :  { %v1245_v14 = vmul.f32 %v3677_v63, %v1243_v12 }
 0xce3   :  { %v1254_v5 = vpop.permute.xlu1 %1253 }
 0xce4   :  { %v1256_v2 = vadd.f32 %v1254_v5, %v1245_v14 }
 0xce6   :  { %3678 = vtanh.f32 %v1256_v2 }
 0xcf3   :  { %v3679_v16 = vpop.eup %3678 }
 0xcf4   :  { %1259 = vrot.lane.b32.xlu0 %v3679_v16, %s3802_s12 }
 0xd66   :  { %v1260_v56 = vpop.permute.xlu0 %1259 }
 0xd67   :  { %v1262_v35 = vmul.f32 %v3677_v63, %v1260_v56 }
 0xd69   :  { %1339 = vrot.lane.b32.xlu1 %v1262_v35, %s3801_s4 }
 0xddb   :  { %v4379_v3 = vpop.permute.xlu1 %1339 }
 0xddc   :  { %5171 = vst [vmem:[#allocation12_spill] sm:$0xff] %v4379_v3  ;;  %3547 = vmatmul.mubr.msk.f32.vlgmr.msra.gmra.mxu1 %vm103_vm0, %v4379_v3  ;;  %3551 = vmatmul.mubr.msk.f32.vlgmr.msra.gmra.mxu0 %vm103_vm0, %v4379_v3 }
 0xddd   :  { %1586 = vmatpush1.msra.mxu1 %v3939_v19  ;;  %1625 = vmatprep.mubr.f32.mxu1 %v5166_v61  ;;  %v1333_v19 = vpop.f32.mrf.mxu0 }
 0xdde   :  { %1587 = vmatprep.subr.mxu1 %v3946_v20  ;;  %1695 = vmatpush1.msra.mxu0 %v4002_v27 }
 0xddf   :  { %1588 = vmatpush1.msra.mxu1 %v3952_v21  ;;  %1696 = vmatprep.subr.mxu0 %v4009_v28 }
 0xde0   :  { %1589 = vmatprep.subr.mxu1 %v3959_v22  ;;  %1697 = vmatpush1.msra.mxu0 %v4015_v29 }
 0xde1   :  { %1590 = vmatpush1.msra.mxu1 %v3966_v23  ;;  %1698 = vmatprep.subr.mxu0 %v4021_v30 }
 0xde2   :  { %1591 = vmatprep.subr.mxu1 %v3973_v24  ;;  %1699 = vmatpush1.msra.mxu0 %v4027_v31 }
 0xde3   :  { %1592 = vmatpush1.msra.mxu1 %v3980_v25  ;;  %1700 = vmatprep.subr.mxu0 %v4033_v32 }
 0xde4   :  { %1701 = vmatpush1.msra.mxu0 %v4039_v33  ;;  %1734 = vmatprep.mubr.f32.mxu0 %v5166_v61 }
 0xde5   :  { %1770 = vmatprep.subr.mxu1 %v4081_v7  ;;  %1911 = vmatprep.subr.mxu0 %v3860_v1  ;;  %v1005_v1 = vadd.f32 %v4354_v49, %v4350_v54 }
 0xde7   :  { %v1008_v36 = vadd.f32 %v1005_v1, %v4313_v50 }
 0xde9   :  { %vm1016_vm5 = vcmp.gt.f32.partialorder %v1008_v36, 0.0 }
 0xdea   :  { %v4410_v43 = vsel %vm1016_vm5, 1.0, %v5166_v61 }
 0xdeb   :  { %v1431_v4 = vsub.f32 1.0, %v4410_v43 }
 0xded   :  { %v1438_v0 = vmul.f32 %v1437_v44, %v1431_v4  ;;  %v1441_v49 = vmul.f32 %v4359_v51, %v1431_v4 }
 0xdef   :  { %v1439_v54 = vmul.f32 %v1438_v0, %v4327_v34 }
 0xe9c   :  { %v1409_v20 = vpop.f32.mrf.mxu1 }
 0xe9d   :  { %v1410_v21 = vadd.f32 %v1409_v20, %v1333_v19 }
 0xe9f   :  { %v1414_v22 = vadd.f32 %v1410_v21, %v4190_v53 }
 0xea1   :  { %3680 = vtanh.f32 %v1414_v22  ;;  %v3548_v24 = vmul.f32 -1.442695, %v1414_v22 }
 0xea3   :  { %3682 = vpow2.f32 %v3548_v24 }
 0xeae   :  { %v3681_v23 = vpop.eup %3680 }
 0xeaf   :  { %1427 = vrot.lane.b32.xlu0 %v3681_v23, %s3801_s4 }
 0xeb0   :  { %v3683_v25 = vpop.eup %3682 }
 0xeb1   :  { %v1419_v38 = vadd.f32 1.0, %v3683_v25  ;;  %v213_v25 = vadd.f32 %v4233_v45, %v4051_v39 }
 0xeb3   :  { %3684 = vrcp.f32 %v1419_v38  ;;  %v4446_v38 = vpop.f32.mrf.mxu1 }
 0xec0   :  { %v3685_v58 = vpop.eup %3684 }
 0xec1   :  { %v1442_v63 = vmul.f32 %v3685_v58, %v4327_v34  ;;  %v1457_v34 = vmul.f32 %v1438_v0, %v4336_v52 }
 0xf21   :  { %v1428_v57 = vpop.permute.xlu0 %1427 }
 0xf22   :  { %v1430_v59 = vmul.f32 %v3685_v58, %v1428_v57  ;;  %v215_v57 = vadd.f32 %v4235_v46, %v4055_v41  ;;  %v4459_v46 = vld [vmem:[%s5131_s2 + $0x30] sm:$0xff] }
 0xf24   :  { %1433 = vrot.lane.b32.xlu1 %v1430_v59, %s3803_s7 }
 0xf96   :  { %v1434_v6 = vpop.permute.xlu1 %1433 }
 0xf97   :  { %v1436_v60 = vmul.f32 %v4410_v43, %v1434_v6  ;;  %v1443_v8 = vadd.f32 %v1442_v63, %v1434_v6 }
 0xf99   :  { %v1440_v10 = vadd.f32 %v1439_v54, %v1436_v60  ;;  %v1444_v12 = vmul.f32 %v1443_v8, %v1441_v49  ;;  %v4466_v60 = vld [vmem:[%s5131_s2 + $0x28] sm:$0xff]  ;;  %v4472_v54 = vld [vmem:[%s5131_s2 + $0x20] sm:$0xff]  ;;  %v4484_v8 = vld [vmem:[%s5131_s2 + $0x10] sm:$0xff] }
 0xf9b   :  { %v4420_v14 = vadd.f32 %v1444_v12, %v1440_v10  ;;  %v4490_v10 = vld [vmem:[%s5131_s2 + $0x8] sm:$0xff] }
 0xf9d   :  { %3686 = vtanh.f32 %v4420_v14 }
 0xfaa   :  { %v3687_v5 = vpop.eup %3686 }
 0xfab   :  { %1448 = vrot.lane.b32.xlu0 %v3687_v5, %s3801_s4  ;;  %v4496_v5 = vld [vmem:[%s5131_s2] sm:$0xff] }
 0xfaf   :  { %1650 = vrot.lane.b32.xlu0 %v1256_v2, %s3803_s7  ;;  %v4442_v2 = vpop.f32.mrf.mxu0 }
 0xfb1   :  { %v1550_v24 = vpop.f32.mrf.mxu0 }
 0xfb2   :  { %v1555_v59 = vadd.f32 %v1550_v24, %v213_v25 }
0x101d   :  { %v1449_v16 = vpop.permute.xlu0 %1448 }
0x101e   :  { %v1451_v56 = vmul.f32 %v3685_v58, %v1449_v16  ;;  %v1552_v58 = vpop.f32.mrf.mxu0 }
0x101f   :  { %v1556_v36 = vadd.f32 %v1552_v58, %v215_v57 }
0x1020   :  { %1453 = vrot.lane.b32.xlu1 %v1451_v56, %s3801_s4 }
0x1092   :  { %v1454_v35 = vpop.permute.xlu1 %1453 }
0x1093   :  { %v1456_v19 = vmul.f32 %v4410_v43, %v1454_v35  ;;  %v1459_v21 = vmul.f32 %v1454_v35, %v1441_v49  ;;  %v4478_v49 = vld [vmem:[%s5131_s2 + $0x18] sm:$0xff] }
0x1095   :  { %v1458_v20 = vadd.f32 %v1457_v34, %v1456_v19  ;;  %v1651_v34 = vpop.permute.xlu0 %1650 }
0x1097   :  { %v4428_v22 = vadd.f32 %v1459_v21, %v1458_v20 }
0x1099   :  { %v1557_v23 = vmul.f32 %v4359_v51, %v4428_v22 }
0x109b   :  { %3552 = vmatmul.mubr.msk.f32.vlgmr.msra.gmra.mxu1 %vm103_vm0, %v1557_v23 }
0x109c   :  { %1771 = vmatpush1.msra.mxu1 %v4086_v9  ;;  %1810 = vmatprep.mubr.f32.mxu1 %v5166_v61 }
0x109d   :  { %1772 = vmatprep.subr.mxu1 %v4091_v11 }
0x109e   :  { %1773 = vmatpush1.msra.mxu1 %v4097_v13 }
0x109f   :  { %1774 = vmatprep.subr.mxu1 %v4103_v15 }
0x10a0   :  { %1775 = vmatpush1.msra.mxu1 %v4110_v17 }
0x10a1   :  { %1776 = vmatprep.subr.mxu1 %v4120_v37 }
0x10a2   :  { %1777 = vmatpush1.msra.mxu1 %v4126_v40 }
0x10a3   :  { %1988 = vmatprep.subr.mxu1 %v3933_v18 }
0x115b   :  { %v1627_v1 = vpop.f32.mrf.mxu1 }
0x115c   :  { %v1632_v4 = vadd.f32 %v1627_v1, %v1555_v59  ;;  %v4525_v1 = vld [vmem:[%s5133_s3 + $0x28] sm:$0xff] }
0x115d   :  { %v1629_v0 = vpop.f32.mrf.mxu1 }
0x115e   :  { %v3553_v63 = vmul.f32 -1.442695, %v1632_v4  ;;  %3688 = vtanh.f32 %v1632_v4  ;;  %v1633_v18 = vadd.f32 %v1629_v0, %v1556_v36  ;;  %v4532_v36 = vld [vmem:[%s5133_s3 + $0x20] sm:$0xff]  ;;  %v4539_v4 = vld [vmem:[%s5133_s3 + $0x18] sm:$0xff] }
0x1160   :  { %3690 = vpow2.f32 %v3553_v63  ;;  %vm1641_vm6 = vcmp.gt.f32.partialorder %v1633_v18, 0.0 }
0x1161   :  { %v4451_v6 = vsel %vm1641_vm6, 1.0, %v5166_v61 }
0x1162   :  { %5172 = vst [vmem:[#allocation13_spill] sm:$0xff] %v4451_v6  ;;  %v1666_v45 = vmul.f32 %v4451_v6, %v4428_v22 }
0x1164   :  { %3555 = vmatmul.mubr.msk.f32.vlgmr.msra.gmra.mxu0 %vm103_vm0, %v1666_v45 }
0x1165   :  { %1912 = vmatpush1.msra.mxu0 %v4459_v46  ;;  %1951 = vmatprep.mubr.f32.mxu0 %v5166_v61 }
0x1166   :  { %1913 = vmatprep.subr.mxu0 %v4466_v60 }
0x1167   :  { %1914 = vmatpush1.msra.mxu0 %v4472_v54 }
0x1168   :  { %1915 = vmatprep.subr.mxu0 %v4478_v49 }
0x1169   :  { %1916 = vmatpush1.msra.mxu0 %v4484_v8 }
0x116a   :  { %1917 = vmatprep.subr.mxu0 %v4490_v10 }
0x116b   :  { %v3689_v12 = vpop.eup %3688  ;;  %1918 = vmatpush1.msra.mxu0 %v4496_v5 }
0x116c   :  { %1645 = vrot.lane.b32.xlu1 %v3689_v12, %s3801_s4  ;;  %2097 = vmatprep.subr.mxu0 %v3996_v26 }
0x116d   :  { %v3691_v16 = vpop.eup %3690 }
0x116e   :  { %v1637_v56 = vadd.f32 1.0, %v3691_v16 }
0x1170   :  { %3692 = vrcp.f32 %v1637_v56 }
0x117d   :  { %v3693_v35 = vpop.eup %3692 }
0x117e   :  { %v1653_v19 = vmul.f32 %v3693_v35, %v1651_v34 }
0x1180   :  { %v1654_v20 = vmul.f32 %v1653_v19, %v1437_v44  ;;  %v4518_v44 = vld [vmem:[%s5133_s3 + $0x30] sm:$0xff] }
0x1182   :  { %1656 = vrot.lane.b32.xlu0 %v1654_v20, %s3802_s12  ;;  %v1840_v20 = vsub.f32 1.0, %v4451_v6 }
0x11de   :  { %v1646_v21 = vpop.permute.xlu1 %1645 }
0x11df   :  { %v1648_v23 = vmul.f32 %v3693_v35, %v1646_v21 }
0x11f4   :  { %v1657_v24 = vpop.permute.xlu0 %1656 }
0x11f5   :  { %v4504_v25 = vadd.f32 %v1657_v24, %v1648_v23 }
0x11f7   :  { %3694 = vtanh.f32 %v4504_v25 }
0x1204   :  { %v3695_v58 = vpop.eup %3694 }
0x1205   :  { %1662 = vrot.lane.b32.xlu1 %v3695_v58, %s3802_s12 }
0x1277   :  { %v1663_v26 = vpop.permute.xlu1 %1662 }
0x1278   :  { %v1665_v57 = vmul.f32 %v3693_v35, %v1663_v26  ;;  %v1412_v35 = vadd.f32 %v4446_v38, %v4442_v2 }
0x127a   :  { %1742 = vrot.lane.b32.xlu0 %v1665_v57, %s3801_s4  ;;  %v1415_v34 = vadd.f32 %v1412_v35, %v4313_v50 }
0x127c   :  { %vm1423_vm7 = vcmp.gt.f32.partialorder %v1415_v34, 0.0 }
0x127d   :  { %v4580_v19 = vsel %vm1423_vm7, 1.0, %v5166_v61 }
0x127e   :  { %5174 = vst [vmem:[#allocation15_spill] sm:$0xff] %v4580_v19  ;;  %v1834_v21 = vsub.f32 1.0, %v4580_v19 }
0x1280   :  { %v1841_v23 = vmul.f32 %v1840_v20, %v1834_v21  ;;  %v1844_v2 = vmul.f32 %v4451_v6, %v1834_v21 }
0x1282   :  { %v1842_v26 = vmul.f32 %v1841_v23, %v4420_v14 }
0x12ec   :  { %v4509_v59 = vpop.permute.xlu0 %1742 }
0x12ed   :  { %5173 = vst [vmem:[#allocation14_spill] sm:$0xff] %v4509_v59  ;;  %3556 = vmatmul.mubr.msk.f32.vlgmr.msra.gmra.mxu1 %vm103_vm0, %v4509_v59  ;;  %3560 = vmatmul.mubr.msk.f32.vlgmr.msra.gmra.mxu0 %vm103_vm0, %v4509_v59 }
0x12ee   :  { %1989 = vmatpush1.msra.mxu1 %v4518_v44  ;;  %2028 = vmatprep.mubr.f32.mxu1 %v5166_v61 }
0x12ef   :  { %1990 = vmatprep.subr.mxu1 %v4525_v1  ;;  %2098 = vmatpush1.msra.mxu0 %v4002_v27  ;;  %v4546_v27 = vld [vmem:[%s5133_s3 + $0x10] sm:$0xff] }
0x12f0   :  { %1991 = vmatpush1.msra.mxu1 %v4532_v36  ;;  %2099 = vmatprep.subr.mxu0 %v4009_v28  ;;  %v4553_v28 = vld [vmem:[%s5133_s3 + $0x8] sm:$0xff] }
0x12f1   :  { %1992 = vmatprep.subr.mxu1 %v4539_v4  ;;  %2100 = vmatpush1.msra.mxu0 %v4015_v29  ;;  %v4560_v29 = vld [vmem:[%s5133_s3] sm:$0xff] }
0x12f2   :  { %1993 = vmatpush1.msra.mxu1 %v4546_v27  ;;  %2101 = vmatprep.subr.mxu0 %v4021_v30  ;;  %v4570_v30 = vld [vmem:[%s5131_s2 + $0x38] sm:$0xff] }
0x12f3   :  { %1994 = vmatprep.subr.mxu1 %v4553_v28  ;;  %2102 = vmatpush1.msra.mxu0 %v4027_v31  ;;  %v1736_v31 = vpop.f32.mrf.mxu0 }
0x12f4   :  { %1995 = vmatpush1.msra.mxu1 %v4560_v29  ;;  %2103 = vmatprep.subr.mxu0 %v4033_v32 }
0x12f5   :  { %2104 = vmatpush1.msra.mxu0 %v4039_v33  ;;  %2137 = vmatprep.mubr.f32.mxu0 %v5166_v61 }
0x12f6   :  { %2173 = vmatprep.subr.mxu1 %v4081_v7  ;;  %2314 = vmatprep.subr.mxu0 %v4570_v30 }
0x13ad   :  { %v1812_v0 = vpop.f32.mrf.mxu1 }
0x13ae   :  { %v1813_v63 = vadd.f32 %v1812_v0, %v1736_v31 }
0x13b0   :  { %v1817_v18 = vadd.f32 %v1813_v63, %v4190_v53 }
0x13b2   :  { %3696 = vtanh.f32 %v1817_v18  ;;  %v3557_v33 = vmul.f32 -1.442695, %v1817_v18 }
0x13b4   :  { %3698 = vpow2.f32 %v3557_v33 }
0x13bf   :  { %v3697_v32 = vpop.eup %3696 }
0x13c0   :  { %1830 = vrot.lane.b32.xlu1 %v3697_v32, %s3801_s4 }
0x13c1   :  { %v3699_v45 = vpop.eup %3698 }
0x13c2   :  { %v1822_v7 = vadd.f32 1.0, %v3699_v45  ;;  %v1860_v45 = vmul.f32 %v1841_v23, %v4428_v22 }
0x13c4   :  { %3700 = vrcp.f32 %v1822_v7 }
0x13d1   :  { %v3701_v12 = vpop.eup %3700 }
0x13d2   :  { %v1845_v24 = vmul.f32 %v3701_v12, %v4420_v14 }
0x1432   :  { %v1831_v16 = vpop.permute.xlu1 %1830 }
0x1433   :  { %v1833_v56 = vmul.f32 %v3701_v12, %v1831_v16 }
0x1435   :  { %1836 = vrot.lane.b32.xlu0 %v1833_v56, %s3803_s7 }
0x14a7   :  { %v1837_v58 = vpop.permute.xlu0 %1836 }
0x14a8   :  { %v1839_v38 = vmul.f32 %v4580_v19, %v1837_v58  ;;  %v1846_v57 = vadd.f32 %v1845_v24, %v1837_v58 }
0x14aa   :  { %v1843_v31 = vadd.f32 %v1842_v26, %v1839_v38  ;;  %v1847_v0 = vmul.f32 %v1846_v57, %v1844_v2  ;;  %v4644_v38 = vld [vmem:[%s5134_s6 + $0x38] sm:$0xff] }
0x14ac   :  { %v4590_v63 = vadd.f32 %v1847_v0, %v1843_v31 }
0x14ae   :  { %3702 = vtanh.f32 %v4590_v63 }
0x14bb   :  { %v3703_v18 = vpop.eup %3702 }
0x14bc   :  { %1851 = vrot.lane.b32.xlu1 %v3703_v18, %s3801_s4 }
0x14c0   :  { %2053 = vrot.lane.b32.xlu1 %v4504_v25, %s3803_s7  ;;  %v4615_v25 = vld [vmem:[%s5133_s3 + $0x38] sm:$0xff] }
0x152e   :  { %v1852_v32 = vpop.permute.xlu1 %1851 }
0x152f   :  { %v1854_v33 = vmul.f32 %v3701_v12, %v1852_v32 }
0x1531   :  { %1856 = vrot.lane.b32.xlu0 %v1854_v33, %s3801_s4 }
0x1532   :  { %v2054_v18 = vpop.permute.xlu1 %2053 }
0x15a3   :  { %v1857_v14 = vpop.permute.xlu0 %1856 }
0x15a4   :  { %v1859_v7 = vmul.f32 %v4580_v19, %v1857_v14  ;;  %v1862_v56 = vmul.f32 %v1857_v14, %v1844_v2 }
0x15a6   :  { %v1861_v16 = vadd.f32 %v1860_v45, %v1859_v7 }
0x15a8   :  { %v4599_v35 = vadd.f32 %v1862_v56, %v1861_v16 }
0x15aa   :  { %v1960_v34 = vmul.f32 %v4451_v6, %v4599_v35 }
0x15ac   :  { %3561 = vmatmul.mubr.msk.f32.vlgmr.msra.gmra.mxu1 %vm103_vm0, %v1960_v34 }
0x15ad   :  { %2174 = vmatpush1.msra.mxu1 %v4086_v9  ;;  %2213 = vmatprep.mubr.f32.mxu1 %v5166_v61  ;;  %v4618_v9 = vpop.f32.mrf.mxu0 }
0x15ae   :  { %2175 = vmatprep.subr.mxu1 %v4091_v11 }
0x15af   :  { %2176 = vmatpush1.msra.mxu1 %v4097_v13  ;;  %v1953_v11 = vpop.f32.mrf.mxu0  ;;  %v219_v13 = vadd.f32 %v4237_v47, %v4051_v39 }
0x15b0   :  { %2177 = vmatprep.subr.mxu1 %v4103_v15  ;;  %v4622_v15 = vpop.f32.mrf.mxu1 }
0x15b1   :  { %2178 = vmatpush1.msra.mxu1 %v4110_v17  ;;  %v1955_v17 = vpop.f32.mrf.mxu0 }
0x15b2   :  { %2179 = vmatprep.subr.mxu1 %v4120_v37  ;;  %v221_v37 = vadd.f32 %v4239_v48, %v4055_v41 }
0x15b3   :  { %2180 = vmatpush1.msra.mxu1 %v4126_v40  ;;  %v1958_v40 = vadd.f32 %v1953_v11, %v219_v13 }
0x15b4   :  { %2391 = vmatprep.subr.mxu1 %v4615_v25  ;;  %v1959_v21 = vadd.f32 %v1955_v17, %v221_v37  ;;  %v4674_v17 = vld [vmem:[%s5134_s6 + $0x28] sm:$0xff]  ;;  %v4681_v37 = vld [vmem:[%s5134_s6 + $0x20] sm:$0xff] }
0x166c   :  { %v2030_v12 = vpop.f32.mrf.mxu1 }
0x166d   :  { %v2035_v23 = vadd.f32 %v2030_v12, %v1958_v40  ;;  %v4688_v40 = vld [vmem:[%s5134_s6 + $0x18] sm:$0xff]  ;;  %v4695_v12 = vld [vmem:[%s5134_s6 + $0x10] sm:$0xff] }
0x166e   :  { %v2032_v24 = vpop.f32.mrf.mxu1 }
0x166f   :  { %v3562_v58 = vmul.f32 -1.442695, %v2035_v23  ;;  %3704 = vtanh.f32 %v2035_v23  ;;  %v2036_v26 = vadd.f32 %v2032_v24, %v1959_v21  ;;  %v4702_v21 = vld [vmem:[%s5134_s6 + $0x8] sm:$0xff]  ;;  %v4708_v23 = vld [vmem:[%s5134_s6] sm:$0xff]  ;;  %v4715_v24 = vld [vmem:[%s5136_s5 + $0x38] sm:$0xff] }
0x1671   :  { %3706 = vpow2.f32 %v3562_v58  ;;  %vm2044_vm8 = vcmp.gt.f32.partialorder %v2036_v26, 0.0 }
0x1672   :  { %v4627_v2 = vsel %vm2044_vm8, 1.0, %v5166_v61 }
0x1673   :  { %v2069_v47 = vmul.f32 %v4627_v2, %v4599_v35 }
0x1675   :  { %3564 = vmatmul.mubr.msk.f32.vlgmr.msra.gmra.mxu0 %vm103_vm0, %v2069_v47 }
0x1676   :  { %2315 = vmatpush1.msra.mxu0 %v4459_v46  ;;  %2354 = vmatprep.mubr.f32.mxu0 %v5166_v61 }
0x1677   :  { %2316 = vmatprep.subr.mxu0 %v4466_v60 }
0x1678   :  { %2317 = vmatpush1.msra.mxu0 %v4472_v54 }
0x1679   :  { %2318 = vmatprep.subr.mxu0 %v4478_v49 }
0x167a   :  { %2319 = vmatpush1.msra.mxu0 %v4484_v8 }
0x167b   :  { %2320 = vmatprep.subr.mxu0 %v4490_v10 }
0x167c   :  { %v3705_v48 = vpop.eup %3704  ;;  %2321 = vmatpush1.msra.mxu0 %v4496_v5 }
0x167d   :  { %2048 = vrot.lane.b32.xlu0 %v3705_v48, %s3801_s4  ;;  %2500 = vmatprep.subr.mxu0 %v4644_v38 }
0x167e   :  { %v3707_v57 = vpop.eup %3706 }
0x167f   :  { %v2040_v31 = vadd.f32 1.0, %v3707_v57 }
0x1681   :  { %3708 = vrcp.f32 %v2040_v31 }
0x168e   :  { %v3709_v0 = vpop.eup %3708 }
0x168f   :  { %v2056_v32 = vmul.f32 %v3709_v0, %v2054_v18 }
0x1691   :  { %v2057_v33 = vmul.f32 %v2056_v32, %v1840_v20  ;;  %v4667_v20 = vld [vmem:[%s5134_s6 + $0x30] sm:$0xff] }
0x1693   :  { %2059 = vrot.lane.b32.xlu1 %v2057_v33, %s3802_s12 }
0x16ef   :  { %v2049_v14 = vpop.permute.xlu0 %2048 }
0x16f0   :  { %v2051_v45 = vmul.f32 %v3709_v0, %v2049_v14 }
0x1705   :  { %v2060_v7 = vpop.permute.xlu1 %2059 }
0x1706   :  { %v4650_v16 = vadd.f32 %v2060_v7, %v2051_v45  ;;  %v1815_v45 = vadd.f32 %v4622_v15, %v4618_v9 }
0x1708   :  { %3710 = vtanh.f32 %v4650_v16  ;;  %v1818_v7 = vadd.f32 %v1815_v45, %v4313_v50 }
0x170a   :  { %vm1826_vm9 = vcmp.gt.f32.partialorder %v1818_v7, 0.0 }
0x1715   :  { %v3711_v56 = vpop.eup %3710 }
0x1716   :  { %2065 = vrot.lane.b32.xlu0 %v3711_v56, %s3802_s12  ;;  %v4726_v56 = vsel %vm1826_vm9, 1.0, %v5166_v61 }
0x1717   :  { %5176 = vst [vmem:[#allocation17_spill] sm:$0xff] %v4726_v56 }
0x1735   :  { %v2139_v58 = vpop.f32.mrf.mxu0 }
0x1788   :  { %v2066_v34 = vpop.permute.xlu0 %2065 }
0x1789   :  { %v2068_v11 = vmul.f32 %v3709_v0, %v2066_v34  ;;  %v5149_v34 = vsub.f32 1.0, %v4627_v2 }
0x178b   :  { %2145 = vrot.lane.b32.xlu1 %v2068_v11, %s3801_s4  ;;  %v2237_v11 = vsub.f32 1.0, %v4726_v56 }
0x178d   :  { %v2247_v9 = vmul.f32 %v4627_v2, %v2237_v11 }
0x17fd   :  { %v4655_v13 = vpop.permute.xlu1 %2145 }
0x17fe   :  { %5175 = vst [vmem:[#allocation16_spill] sm:$0xff] %v4655_v13  ;;  %3565 = vmatmul.mubr.msk.f32.vlgmr.msra.gmra.mxu1 %vm103_vm0, %v4655_v13  ;;  %3569 = vmatmul.mubr.msk.f32.vlgmr.msra.gmra.mxu0 %vm103_vm0, %v4655_v13 }
0x17ff   :  { %2392 = vmatpush1.msra.mxu1 %v4518_v44  ;;  %2431 = vmatprep.mubr.f32.mxu1 %v5166_v61 }
0x1800   :  { %2393 = vmatprep.subr.mxu1 %v4525_v1  ;;  %2501 = vmatpush1.msra.mxu0 %v4667_v20 }
0x1801   :  { %2394 = vmatpush1.msra.mxu1 %v4532_v36  ;;  %2502 = vmatprep.subr.mxu0 %v4674_v17 }
0x1802   :  { %2395 = vmatprep.subr.mxu1 %v4539_v4  ;;  %2503 = vmatpush1.msra.mxu0 %v4681_v37 }
0x1803   :  { %2396 = vmatpush1.msra.mxu1 %v4546_v27  ;;  %2504 = vmatprep.subr.mxu0 %v4688_v40 }
0x1804   :  { %2397 = vmatprep.subr.mxu1 %v4553_v28  ;;  %2505 = vmatpush1.msra.mxu0 %v4695_v12 }
0x1805   :  { %2398 = vmatpush1.msra.mxu1 %v4560_v29  ;;  %2506 = vmatprep.subr.mxu0 %v4702_v21 }
0x1806   :  { %2507 = vmatpush1.msra.mxu0 %v4708_v23  ;;  %2540 = vmatprep.mubr.f32.mxu0 %v5166_v61 }
0x1807   :  { %2576 = vmatprep.subr.mxu1 %v4715_v24  ;;  %2717 = vmatprep.subr.mxu0 %v4570_v30 }
0x18be   :  { %v2215_v26 = vpop.f32.mrf.mxu1 }
0x18bf   :  { %v2216_v47 = vadd.f32 %v2215_v26, %v2139_v58  ;;  %v2244_v58 = vmul.f32 %v5149_v34, %v2237_v11 }
0x18c1   :  { %v2220_v48 = vadd.f32 %v2216_v47, %v4190_v53  ;;  %v2263_v7 = vmul.f32 %v2244_v58, %v4599_v35 }
0x18c3   :  { %3712 = vtanh.f32 %v2220_v48  ;;  %v3566_v31 = vmul.f32 -1.442695, %v2220_v48  ;;  %v2245_v48 = vmul.f32 %v2244_v58, %v4590_v63  ;;  %v4766_v58 = vld [vmem:[%s5136_s5 + $0x20] sm:$0xff] }
0x18c5   :  { %3714 = vpow2.f32 %v3566_v31 }
0x18d0   :  { %v3713_v57 = vpop.eup %3712 }
0x18d1   :  { %2233 = vrot.lane.b32.xlu0 %v3713_v57, %s3801_s4 }
0x18d2   :  { %v3715_v0 = vpop.eup %3714 }
0x18d3   :  { %v2225_v18 = vadd.f32 1.0, %v3715_v0 }
0x18d5   :  { %3716 = vrcp.f32 %v2225_v18 }
0x18e2   :  { %v3717_v32 = vpop.eup %3716 }
0x18e3   :  { %v2248_v26 = vmul.f32 %v3717_v32, %v4590_v63 }
0x1943   :  { %v2234_v33 = vpop.permute.xlu0 %2233 }
0x1944   :  { %v2236_v14 = vmul.f32 %v3717_v32, %v2234_v33 }
0x1946   :  { %2239 = vrot.lane.b32.xlu1 %v2236_v14, %s3803_s7 }
0x19b8   :  { %v2240_v47 = vpop.permute.xlu1 %2239 }
0x19b9   :  { %v2242_v15 = vmul.f32 %v4726_v56, %v2240_v47  ;;  %v2249_v57 = vadd.f32 %v2248_v26, %v2240_v47 }
0x19bb   :  { %v2246_v31 = vadd.f32 %v2245_v48, %v2242_v15  ;;  %v2250_v0 = vmul.f32 %v2249_v57, %v2247_v9  ;;  %v4778_v57 = vld [vmem:[%s5136_s5 + $0x10] sm:$0xff] }
0x19bd   :  { %v4736_v18 = vadd.f32 %v2250_v0, %v2246_v31  ;;  %v4784_v31 = vld [vmem:[%s5136_s5 + $0x8] sm:$0xff]  ;;  %v4790_v0 = vld [vmem:[%s5136_s5] sm:$0xff] }
0x19bf   :  { %3718 = vtanh.f32 %v4736_v18 }
0x19cc   :  { %v3719_v33 = vpop.eup %3718 }
0x19cd   :  { %2254 = vrot.lane.b32.xlu0 %v3719_v33, %s3801_s4  ;;  %v4794_v33 = vpop.f32.mrf.mxu0 }
0x19d1   :  { %2456 = vrot.lane.b32.xlu0 %v4650_v16, %s3803_s7  ;;  %v4753_v16 = vld [vmem:[%s5136_s5 + $0x30] sm:$0xff] }
0x1a3f   :  { %v2255_v14 = vpop.permute.xlu0 %2254 }
0x1a40   :  { %v2257_v45 = vmul.f32 %v3717_v32, %v2255_v14  ;;  %v4760_v32 = vld [vmem:[%s5136_s5 + $0x28] sm:$0xff]  ;;  %v2356_v14 = vpop.f32.mrf.mxu0 }
0x1a42   :  { %2259 = vrot.lane.b32.xlu1 %v2257_v45, %s3801_s4  ;;  %v225_v45 = vadd.f32 %v4241_v55, %v4051_v39 }
0x1ab4   :  { %v2260_v63 = vpop.permute.xlu1 %2259 }
0x1ab5   :  { %v2262_v11 = vmul.f32 %v4726_v56, %v2260_v63  ;;  %v2265_v47 = vmul.f32 %v2260_v63, %v2247_v9  ;;  %v4772_v9 = vld [vmem:[%s5136_s5 + $0x18] sm:$0xff]  ;;  %v4798_v63 = vpop.f32.mrf.mxu1 }
0x1ab7   :  { %v2264_v26 = vadd.f32 %v2263_v7, %v2262_v11  ;;  %v2358_v7 = vpop.f32.mrf.mxu0  ;;  %v5177_v11 = vld [vmem:[#allocation6_spill] sm:$0xff] }
0x1ab9   :  { %v4745_v48 = vadd.f32 %v2265_v47, %v2264_v26  ;;  %v227_v26 = vadd.f32 %v5177_v11, %v4055_v41  ;;  %v2361_v47 = vadd.f32 %v2356_v14, %v225_v45  ;;  %v5178_v45 = vsub.f32 1.0, %v4627_v2 }
0x1abb   :  { %v2363_v15 = vmul.f32 %v4627_v2, %v4745_v48  ;;  %v2362_v34 = vadd.f32 %v2358_v7, %v227_v26 }
0x1abd   :  { %3570 = vmatmul.mubr.msk.f32.vlgmr.msra.gmra.mxu1 %vm103_vm0, %v2363_v15 }
0x1abe   :  { %2577 = vmatpush1.msra.mxu1 %v4753_v16  ;;  %2616 = vmatprep.mubr.f32.mxu1 %v5166_v61 }
0x1abf   :  { %2578 = vmatprep.subr.mxu1 %v4760_v32 }
0x1ac0   :  { %2579 = vmatpush1.msra.mxu1 %v4766_v58 }
0x1ac1   :  { %2580 = vmatprep.subr.mxu1 %v4772_v9 }
0x1ac2   :  { %2581 = vmatpush1.msra.mxu1 %v4778_v57 }
0x1ac3   :  { %2582 = vmatprep.subr.mxu1 %v4784_v31 }
0x1ac4   :  { %2583 = vmatpush1.msra.mxu1 %v4790_v0 }
0x1ac5   :  { %2794 = vmatprep.subr.mxu1 %v4615_v25 }
0x1b7d   :  { %v2433_v15 = vpop.f32.mrf.mxu1 }
0x1b7e   :  { %v2438_v59 = vadd.f32 %v2433_v15, %v2361_v47 }
0x1b7f   :  { %v2435_v3 = vpop.f32.mrf.mxu1 }
0x1b80   :  { %v3571_v13 = vmul.f32 -1.442695, %v2438_v59  ;;  %3720 = vtanh.f32 %v2438_v59  ;;  %v2439_v56 = vadd.f32 %v2435_v3, %v2362_v34  ;;  %v2457_v34 = vpop.permute.xlu0 %2456 }
0x1b82   :  { %3722 = vpow2.f32 %v3571_v13  ;;  %vm2447_vm10 = vcmp.gt.f32.partialorder %v2439_v56, 0.0 }
0x1b83   :  { %v4803_v19 = vsel %vm2447_vm10, 1.0, %v5166_v61 }
0x1b84   :  { %v2472_v55 = vmul.f32 %v4803_v19, %v4745_v48 }
0x1b86   :  { %3573 = vmatmul.mubr.msk.f32.vlgmr.msra.gmra.mxu0 %vm103_vm0, %v2472_v55 }
0x1b87   :  { %2718 = vmatpush1.msra.mxu0 %v4459_v46  ;;  %2757 = vmatprep.mubr.f32.mxu0 %v5166_v61 }
0x1b88   :  { %2719 = vmatprep.subr.mxu0 %v4466_v60 }
0x1b89   :  { %2720 = vmatpush1.msra.mxu0 %v4472_v54 }
0x1b8a   :  { %2721 = vmatprep.subr.mxu0 %v4478_v49 }
0x1b8b   :  { %2722 = vmatpush1.msra.mxu0 %v4484_v8 }
0x1b8c   :  { %2723 = vmatprep.subr.mxu0 %v4490_v10 }
0x1b8d   :  { %v3721_v3 = vpop.eup %3720  ;;  %2724 = vmatpush1.msra.mxu0 %v4496_v5 }
0x1b8e   :  { %2451 = vrot.lane.b32.xlu1 %v3721_v3, %s3801_s4  ;;  %2903 = vmatprep.subr.mxu0 %v4644_v38 }
0x1b8f   :  { %v3723_v59 = vpop.eup %3722 }
0x1b90   :  { %v2443_v13 = vadd.f32 1.0, %v3723_v59 }
0x1b92   :  { %3724 = vrcp.f32 %v2443_v13 }
0x1b9f   :  { %v3725_v56 = vpop.eup %3724 }
0x1ba0   :  { %v2459_v14 = vmul.f32 %v3725_v56, %v2457_v34 }
0x1ba2   :  { %v2460_v7 = vmul.f32 %v2459_v14, %v5178_v45 }
0x1ba4   :  { %2462 = vrot.lane.b32.xlu0 %v2460_v7, %s3802_s12 }
0x1c00   :  { %v2452_v11 = vpop.permute.xlu1 %2451 }
0x1c01   :  { %v2454_v26 = vmul.f32 %v3725_v56, %v2452_v11 }
0x1c16   :  { %v2463_v47 = vpop.permute.xlu0 %2462 }
0x1c17   :  { %v2465_v15 = vadd.f32 %v2463_v47, %v2454_v26 }
0x1c19   :  { %3726 = vtanh.f32 %v2465_v15 }
0x1c26   :  { %v3727_v55 = vpop.eup %3726 }
0x1c27   :  { %2468 = vrot.lane.b32.xlu1 %v3727_v55, %s3802_s12 }
0x1c99   :  { %v2469_v3 = vpop.permute.xlu1 %2468 }
0x1c9a   :  { %v2471_v6 = vmul.f32 %v3725_v56, %v2469_v3 }
0x1c9c   :  { %2548 = vrot.lane.b32.xlu0 %v2471_v6, %s3801_s4  ;;  %v2542_v6 = vpop.f32.mrf.mxu0 }
0x1d0e   :  { %v4823_v59 = vpop.permute.xlu0 %2548 }
0x1d0f   :  { %5179 = vst [vmem:[#allocation6_spill] sm:$0xff] %v4823_v59  ;;  %3574 = vmatmul.mubr.msk.f32.vlgmr.msra.gmra.mxu1 %vm103_vm0, %v4823_v59  ;;  %3578 = vmatmul.mubr.msk.f32.vlgmr.msra.gmra.mxu0 %vm103_vm0, %v4823_v59 }
0x1d10   :  { %2795 = vmatpush1.msra.mxu1 %v4518_v44  ;;  %2834 = vmatprep.mubr.f32.mxu1 %v5166_v61 }
0x1d11   :  { %2796 = vmatprep.subr.mxu1 %v4525_v1  ;;  %2904 = vmatpush1.msra.mxu0 %v4667_v20 }
0x1d12   :  { %2797 = vmatpush1.msra.mxu1 %v4532_v36  ;;  %2905 = vmatprep.subr.mxu0 %v4674_v17 }
0x1d13   :  { %2798 = vmatprep.subr.mxu1 %v4539_v4  ;;  %2906 = vmatpush1.msra.mxu0 %v4681_v37 }
0x1d14   :  { %2799 = vmatpush1.msra.mxu1 %v4546_v27  ;;  %2907 = vmatprep.subr.mxu0 %v4688_v40 }
0x1d15   :  { %2800 = vmatprep.subr.mxu1 %v4553_v28  ;;  %2908 = vmatpush1.msra.mxu0 %v4695_v12 }
0x1d16   :  { %2801 = vmatpush1.msra.mxu1 %v4560_v29  ;;  %2909 = vmatprep.subr.mxu0 %v4702_v21 }
0x1d17   :  { %2910 = vmatpush1.msra.mxu0 %v4708_v23  ;;  %2943 = vmatprep.mubr.f32.mxu0 %v5166_v61 }
0x1d18   :  { %2979 = vmatprep.subr.mxu1 %v4715_v24  ;;  %3120 = vmatprep.subr.mxu0 %v4570_v30  ;;  %v2218_v30 = vadd.f32 %v4798_v63, %v4794_v33 }
0x1d1a   :  { %v2221_v3 = vadd.f32 %v2218_v30, %v4313_v50 }
0x1d1c   :  { %vm2229_vm11 = vcmp.gt.f32.partialorder %v2221_v3, 0.0 }
0x1dcf   :  { %v2618_v13 = vpop.f32.mrf.mxu1 }
0x1dd0   :  { %v2619_v56 = vadd.f32 %v2618_v13, %v2542_v6  ;;  %v4854_v6 = vsel %vm2229_vm11, 1.0, %v5166_v61  ;;  %v5156_v13 = vsub.f32 1.0, %v4803_v19 }
0x1dd2   :  { %v2623_v34 = vadd.f32 %v2619_v56, %v4190_v53  ;;  %v2640_v56 = vsub.f32 1.0, %v4854_v6 }
0x1dd4   :  { %3728 = vtanh.f32 %v2623_v34  ;;  %v3575_v45 = vmul.f32 -1.442695, %v2623_v34  ;;  %v2647_v34 = vmul.f32 %v5156_v13, %v2640_v56  ;;  %v2650_v33 = vmul.f32 %v4803_v19, %v2640_v56 }
0x1dd6   :  { %3730 = vpow2.f32 %v3575_v45  ;;  %v2666_v56 = vmul.f32 %v2647_v34, %v4745_v48 }
0x1de1   :  { %v3729_v14 = vpop.eup %3728 }
0x1de2   :  { %2636 = vrot.lane.b32.xlu1 %v3729_v14, %s3801_s4 }
0x1de3   :  { %v3731_v7 = vpop.eup %3730 }
0x1de4   :  { %v2628_v11 = vadd.f32 1.0, %v3731_v7  ;;  %v2648_v7 = vmul.f32 %v2647_v34, %v4736_v18  ;;  %v4890_v34 = vpop.f32.mrf.mxu1 }
0x1de6   :  { %3732 = vrcp.f32 %v2628_v11 }
0x1df3   :  { %v3733_v26 = vpop.eup %3732 }
0x1df4   :  { %v2651_v14 = vmul.f32 %v3733_v26, %v4736_v18 }
0x1e54   :  { %v2637_v47 = vpop.permute.xlu1 %2636 }
0x1e55   :  { %v2639_v55 = vmul.f32 %v3733_v26, %v2637_v47 }
0x1e57   :  { %2642 = vrot.lane.b32.xlu0 %v2639_v55, %s3803_s7 }
0x1ec9   :  { %v2643_v45 = vpop.permute.xlu0 %2642 }
0x1eca   :  { %v2645_v63 = vmul.f32 %v4854_v6, %v2643_v45  ;;  %v2652_v11 = vadd.f32 %v2651_v14, %v2643_v45 }
0x1ecc   :  { %v2649_v47 = vadd.f32 %v2648_v7, %v2645_v63  ;;  %v2653_v55 = vmul.f32 %v2652_v11, %v2650_v33 }
0x1ece   :  { %v4864_v30 = vadd.f32 %v2653_v55, %v2649_v47  ;;  %v5181_v47 = vld [vmem:[#allocation8_spill] sm:$0xff] }
0x1ecf   :  { %v233_v55 = vadd.f32 %v5181_v47, %v4055_v41 }
0x1ed0   :  { %3734 = vtanh.f32 %v4864_v30 }
0x1edd   :  { %v3735_v3 = vpop.eup %3734 }
0x1ede   :  { %2657 = vrot.lane.b32.xlu1 %v3735_v3, %s3801_s4 }
0x1ee2   :  { %2859 = vrot.lane.b32.xlu1 %v2465_v15, %s3803_s7  ;;  %v4886_v15 = vpop.f32.mrf.mxu0 }
0x1f50   :  { %v2658_v13 = vpop.permute.xlu1 %2657 }
0x1f51   :  { %v2660_v59 = vmul.f32 %v3733_v26, %v2658_v13  ;;  %v5180_v26 = vld [vmem:[#allocation7_spill] sm:$0xff] }
0x1f52   :  { %v231_v13 = vadd.f32 %v5180_v26, %v4051_v39 }
0x1f53   :  { %2662 = vrot.lane.b32.xlu0 %v2660_v59, %s3801_s4  ;;  %v2759_v59 = vpop.f32.mrf.mxu0 }
0x1f54   :  { %v2764_v3 = vadd.f32 %v2759_v59, %v231_v13 }
0x1fc5   :  { %v2663_v18 = vpop.permute.xlu0 %2662 }
0x1fc6   :  { %v2665_v14 = vmul.f32 %v4854_v6, %v2663_v18  ;;  %v2668_v7 = vmul.f32 %v2663_v18, %v2650_v33  ;;  %v2761_v33 = vpop.f32.mrf.mxu0 }
0x1fc8   :  { %v2667_v45 = vadd.f32 %v2666_v56, %v2665_v14  ;;  %v2765_v56 = vadd.f32 %v2761_v33, %v233_v55 }
0x1fca   :  { %v4872_v63 = vadd.f32 %v2668_v7, %v2667_v45 }
0x1fcc   :  { %v2766_v11 = vmul.f32 %v4803_v19, %v4872_v63 }
0x1fce   :  { %3579 = vmatmul.mubr.msk.f32.vlgmr.msra.gmra.mxu1 %vm103_vm0, %v2766_v11 }
0x1fcf   :  { %2980 = vmatpush1.msra.mxu1 %v4753_v16  ;;  %3019 = vmatprep.mubr.f32.mxu1 %v5166_v61 }
0x1fd0   :  { %2981 = vmatprep.subr.mxu1 %v4760_v32 }
0x1fd1   :  { %2982 = vmatpush1.msra.mxu1 %v4766_v58 }
0x1fd2   :  { %2983 = vmatprep.subr.mxu1 %v4772_v9 }
0x1fd3   :  { %2984 = vmatpush1.msra.mxu1 %v4778_v57 }
0x1fd4   :  { %2985 = vmatprep.subr.mxu1 %v4784_v31 }
0x1fd5   :  { %2986 = vmatpush1.msra.mxu1 %v4790_v0 }
0x1fd6   :  { %3197 = vmatprep.subr.mxu1 %v4615_v25 }
0x208e   :  { %v2836_v18 = vpop.f32.mrf.mxu1 }
0x208f   :  { %v2841_v14 = vadd.f32 %v2836_v18, %v2764_v3 }
0x2090   :  { %v2838_v45 = vpop.f32.mrf.mxu1 }
0x2091   :  { %v3580_v7 = vmul.f32 -1.442695, %v2841_v14  ;;  %3736 = vtanh.f32 %v2841_v14  ;;  %v2842_v25 = vadd.f32 %v2838_v45, %v2765_v56 }
0x2093   :  { %3738 = vpow2.f32 %v3580_v7  ;;  %vm2850_vm12 = vcmp.gt.f32.partialorder %v2842_v25, 0.0 }
0x2094   :  { %v4895_v11 = vsel %vm2850_vm12, 1.0, %v5166_v61 }
0x2095   :  { %v2875_v26 = vmul.f32 %v4895_v11, %v4872_v63 }
0x2097   :  { %3582 = vmatmul.mubr.msk.f32.vlgmr.msra.gmra.mxu0 %vm103_vm0, %v2875_v26 }
0x2098   :  { %3121 = vmatpush1.msra.mxu0 %v4459_v46  ;;  %3160 = vmatprep.mubr.f32.mxu0 %v5166_v61 }
0x2099   :  { %3122 = vmatprep.subr.mxu0 %v4466_v60  ;;  %v2860_v60 = vpop.permute.xlu1 %2859 }
0x209a   :  { %3123 = vmatpush1.msra.mxu0 %v4472_v54  ;;  %v5182_v54 = vsub.f32 1.0, %v4803_v19 }
0x209b   :  { %3124 = vmatprep.subr.mxu0 %v4478_v49 }
0x209c   :  { %3125 = vmatpush1.msra.mxu0 %v4484_v8 }
0x209d   :  { %3126 = vmatprep.subr.mxu0 %v4490_v10 }
0x209e   :  { %v3737_v59 = vpop.eup %3736  ;;  %3127 = vmatpush1.msra.mxu0 %v4496_v5 }
0x209f   :  { %2854 = vrot.lane.b32.xlu0 %v3737_v59, %s3801_s4  ;;  %3306 = vmatprep.subr.mxu0 %v4644_v38 }
0x20a0   :  { %v3739_v46 = vpop.eup %3738 }
0x20a1   :  { %v2846_v13 = vadd.f32 1.0, %v3739_v46 }
0x20a3   :  { %3740 = vrcp.f32 %v2846_v13 }
0x20b0   :  { %v3741_v33 = vpop.eup %3740 }
0x20b1   :  { %v2862_v47 = vmul.f32 %v3741_v33, %v2860_v60 }
0x20b3   :  { %v2863_v49 = vmul.f32 %v2862_v47, %v5182_v54 }
0x20b5   :  { %2865 = vrot.lane.b32.xlu1 %v2863_v49, %s3802_s12 }
0x2111   :  { %v2855_v8 = vpop.permute.xlu0 %2854 }
0x2112   :  { %v2857_v10 = vmul.f32 %v3741_v33, %v2855_v8 }
0x2127   :  { %v2866_v55 = vpop.permute.xlu1 %2865 }
0x2128   :  { %v2868_v3 = vadd.f32 %v2866_v55, %v2857_v10 }
0x212a   :  { %3742 = vtanh.f32 %v2868_v3 }
0x2137   :  { %v3743_v5 = vpop.eup %3742 }
0x2138   :  { %2871 = vrot.lane.b32.xlu0 %v3743_v5, %s3802_s12 }
0x21aa   :  { %v2872_v38 = vpop.permute.xlu0 %2871 }
0x21ab   :  { %v2874_v18 = vmul.f32 %v3741_v33, %v2872_v38 }
0x21ad   :  { %2951 = vrot.lane.b32.xlu1 %v2874_v18, %s3801_s4 }
0x221f   :  { %v4915_v56 = vpop.permute.xlu1 %2951 }
0x2220   :  { %3583 = vmatmul.mubr.msk.f32.vlgmr.msra.gmra.mxu1 %vm103_vm0, %v4915_v56  ;;  %3587 = vmatmul.mubr.msk.f32.vlgmr.msra.gmra.mxu0 %vm103_vm0, %v4915_v56 }
0x2221   :  { %3198 = vmatpush1.msra.mxu1 %v4518_v44  ;;  %3237 = vmatprep.mubr.f32.mxu1 %v5166_v61  ;;  %v2945_v44 = vpop.f32.mrf.mxu0 }
0x2222   :  { %3199 = vmatprep.subr.mxu1 %v4525_v1  ;;  %3307 = vmatpush1.msra.mxu0 %v4667_v20 }
0x2223   :  { %3200 = vmatpush1.msra.mxu1 %v4532_v36  ;;  %3308 = vmatprep.subr.mxu0 %v4674_v17 }
0x2224   :  { %3201 = vmatprep.subr.mxu1 %v4539_v4  ;;  %3309 = vmatpush1.msra.mxu0 %v4681_v37 }
0x2225   :  { %3202 = vmatpush1.msra.mxu1 %v4546_v27  ;;  %3310 = vmatprep.subr.mxu0 %v4688_v40 }
0x2226   :  { %3203 = vmatprep.subr.mxu1 %v4553_v28  ;;  %3311 = vmatpush1.msra.mxu0 %v4695_v12  ;;  %v2621_v12 = vadd.f32 %v4890_v34, %v4886_v15 }
0x2227   :  { %3204 = vmatpush1.msra.mxu1 %v4560_v29  ;;  %3312 = vmatprep.subr.mxu0 %v4702_v21 }
0x2228   :  { %3313 = vmatpush1.msra.mxu0 %v4708_v23  ;;  %3346 = vmatprep.mubr.f32.mxu0 %v5166_v61  ;;  %v2624_v21 = vadd.f32 %v2621_v12, %v4313_v50 }
0x2229   :  { %3382 = vmatprep.subr.mxu1 %v4715_v24  ;;  %v3049_v24 = vsub.f32 1.0, %v4895_v11 }
0x222a   :  { %vm2632_vm13 = vcmp.gt.f32.partialorder %v2624_v21, 0.0 }
0x222b   :  { %v4945_v23 = vsel %vm2632_vm13, 1.0, %v5166_v61 }
0x222c   :  { %v3043_v14 = vsub.f32 1.0, %v4945_v23 }
0x222e   :  { %v3050_v45 = vmul.f32 %v3049_v24, %v3043_v14  ;;  %v3053_v59 = vmul.f32 %v4895_v11, %v3043_v14 }
0x2230   :  { %v3051_v26 = vmul.f32 %v3050_v45, %v4864_v30  ;;  %v3069_v49 = vmul.f32 %v3050_v45, %v4872_v63 }
0x22e0   :  { %v3021_v1 = vpop.f32.mrf.mxu1 }
0x22e1   :  { %v3022_v36 = vadd.f32 %v3021_v1, %v2945_v44  ;;  %v5183_v44 = vld [vmem:[#allocation9_spill] sm:$0xff] }
0x22e2   :  { %v237_v1 = vadd.f32 %v5183_v44, %v4051_v39 }
0x22e3   :  { %v3026_v4 = vadd.f32 %v3022_v36, %v4190_v53 }
0x22e5   :  { %3744 = vtanh.f32 %v3026_v4  ;;  %v3584_v28 = vmul.f32 -1.442695, %v3026_v4  ;;  %v5184_v4 = vld [vmem:[#allocation10_spill] sm:$0xff] }
0x22e7   :  { %3746 = vpow2.f32 %v3584_v28 }
0x22f2   :  { %v3745_v27 = vpop.eup %3744 }
0x22f3   :  { %3039 = vrot.lane.b32.xlu0 %v3745_v27, %s3801_s4 }
0x22f4   :  { %v3747_v29 = vpop.eup %3746 }
0x22f5   :  { %v3031_v20 = vadd.f32 1.0, %v3747_v29 }
0x22f7   :  { %3748 = vrcp.f32 %v3031_v20 }
0x2304   :  { %v3749_v17 = vpop.eup %3748 }
0x2305   :  { %v3054_v7 = vmul.f32 %v3749_v17, %v4864_v30 }
0x2365   :  { %v3040_v37 = vpop.permute.xlu0 %3039 }
0x2366   :  { %v3042_v40 = vmul.f32 %v3749_v17, %v3040_v37 }
0x2368   :  { %3045 = vrot.lane.b32.xlu1 %v3042_v40, %s3803_s7 }
0x23da   :  { %v3046_v25 = vpop.permute.xlu1 %3045 }
0x23db   :  { %v3048_v15 = vmul.f32 %v4945_v23, %v3046_v25  ;;  %v3055_v34 = vadd.f32 %v3054_v7, %v3046_v25 }
0x23dd   :  { %v3052_v46 = vadd.f32 %v3051_v26, %v3048_v15  ;;  %v3056_v13 = vmul.f32 %v3055_v34, %v3053_v59 }
0x23df   :  { %v4953_v33 = vadd.f32 %v3056_v13, %v3052_v46 }
0x23e1   :  { %3750 = vtanh.f32 %v4953_v33 }
0x23ee   :  { %v3751_v60 = vpop.eup %3750 }
0x23ef   :  { %3060 = vrot.lane.b32.xlu0 %v3751_v60, %s3801_s4 }
0x23f3   :  { %3262 = vrot.lane.b32.xlu0 %v2868_v3, %s3803_s7  ;;  %v2947_v3 = vpop.f32.mrf.mxu0 }
0x23f5   :  { %v3162_v18 = vpop.f32.mrf.mxu0 }
0x23f6   :  { %v3167_v27 = vadd.f32 %v3162_v18, %v237_v1 }
0x23f7   :  { %v3164_v36 = vpop.f32.mrf.mxu0 }
0x2461   :  { %v3061_v47 = vpop.permute.xlu0 %3060 }
0x2462   :  { %v3063_v54 = vmul.f32 %v3749_v17, %v3061_v47 }
0x2464   :  { %3065 = vrot.lane.b32.xlu1 %v3063_v54, %s3801_s4 }
0x2465   :  { %v3263_v40 = vpop.permute.xlu0 %3262 }
0x24d6   :  { %v3066_v30 = vpop.permute.xlu1 %3065 }
0x24d7   :  { %v3068_v8 = vmul.f32 %v4945_v23, %v3066_v30  ;;  %v3071_v55 = vmul.f32 %v3066_v30, %v3053_v59 }
0x24d9   :  { %v3070_v10 = vadd.f32 %v3069_v49, %v3068_v8 }
0x24db   :  { %v4961_v5 = vadd.f32 %v3071_v55, %v3070_v10 }
0x24dd   :  { %v3169_v38 = vmul.f32 %v4895_v11, %v4961_v5 }
0x24df   :  { %3588 = vmatmul.mubr.msk.f32.vlgmr.msra.gmra.mxu1 %vm103_vm0, %v3169_v38 }
0x24e0   :  { %3383 = vmatpush1.msra.mxu1 %v4753_v16  ;;  %3422 = vmatprep.mubr.f32.mxu1 %v5166_v61  ;;  %v3023_v16 = vpop.f32.mrf.mxu1 }
0x24e1   :  { %3384 = vmatprep.subr.mxu1 %v4760_v32  ;;  %v239_v32 = vadd.f32 %v5184_v4, %v4055_v41  ;;  %v3024_v38 = vadd.f32 %v3023_v16, %v2947_v3 }
0x24e2   :  { %3385 = vmatpush1.msra.mxu1 %v4766_v58 }
0x24e3   :  { %3386 = vmatprep.subr.mxu1 %v4772_v9  ;;  %v3168_v28 = vadd.f32 %v3164_v36, %v239_v32  ;;  %v3027_v18 = vadd.f32 %v3024_v38, %v4313_v50 }
0x24e4   :  { %3387 = vmatpush1.msra.mxu1 %v4778_v57 }
0x24e5   :  { %3388 = vmatprep.subr.mxu1 %v4784_v31  ;;  %vm3035_vm15 = vcmp.gt.f32.partialorder %v3027_v18, 0.0 }
0x24e6   :  { %3389 = vmatpush1.msra.mxu1 %v4790_v0 }
0x259f   :  { %v3239_v58 = vpop.f32.mrf.mxu1 }
0x25a0   :  { %v3244_v9 = vadd.f32 %v3239_v58, %v3167_v27 }
0x25a1   :  { %v3241_v29 = vpop.f32.mrf.mxu1 }
0x25a2   :  { %v3589_v57 = vmul.f32 -1.442695, %v3244_v9  ;;  %3752 = vtanh.f32 %v3244_v9  ;;  %v3245_v31 = vadd.f32 %v3241_v29, %v3168_v28 }
0x25a4   :  { %3754 = vpow2.f32 %v3589_v57  ;;  %vm3253_vm14 = vcmp.gt.f32.partialorder %v3245_v31, 0.0  ;;  %v5185_v31 = vld [vmem:[#allocation5_spill] sm:$0xff] }
0x25a5   :  { %v4979_v0 = vsel %vm3253_vm14, 1.0, %v5166_v61 }
0x25a6   :  { %v3278_v39 = vmul.f32 %v4979_v0, %v4961_v5  ;;  %v3452_v44 = vsub.f32 1.0, %v4979_v0 }
0x25a8   :  { %3591 = vmatmul.mubr.msk.f32.vlgmr.msra.gmra.mxu0 %vm103_vm0, %v3278_v39 }
0x25af   :  { %v3753_v20 = vpop.eup %3752 }
0x25b0   :  { %3257 = vrot.lane.b32.xlu1 %v3753_v20, %s3801_s4  ;;  %v3610_v20 = vpack.i.bf16 %v4803_v19, %v4627_v2 }
0x25b1   :  { %v3755_v41 = vpop.eup %3754 }
0x25b2   :  { %v3249_v17 = vadd.f32 1.0, %v3755_v41  ;;  %v3620_v41 = vpack.i.bf16 %v4410_v43, %v4319_v42 }
0x25b4   :  { %3756 = vrcp.f32 %v3249_v17 }
0x25c1   :  { %v3757_v37 = vpop.eup %3756 }
0x25c2   :  { %v3265_v12 = vmul.f32 %v3757_v37, %v3263_v40 }
0x25c4   :  { %v3266_v21 = vmul.f32 %v3265_v12, %v3049_v24 }
0x25c6   :  { %3268 = vrot.lane.b32.xlu0 %v3266_v21, %s3802_s12 }
0x2622   :  { %v3258_v14 = vpop.permute.xlu1 %3257 }
0x2623   :  { %v3260_v45 = vmul.f32 %v3757_v37, %v3258_v14  ;;  %v5188_v14 = vld [vmem:[#allocation15_spill] sm:$0xff] }
0x2638   :  { %v3269_v7 = vpop.permute.xlu0 %3268 }
0x2639   :  { %v3271_v25 = vadd.f32 %v3269_v7, %v3260_v45  ;;  %v5189_v45 = vld [vmem:[#allocation17_spill] sm:$0xff] }
0x263b   :  { %3758 = vtanh.f32 %v3271_v25 }
0x2648   :  { %v3759_v26 = vpop.eup %3758 }
0x2649   :  { %3274 = vrot.lane.b32.xlu1 %v3759_v26, %s3802_s12 }
0x2668   :  { %v3348_v24 = vpop.f32.mrf.mxu0 }
0x266a   :  { %v3350_v2 = vpop.f32.mrf.mxu0 }
0x26bb   :  { %v3275_v59 = vpop.permute.xlu1 %3274 }
0x26bc   :  { %v3277_v15 = vmul.f32 %v3757_v37, %v3275_v59  ;;  %v5187_v37 = vld [vmem:[#allocation13_spill] sm:$0xff] }
0x26bd   :  { %v3605_v40 = vpack.i.bf16 %v5187_v37, %v4359_v51  ;;  %v5190_v51 = vld [vmem:[#allocation4_spill] sm:$0xff] }
0x26be   :  { %3354 = vrot.lane.b32.xlu0 %v3277_v15, %s3801_s4 }
0x2730   :  { %v4988_v34 = vpop.permute.xlu0 %3354 }
0x2731   :  { %3592 = vmatmul.mubr.msk.f32.vlgmr.msra.gmra.mxu1 %vm103_vm0, %v4988_v34 }
0x27f1   :  { %v3424_v46 = vpop.f32.mrf.mxu1 }
0x27f2   :  { %v3425_v13 = vadd.f32 %v3424_v46, %v3348_v24  ;;  %v5191_v46 = vld [vmem:[#allocation16_spill] sm:$0xff] }
0x27f3   :  { %v3426_v42 = vpop.f32.mrf.mxu1 }
0x27f4   :  { %v3429_v60 = vadd.f32 %v3425_v13, %v4190_v53  ;;  %v4997_v53 = vsel %vm3035_vm15, 1.0, %v5166_v61 }
0x27f5   :  { %v3446_v1 = vsub.f32 1.0, %v4997_v53 }
0x27f6   :  { %3760 = vtanh.f32 %v3429_v60  ;;  %v3593_v54 = vmul.f32 -1.442695, %v3429_v60 }
0x27f7   :  { %v5001_v36 = vmul.f32 %v3452_v44, %v3446_v1  ;;  %v5007_v3 = vmul.f32 %v4979_v0, %v3446_v1 }
0x27f8   :  { %3762 = vpow2.f32 %v3593_v54 }
0x27f9   :  { %v3454_v27 = vmul.f32 %v5001_v36, %v4953_v33 }
0x2803   :  { %v3761_v47 = vpop.eup %3760 }
0x2804   :  { %3442 = vrot.lane.b32.xlu1 %v3761_v47, %s3801_s4 }
0x2805   :  { %v3763_v30 = vpop.eup %3762 }
0x2806   :  { %v3434_v49 = vadd.f32 1.0, %v3763_v30 }
0x2808   :  { %3764 = vrcp.f32 %v3434_v49  ;;  %v3472_v49 = vmul.f32 %v5001_v36, %v4961_v5 }
0x2815   :  { %v3765_v8 = vpop.eup %3764 }
0x2816   :  { %v3457_v4 = vmul.f32 %v3765_v8, %v4953_v33  ;;  %v5186_v33 = vld [vmem:[#allocation3_spill] sm:$0xff] }
0x2817   :  { %v3600_v39 = vpack.i.bf16 %v4258_v62, %v5186_v33 }
0x2876   :  { %v3443_v10 = vpop.permute.xlu1 %3442 }
0x2877   :  { %v3445_v55 = vmul.f32 %v3765_v8, %v3443_v10 }
0x2879   :  { %3448 = vrot.lane.b32.xlu0 %v3445_v55, %s3803_s7 }
0x28eb   :  { %v3449_v32 = vpop.permute.xlu0 %3448 }
0x28ec   :  { %v3451_v16 = vmul.f32 %v4997_v53, %v3449_v32  ;;  %v3458_v58 = vadd.f32 %v3457_v4, %v3449_v32  ;;  %v5192_v4 = vld [vmem:[#allocation11_spill] sm:$0xff] }
0x28ee   :  { %v3455_v28 = vadd.f32 %v3454_v27, %v3451_v16  ;;  %v3459_v9 = vmul.f32 %v3458_v58, %v5007_v3  ;;  %v5193_v58 = vld [vmem:[#allocation6_spill] sm:$0xff] }
0x28f0   :  { %v5011_v29 = vadd.f32 %v3459_v9, %v3455_v28 }
0x28f2   :  { %3766 = vtanh.f32 %v5011_v29 }
0x28ff   :  { %v3767_v57 = vpop.eup %3766 }
0x2900   :  { %3463 = vrot.lane.b32.xlu1 %v3767_v57, %s3801_s4 }
0x2904   :  { %649 = vrot.lane.b32.xlu1 %v5185_v31, %s3803_s7 }
0x2908   :  { %1463 = vrot.lane.b32.xlu1 %v4428_v22, %s3802_s12  ;;  %v3630_v22 = vpack.i.bf16 %v4945_v23, %v4854_v6  ;;  %v3427_v6 = vadd.f32 %v3426_v42, %v3350_v2 }
0x290a   :  { %v3430_v12 = vadd.f32 %v3427_v6, %v4313_v50 }
0x290c   :  { %2269 = vrot.lane.b32.xlu1 %v4745_v48, %s3802_s12  ;;  %vm3438_vm1 = vcmp.gt.f32.partialorder %v3430_v12, 0.0 }
0x290d   :  { %v3594_v7 = vsel %vm3438_vm1, 1.0, %v5166_v61 }
0x2910   :  { %3075 = vrot.lane.b32.xlu1 %v4961_v5, %s3802_s12 }
0x2914   :  { %3601 = vrot.lane.b32.xlu1 %v3600_v39, %s3801_s4 }
0x2918   :  { %3611 = vrot.lane.b32.xlu1 %v3610_v20, %s3801_s4 }
0x291c   :  { %3621 = vrot.lane.b32.xlu1 %v3620_v41, %s3803_s7 }
0x2920   :  { %3631 = vrot.lane.b32.xlu1 %v3630_v22, %s3803_s7 }
0x2924   :  { %3495 = vrot.lane.b32.xlu1 %v3271_v25, %s3803_s7 }
0x2972   :  { %v3464_v62 = vpop.permute.xlu1 %3463 }
0x2973   :  { %v3466_v48 = vmul.f32 %v3765_v8, %v3464_v62  ;;  %v5195_v62 = vld [vmem:[#allocation14_spill] sm:$0xff] }
0x2975   :  { %3468 = vrot.lane.b32.xlu0 %v3466_v48, %s3801_s4 }
0x2976   :  { %v650_v17 = vpop.permute.xlu1 %649 }
0x2977   :  { %v660_v26 = vsel %vm103_vm0, %v5190_v51, %v650_v17 }
0x2979   :  { %1060 = vrot.lane.b32.xlu0 %v4336_v52, %s3802_s12 }
0x297a   :  { %v5039_v19 = vpop.permute.xlu1 %1463 }
0x297d   :  { %1866 = vrot.lane.b32.xlu0 %v4599_v35, %s3802_s12  ;;  %v3615_v35 = vpack.i.bf16 %v4979_v0, %v4895_v11  ;;  %v3635_v11 = vpack.i.bf16 %v3594_v7, %v4997_v53 }
0x297e   :  { %v2270_v43 = vpop.permute.xlu1 %2269 }
0x297f   :  { %v2280_v13 = vsel %vm103_vm0, %v5191_v46, %v2270_v43 }
0x2981   :  { %2672 = vrot.lane.b32.xlu0 %v4872_v63, %s3802_s12  ;;  %v3625_v63 = vpack.i.bf16 %v5189_v45, %v5188_v14 }
0x2982   :  { %v5045_v23 = vpop.permute.xlu1 %3075 }
0x2983   :  { %v3086_v12 = vsel %vm103_vm0, %v4915_v56, %v5045_v23 }
0x2985   :  { %3606 = vrot.lane.b32.xlu0 %v3605_v40, %s3801_s4 }
0x2986   :  { %v3602_v52 = vpop.permute.xlu1 %3601 }
0x2987   :  { %v3603_v25 = vunpack.i.l.bf16 %v3602_v52  ;;  %v3604_v38 = vunpack.i.h.bf16 %v3602_v52 }
0x2989   :  { %3616 = vrot.lane.b32.xlu0 %v3615_v35, %s3801_s4  ;;  %v662_v0 = vsel %vm661_vm2, %v660_v26, %v3603_v25 }
0x298a   :  { %v3612_v21 = vpop.permute.xlu1 %3611 }
0x298b   :  { %v3613_v15 = vunpack.i.l.bf16 %v3612_v21 }
0x298d   :  { %3626 = vrot.lane.b32.xlu0 %v3625_v63, %s3803_s7  ;;  %v2281_v47 = vsel %vm661_vm2, %v2280_v13, %v3613_v15 }
0x298e   :  { %v3622_v50 = vpop.permute.xlu1 %3621 }
0x298f   :  { %v3623_v59 = vunpack.i.l.bf16 %v3622_v50  ;;  %v3624_v44 = vunpack.i.h.bf16 %v3622_v50 }
0x2991   :  { %v664_v24 = vsel %vm663_vm3, %v662_v0, %v3623_v59  ;;  %3636 = vrot.lane.b32.xlu0 %v3635_v11, %s3803_s7 }
0x2992   :  { %665 = vst [vmem:[%s5138_s8] sm:$0xff] %v664_v24  ;;  %v3632_v61 = vpop.permute.xlu1 %3631 }
0x2993   :  { %v3633_v60 = vunpack.i.l.bf16 %v3632_v61 }
0x2995   :  { %v2282_v54 = vsel %vm663_vm3, %v2281_v47, %v3633_v60 }
0x2996   :  { %3568 = vst [vmem:[%s5138_s8 + $0x20] sm:$0xff] %v2282_v54  ;;  %v3496_v56 = vpop.permute.xlu1 %3495 }
0x29e7   :  { %v3469_v30 = vpop.permute.xlu0 %3468 }
0x29e8   :  { %v3471_v8 = vmul.f32 %v4997_v53, %v3469_v30  ;;  %v3474_v55 = vmul.f32 %v3469_v30, %v5007_v3  ;;  %v3614_v53 = vunpack.i.h.bf16 %v3612_v21  ;;  %v3634_v3 = vunpack.i.h.bf16 %v3632_v61 }
0x29ea   :  { %v3473_v10 = vadd.f32 %v3472_v49, %v3471_v8 }
0x29eb   :  { %v1061_v18 = vpop.permute.xlu0 %1060 }
0x29ec   :  { %v3475_v1 = vadd.f32 %v3474_v55, %v3473_v10  ;;  %v1071_v32 = vsel %vm103_vm0, %v5192_v4, %v1061_v18 }
0x29ed   :  { %v1072_v27 = vsel %vm661_vm2, %v1071_v32, %v3604_v38 }
0x29ee   :  { %v1073_v16 = vsel %vm663_vm3, %v1072_v27, %v3624_v44  ;;  %3478 = vrot.lane.b32.xlu0 %v3475_v1, %s3802_s12 }
0x29ef   :  { %3541 = vst [vmem:[%s5138_s8 + $0x8] sm:$0xff] %v1073_v16  ;;  %v1867_v5 = vpop.permute.xlu0 %1866 }
0x29f0   :  { %v1877_v48 = vsel %vm103_vm0, %v5195_v62, %v1867_v5 }
0x29f2   :  { %3499 = vrot.lane.b32.xlu0 %v5011_v29, %s3802_s12  ;;  %v5194_v29 = vld [vmem:[#allocation12_spill] sm:$0xff] }
0x29f3   :  { %v2673_v36 = vpop.permute.xlu0 %2672  ;;  %v1474_v22 = vsel %vm103_vm0, %v5194_v29, %v5039_v19 }
0x29f4   :  { %v2683_v28 = vsel %vm103_vm0, %v5193_v58, %v2673_v36 }
0x29f5   :  { %v2684_v9 = vsel %vm661_vm2, %v2683_v28, %v3614_v53 }
0x29f6   :  { %v2685_v57 = vsel %vm663_vm3, %v2684_v9, %v3634_v3 }
0x29f7   :  { %3577 = vst [vmem:[%s5138_s8 + $0x28] sm:$0xff] %v2685_v57  ;;  %v3607_v31 = vpop.permute.xlu0 %3606 }
0x29f8   :  { %v3609_v39 = vunpack.i.h.bf16 %v3607_v31  ;;  %v3608_v20 = vunpack.i.l.bf16 %v3607_v31 }
0x29fa   :  { %v1878_v43 = vsel %vm661_vm2, %v1877_v48, %v3609_v39  ;;  %v1475_v2 = vsel %vm661_vm2, %v1474_v22, %v3608_v20 }
0x29fb   :  { %v3617_v33 = vpop.permute.xlu0 %3616 }
0x29fc   :  { %v3618_v6 = vunpack.i.l.bf16 %v3617_v33  ;;  %v3619_v14 = vunpack.i.h.bf16 %v3617_v33 }
0x29fe   :  { %v3087_v35 = vsel %vm661_vm2, %v3086_v12, %v3618_v6 }
0x29ff   :  { %v3627_v41 = vpop.permute.xlu0 %3626 }
0x2a00   :  { %v3629_v17 = vunpack.i.h.bf16 %v3627_v41  ;;  %v3628_v42 = vunpack.i.l.bf16 %v3627_v41 }
0x2a02   :  { %v1476_v37 = vsel %vm663_vm3, %v1475_v2, %v3628_v42  ;;  %v1879_v40 = vsel %vm663_vm3, %v1878_v43, %v3629_v17 }
0x2a03   :  { %3550 = vst [vmem:[%s5138_s8 + $0x10] sm:$0xff] %v1476_v37  ;;  %3559 = vst [vmem:[%s5138_s8 + $0x18] sm:$0xff] %v1879_v40  ;;  %v3637_v19 = vpop.permute.xlu0 %3636 }
0x2a04   :  { %v3638_v52 = vunpack.i.l.bf16 %v3637_v19  ;;  %v3639_v63 = vunpack.i.h.bf16 %v3637_v19 }
0x2a06   :  { %v3088_v21 = vsel %vm663_vm3, %v3087_v35, %v3638_v52 }
0x2a07   :  { %3586 = vst [vmem:[%s5138_s8 + $0x30] sm:$0xff] %v3088_v21 }
0x2a60   :  { %v3479_v45 = vpop.permute.xlu0 %3478 }
0x2a61   :  { %v3489_v7 = vsel %vm103_vm0, %v4988_v34, %v3479_v45 }
0x2a62   :  { %v3490_v25 = vsel %vm661_vm2, %v3489_v7, %v3619_v14 }
0x2a63   :  { %v3491_v50 = vsel %vm663_vm3, %v3490_v25, %v3639_v63 }
0x2a64   :  { %3595 = vst [vmem:[%s5138_s8 + $0x38] sm:$0xff] %v3491_v50  ;;  %v3500_v23 = vpop.permute.xlu0 %3499 }
0x2a65   :  { %v3502_v51 = vsel %vm103_vm0, %v3496_v56, %v3500_v23 }
0x2a66   :  { %3503 = vst.msk [vmem:[%s5139_s9] sm:$0xff] %vm661_vm2, %v3502_v51 }

</bundles_post_ra>
